<compile_context>
chip_gen: v5e
topology: v5e:2x2
jax: 0.10.0
libtpu: 0.0.40
codegen_flags: <defaults>
</compile_context>

<pallas_src>
import functools

import jax
import jax.numpy as jnp
from jax import lax
from jax.experimental import pallas as pl
from jax.experimental.pallas import tpu as pltpu


# ----------------------------------------------------------------------------
# Kernel 1: main_fft  (depthwise conv -> ReLU -> depthwise conv), per batch elem
# ----------------------------------------------------------------------------
def _zero_halo_chw(ref, c, h, w):
    # zero only the 1-px border of a (c, h+2, w+2) scratch (every step: scratch
    # state is per-core, so gating on program_id==0 is unsafe under "parallel")
    ref[:, 0:1, :] = jnp.zeros((c, 1, w + 2), jnp.float32)
    ref[:, h + 1:h + 2, :] = jnp.zeros((c, 1, w + 2), jnp.float32)
    ref[:, :, 0:1] = jnp.zeros((c, h + 2, 1), jnp.float32)
    ref[:, :, w + 1:w + 2] = jnp.zeros((c, h + 2, 1), jnp.float32)


def _fft_branch_kernel(z_ref, w1_ref, b1_ref, w2_ref, b2_ref, out_ref,
                       p1_ref, p2_ref):
    # z_ref : (1, 2C, H, Wf)  channel-major [real||imag] spectrum
    # w*    : (3, 3, 2C, Wf)  depthwise weights, pre-tiled along Wf (lanes)
    # b*    : (2C, 1, Wf)     biases, pre-tiled along Wf
    # out   : (1, 2C, H, Wf)
    # p1/p2 : VMEM scratch (2C, H+2, Wf+2)
    C2 = z_ref.shape[1]
    H = z_ref.shape[2]
    Wf = z_ref.shape[3]

    _zero_halo_chw(p1_ref, C2, H, Wf)
    _zero_halo_chw(p2_ref, C2, H, Wf)

    # in-kernel halo padding (no wrapper-side jnp.pad HBM pass)
    p1_ref[:, 1:H + 1, 1:Wf + 1] = z_ref[0]

    # depthwise conv 1 + bias + ReLU (VPU, channels vectorized in outer dim)
    acc = jnp.zeros((C2, H, Wf), jnp.float32)
    for dh in range(3):
        for dw in range(3):
            acc = acc + p1_ref[:, dh:dh + H, dw:dw + Wf] * w1_ref[dh, dw][:, None, :]
    act = jnp.maximum(acc + b1_ref[...], 0.0)

    # depthwise conv 2 + bias
    p2_ref[:, 1:H + 1, 1:Wf + 1] = act
    acc2 = jnp.zeros((C2, H, Wf), jnp.float32)
    for dh in range(3):
        for dw in range(3):
            acc2 = acc2 + p2_ref[:, dh:dh + H, dw:dw + Wf] * w2_ref[dh, dw][:, None, :]
    out_ref[0] = acc2 + b2_ref[...]


def fft_branch_pallas(z, w1, b1, w2, b2):
    # z: (N, 2C, H, Wf) float32  ->  (N, 2C, H, Wf)
    N, C2, H, Wf = z.shape
    return pl.pallas_call(
        _fft_branch_kernel,
        out_shape=jax.ShapeDtypeStruct((N, C2, H, Wf), jnp.float32),
        grid_spec=pltpu.PrefetchScalarGridSpec(
            num_scalar_prefetch=0,
            grid=(N,),
            in_specs=[
                pl.BlockSpec((1, C2, H, Wf), lambda n: (n, 0, 0, 0)),
                pl.BlockSpec((3, 3, C2, Wf), lambda n: (0, 0, 0, 0)),
                pl.BlockSpec((C2, 1, Wf), lambda n: (0, 0, 0)),
                pl.BlockSpec((3, 3, C2, Wf), lambda n: (0, 0, 0, 0)),
                pl.BlockSpec((C2, 1, Wf), lambda n: (0, 0, 0)),
            ],
            out_specs=pl.BlockSpec((1, C2, H, Wf), lambda n: (n, 0, 0, 0)),
            scratch_shapes=[pltpu.VMEM((C2, H + 2, Wf + 2), jnp.float32),
                            pltpu.VMEM((C2, H + 2, Wf + 2), jnp.float32)],
        ),
        compiler_params=pltpu.CompilerParams(dimension_semantics=("parallel",)),
    )(z, w1, b1, w2, b2)


# ----------------------------------------------------------------------------
# Kernel 2: merging = UNetConvBlock(2C -> C, relu_slope=0.2, use_HIN=True)
# ----------------------------------------------------------------------------
def _zero_halo_hwc(ref, h, w, c):
    ref[0:1, :, :] = jnp.zeros((1, w + 2, c), jnp.float32)
    ref[h + 1:h + 2, :, :] = jnp.zeros((1, w + 2, c), jnp.float32)
    ref[:, 0:1, :] = jnp.zeros((h + 2, 1, c), jnp.float32)
    ref[:, w + 1:w + 2, :] = jnp.zeros((h + 2, 1, c), jnp.float32)


def _merging_kernel(xc_ref, wc1_ref, bc1_ref, w2_ref, b2_ref, gamma_ref,
                    beta_ref, out_ref, pad1_ref, pad2_ref, *, H, W):
    # xc_ref  : (1, 2C, H*W)  channel-major, lane-dense load
    # wc1_ref : (9*2C, 2C)    [conv_1 im2col | identity-at-center-tap] fused
    # bc1_ref : (1, 2C)       [conv_1 bias  | identity bias]
    # w2_ref  : (9*C, C)      conv_2 im2col weights ; b2_ref: (1, C)
    # gamma/beta: (1, C)      HIN affine (second half masked to 1/0)
    # out_ref : (1, C, H*W)   lane-dense store
    # pad1/pad2: VMEM scratch (H+2, W+2, 2C) / (H+2, W+2, C)
    Cin = xc_ref.shape[1]
    HW = xc_ref.shape[2]
    C = out_ref.shape[1]
    half = C // 2

    _zero_halo_hwc(pad1_ref, H, W, Cin)
    _zero_halo_hwc(pad2_ref, H, W, C)

    # channel-major -> HWC once, into the padded scratch (no wrapper pad)
    xc_cm = xc_ref[0]                                   # (Cin, HW)
    pad1_ref[1:H + 1, 1:W + 1, :] = xc_cm.T.reshape(H, W, Cin)

    # ---- conv_1 (3x3, 2C->C) fused with identity 1x1 (2C->C): one matmul ----
    taps = []
    for dh in range(3):
        for dw in range(3):
            taps.append(pad1_ref[dh:dh + H, dw:dw + W, :].reshape(HW, Cin))
    patches = jnp.concatenate(taps, axis=1)             # (HW, 9*Cin)
    both = jnp.dot(patches, wc1_ref[...],
                   preferred_element_type=jnp.float32) + bc1_ref[...]   # (HW, 2C)
    out1 = both[:, :C]
    ident = both[:, C:]

    # ---- HIN: instance norm on first C//2 channels, one-pass statistics ----
    mu = jnp.mean(out1, axis=0, keepdims=True)                          # (1, C)
    msq = jnp.mean(out1 * out1, axis=0, keepdims=True)
    var = msq - mu * mu
    normed = (out1 - mu) * lax.rsqrt(var + 1e-5)
    normed = normed * gamma_ref[...] + beta_ref[...]
    ch = lax.broadcasted_iota(jnp.int32, (HW, C), 1)
    o = jnp.where(ch < half, normed, out1)
    a1 = jnp.where(o >= 0, o, 0.2 * o)                                  # LeakyReLU

    # ---- conv_2 (3x3, C->C): one im2col matmul, then LeakyReLU ----
    pad2_ref[1:H + 1, 1:W + 1, :] = a1.reshape(H, W, C)
    taps2 = []
    for dh in range(3):
        for dw in range(3):
            taps2.append(pad2_ref[dh:dh + H, dw:dw + W, :].reshape(HW, C))
    patches2 = jnp.concatenate(taps2, axis=1)           # (HW, 9*C)
    acc2 = jnp.dot(patches2, w2_ref[...],
                   preferred_element_type=jnp.float32) + b2_ref[...]
    a2 = jnp.where(acc2 >= 0, acc2, 0.2 * acc2)

    res = a2 + ident                                    # (HW, C)
    out_ref[0] = res.T                                  # (C, HW) lane-dense store


def merging_pallas(xc, wc1, bc1, w2c, b2, gamma, beta, H, W):
    # xc: (N, 2C, H*W) float32 -> (N, C, H*W)
    N, Cin, HW = xc.shape
    C = Cin // 2
    kern = functools.partial(_merging_kernel, H=H, W=W)
    return pl.pallas_call(
        kern,
        out_shape=jax.ShapeDtypeStruct((N, C, HW), jnp.float32),
        grid_spec=pltpu.PrefetchScalarGridSpec(
            num_scalar_prefetch=0,
            grid=(N,),
            in_specs=[
                pl.BlockSpec((1, Cin, HW), lambda n: (n, 0, 0)),
                pl.BlockSpec((9 * Cin, 2 * C), lambda n: (0, 0)),
                pl.BlockSpec((1, 2 * C), lambda n: (0, 0)),
                pl.BlockSpec((9 * C, C), lambda n: (0, 0)),
                pl.BlockSpec((1, C), lambda n: (0, 0)),
                pl.BlockSpec((1, C), lambda n: (0, 0)),
                pl.BlockSpec((1, C), lambda n: (0, 0)),
            ],
            out_specs=pl.BlockSpec((1, C, HW), lambda n: (n, 0, 0)),
            scratch_shapes=[pltpu.VMEM((H + 2, W + 2, Cin), jnp.float32),
                            pltpu.VMEM((H + 2, W + 2, C), jnp.float32)],
        ),
        compiler_params=pltpu.CompilerParams(dimension_semantics=("parallel",)),
    )(xc, wc1, bc1, w2c, b2, gamma, beta)


# ----------------------------------------------------------------------------
# Full forward (FFT glue in plain JAX, hot path in Pallas; no transposes/pads)
# ----------------------------------------------------------------------------
def _im2col_weights(w_oihw):
    # (Cout, Cin, 3, 3) -> (9*Cin, Cout), row order (dh, dw, cin)
    cout, cin, kh, kw = w_oihw.shape
    return jnp.transpose(w_oihw, (2, 3, 1, 0)).reshape(kh * kw * cin, cout)


def res_block_fft_forward(x, p):
    # x: (N, C, H, W) float32 (PyTorch NCHW convention)
    N, C, H, W = x.shape
    C2 = 2 * C
    Wf = W // 2 + 1
    HW = H * W

    # ---- frequency branch (rfft2/irfft2 stay in XLA) ----
    y = jnp.fft.rfft2(x, norm="backward")                       # (N, C, H, Wf) c64
    y_f = jnp.concatenate([y.real, y.imag], axis=1).astype(jnp.float32)  # (N,2C,H,Wf)

    dw1 = jnp.broadcast_to(
        jnp.transpose(p["dw1_oihw"][:, 0], (1, 2, 0))[..., None], (3, 3, C2, Wf))
    dw2 = jnp.broadcast_to(
        jnp.transpose(p["dw2_oihw"][:, 0], (1, 2, 0))[..., None], (3, 3, C2, Wf))
    db1 = jnp.broadcast_to(p["dw1_b"][:, None, None], (C2, 1, Wf))
    db2 = jnp.broadcast_to(p["dw2_b"][:, None, None], (C2, 1, Wf))
    z = fft_branch_pallas(y_f, dw1, db1, dw2, db2)              # (N, 2C, H, Wf)

    yr, yi = jnp.split(z, 2, axis=1)
    y_sp = jnp.fft.irfft2(yr + 1j * yi, s=(H, W), norm="backward")   # (N, C, H, W)

    # ---- merging branch (channel-major flat spatial layout, reshape is free) ----
    xc = jnp.concatenate([x, y_sp], axis=1).reshape(N, C2, HW).astype(jnp.float32)

    id_rows = jnp.zeros((9 * C2, C), jnp.float32).at[4 * C2:5 * C2].set(
        jnp.transpose(p["id_oihw"][:, :, 0, 0], (1, 0)))        # identity -> center tap
    wc1 = jnp.concatenate([_im2col_weights(p["c1_oihw"]), id_rows], axis=1)  # (9*2C, 2C)
    bc1 = jnp.concatenate([p["c1_b"], p["id_b"]])[None, :]      # (1, 2C)
    w2c = _im2col_weights(p["c2_oihw"])                         # (9*C, C)
    b2 = p["c2_b"][None, :]
    gamma_full = jnp.concatenate(
        [p["gamma"], jnp.ones((C - C // 2,), jnp.float32)])[None, :]
    beta_full = jnp.concatenate(
        [p["beta"], jnp.zeros((C - C // 2,), jnp.float32)])[None, :]

    out = merging_pallas(xc, wc1, bc1, w2c, b2, gamma_full, beta_full, H, W)
    return out.reshape(N, C, H, W)


# ----------------------------------------------------------------------------
# Pure-JAX reference (mirrors the PyTorch module) for a correctness check
# ----------------------------------------------------------------------------
def _leaky(v, slope=0.2):
    return jnp.where(v >= 0, v, slope * v)


def _conv_nchw(x, w_oihw, b, groups=1, padding=1):
    out = lax.conv_general_dilated(
        x, w_oihw, window_strides=(1, 1),
        padding=((padding, padding), (padding, padding)),
        dimension_numbers=("NCHW", "OIHW", "NCHW"),
        feature_group_count=groups)
    return out + b[None, :, None, None]


def reference_forward(x, p):
    N, C, H, W = x.shape
    y = jnp.fft.rfft2(x, norm="backward")
    y_f = jnp.concatenate([y.real, y.imag], axis=1)
    t = _conv_nchw(y_f, p["dw1_oihw"], p["dw1_b"], groups=2 * C, padding=1)
    t = jnp.maximum(t, 0.0)
    t = _conv_nchw(t, p["dw2_oihw"], p["dw2_b"], groups=2 * C, padding=1)
    yr, yi = jnp.split(t, 2, axis=1)
    y_sp = jnp.fft.irfft2(yr + 1j * yi, s=(H, W), norm="backward")
    xc = jnp.concatenate([x, y_sp], axis=1)
    o = _conv_nchw(xc, p["c1_oihw"], p["c1_b"], padding=1)
    o1, o2 = jnp.split(o, 2, axis=1)
    mu = jnp.mean(o1, axis=(2, 3), keepdims=True)
    var = jnp.mean((o1 - mu) ** 2, axis=(2, 3), keepdims=True)
    o1 = (o1 - mu) / jnp.sqrt(var + 1e-5)
    o1 = o1 * p["gamma"][None, :, None, None] + p["beta"][None, :, None, None]
    o = _leaky(jnp.concatenate([o1, o2], axis=1))
    o = _leaky(_conv_nchw(o, p["c2_oihw"], p["c2_b"], padding=1))
    o = o + _conv_nchw(xc, p["id_oihw"], p["id_b"], padding=0)
    return o


# ----------------------------------------------------------------------------
# Deterministic parameter init (shapes per the PyTorch module __init__)
# ----------------------------------------------------------------------------
def init_params(key, C):
    C2 = 2 * C
    ks = jax.random.split(key, 12)
    s = 0.2
    nrm = lambda k, shape: s * jax.random.normal(k, shape, jnp.float32)
    return dict(
        dw1_oihw=nrm(ks[0], (C2, 1, 3, 3)), dw1_b=nrm(ks[1], (C2,)),
        dw2_oihw=nrm(ks[2], (C2, 1, 3, 3)), dw2_b=nrm(ks[3], (C2,)),
        c1_oihw=nrm(ks[4], (C, C2, 3, 3)), c1_b=nrm(ks[5], (C,)),
        c2_oihw=nrm(ks[6], (C, C, 3, 3)), c2_b=nrm(ks[7], (C,)),
        id_oihw=nrm(ks[8], (C, C2, 1, 1)), id_b=nrm(ks[9], (C,)),
        gamma=1.0 + nrm(ks[10], (C // 2,)), beta=nrm(ks[11], (C // 2,)),
    )


if __name__ == "__main__":
    N, C, H, W = 2, 4, 16, 16   # channels must be even (HIN splits them in half)
    key = jax.random.PRNGKey(0)
    kx, kp = jax.random.split(key)
    x = jax.random.normal(kx, (N, C, H, W), jnp.float32)
    params = init_params(kp, C)

    out = jax.block_until_ready(res_block_fft_forward(x, params))
    ref = jax.block_until_ready(reference_forward(x, params))

    assert out.shape == (N, C, H, W)
    if not bool(jnp.allclose(out, ref, rtol=1e-3, atol=1e-2)):
        raise AssertionError(
            f"Pallas/reference mismatch, max abs err = {float(jnp.max(jnp.abs(out - ref)))}")
    print("KERNEL_OK")
</pallas_src>

<mosaic_0001>
module attributes {stable_mosaic.version = 11 : i64} {
  func.func @_fft_branch_kernel(%arg0: i32, %arg1: memref<1x8x16x9xf32, #tpu.memory_space<vmem>>, %arg2: memref<3x3x8x9xf32, #tpu.memory_space<vmem>>, %arg3: memref<8x1x9xf32, #tpu.memory_space<vmem>>, %arg4: memref<3x3x8x9xf32, #tpu.memory_space<vmem>>, %arg5: memref<8x1x9xf32, #tpu.memory_space<vmem>>, %arg6: memref<1x8x16x9xf32, #tpu.memory_space<vmem>>, %arg7: memref<8x18x11xf32, #tpu.memory_space<vmem>>, %arg8: memref<8x18x11xf32, #tpu.memory_space<vmem>>) attributes {dimension_semantics = [#tpu.dimension_semantics<parallel>], iteration_bounds = array<i64: 2>, scalar_prefetch = 0 : i64, scratch_operands = 2 : i64, tpu.core_type = #tpu.core_type<tc>, window_params = [{transform_indices = @transform_0, window_bounds = array<i64: 1, 8, 16, 9>}, {pipeline_mode = #tpu.pipeline_mode<synchronous>, transform_indices = @transform_1, window_bounds = array<i64: 3, 3, 8, 9>}, {pipeline_mode = #tpu.pipeline_mode<synchronous>, transform_indices = @transform_2, window_bounds = array<i64: 8, 1, 9>}, {pipeline_mode = #tpu.pipeline_mode<synchronous>, transform_indices = @transform_3, window_bounds = array<i64: 3, 3, 8, 9>}, {pipeline_mode = #tpu.pipeline_mode<synchronous>, transform_indices = @transform_4, window_bounds = array<i64: 8, 1, 9>}, {transform_indices = @transform_5, window_bounds = array<i64: 1, 8, 16, 9>}]} {
    %cst = arith.constant 0.000000e+00 : f32
    %0 = vector.broadcast %cst : f32 to vector<8x1x11xf32>
    %c0 = arith.constant 0 : index
    %c0_0 = arith.constant 0 : index
    %c0_1 = arith.constant 0 : index
    %1 = vector.load %arg7[%c0, %c0_0, %c0_1] : memref<8x18x11xf32, #tpu.memory_space<vmem>>, vector<8x1x11xf32>
    tpu.vector_store %arg7[%c0, %c0_0, %c0_1], %0 {strides = array<i32>} : memref<8x18x11xf32, #tpu.memory_space<vmem>>, vector<8x1x11xf32>,
    %cst_2 = arith.constant 0.000000e+00 : f32
    %2 = vector.broadcast %cst_2 : f32 to vector<8x1x11xf32>
    %c0_3 = arith.constant 0 : index
    %c17 = arith.constant 17 : index
    %c0_4 = arith.constant 0 : index
    %3 = vector.load %arg7[%c0_3, %c17, %c0_4] : memref<8x18x11xf32, #tpu.memory_space<vmem>>, vector<8x1x11xf32>
    tpu.vector_store %arg7[%c0_3, %c17, %c0_4], %2 {strides = array<i32>} : memref<8x18x11xf32, #tpu.memory_space<vmem>>, vector<8x1x11xf32>,
    %cst_5 = arith.constant 0.000000e+00 : f32
    %4 = vector.broadcast %cst_5 : f32 to vector<8x18x1xf32>
    %c0_6 = arith.constant 0 : index
    %c0_7 = arith.constant 0 : index
    %c0_8 = arith.constant 0 : index
    %5 = vector.load %arg7[%c0_6, %c0_7, %c0_8] : memref<8x18x11xf32, #tpu.memory_space<vmem>>, vector<8x18x1xf32>
    tpu.vector_store %arg7[%c0_6, %c0_7, %c0_8], %4 {strides = array<i32>} : memref<8x18x11xf32, #tpu.memory_space<vmem>>, vector<8x18x1xf32>,
    %cst_9 = arith.constant 0.000000e+00 : f32
    %6 = vector.broadcast %cst_9 : f32 to vector<8x18x1xf32>
    %c0_10 = arith.constant 0 : index
    %c0_11 = arith.constant 0 : index
    %c10 = arith.constant 10 : index
    %7 = vector.load %arg7[%c0_10, %c0_11, %c10] : memref<8x18x11xf32, #tpu.memory_space<vmem>>, vector<8x18x1xf32>
    tpu.vector_store %arg7[%c0_10, %c0_11, %c10], %6 {strides = array<i32>} : memref<8x18x11xf32, #tpu.memory_space<vmem>>, vector<8x18x1xf32>,
    %cst_12 = arith.constant 0.000000e+00 : f32
    %8 = vector.broadcast %cst_12 : f32 to vector<8x1x11xf32>
    %c0_13 = arith.constant 0 : index
    %c0_14 = arith.constant 0 : index
    %c0_15 = arith.constant 0 : index
    %9 = vector.load %arg8[%c0_13, %c0_14, %c0_15] : memref<8x18x11xf32, #tpu.memory_space<vmem>>, vector<8x1x11xf32>
    tpu.vector_store %arg8[%c0_13, %c0_14, %c0_15], %8 {strides = array<i32>} : memref<8x18x11xf32, #tpu.memory_space<vmem>>, vector<8x1x11xf32>,
    %cst_16 = arith.constant 0.000000e+00 : f32
    %10 = vector.broadcast %cst_16 : f32 to vector<8x1x11xf32>
    %c0_17 = arith.constant 0 : index
    %c17_18 = arith.constant 17 : index
    %c0_19 = arith.constant 0 : index
    %11 = vector.load %arg8[%c0_17, %c17_18, %c0_19] : memref<8x18x11xf32, #tpu.memory_space<vmem>>, vector<8x1x11xf32>
    tpu.vector_store %arg8[%c0_17, %c17_18, %c0_19], %10 {strides = array<i32>} : memref<8x18x11xf32, #tpu.memory_space<vmem>>, vector<8x1x11xf32>,
    %cst_20 = arith.constant 0.000000e+00 : f32
    %12 = vector.broadcast %cst_20 : f32 to vector<8x18x1xf32>
    %c0_21 = arith.constant 0 : index
    %c0_22 = arith.constant 0 : index
    %c0_23 = arith.constant 0 : index
    %13 = vector.load %arg8[%c0_21, %c0_22, %c0_23] : memref<8x18x11xf32, #tpu.memory_space<vmem>>, vector<8x18x1xf32>
    tpu.vector_store %arg8[%c0_21, %c0_22, %c0_23], %12 {strides = array<i32>} : memref<8x18x11xf32, #tpu.memory_space<vmem>>, vector<8x18x1xf32>,
    %cst_24 = arith.constant 0.000000e+00 : f32
    %14 = vector.broadcast %cst_24 : f32 to vector<8x18x1xf32>
    %c0_25 = arith.constant 0 : index
    %c0_26 = arith.constant 0 : index
    %c10_27 = arith.constant 10 : index
    %15 = vector.load %arg8[%c0_25, %c0_26, %c10_27] : memref<8x18x11xf32, #tpu.memory_space<vmem>>, vector<8x18x1xf32>
    tpu.vector_store %arg8[%c0_25, %c0_26, %c10_27], %14 {strides = array<i32>} : memref<8x18x11xf32, #tpu.memory_space<vmem>>, vector<8x18x1xf32>,
    %c0_28 = arith.constant 0 : index
    %c0_29 = arith.constant 0 : index
    %c0_30 = arith.constant 0 : index
    %c0_31 = arith.constant 0 : index
    %16 = vector.load %arg1[%c0_28, %c0_29, %c0_30, %c0_31] : memref<1x8x16x9xf32, #tpu.memory_space<vmem>>, vector<1x8x16x9xf32>
    %17 = vector.shape_cast %16 : vector<1x8x16x9xf32> to vector<8x16x9xf32>
    %c0_32 = arith.constant 0 : index
    %c1 = arith.constant 1 : index
    %c1_33 = arith.constant 1 : index
    %18 = vector.load %arg7[%c0_32, %c1, %c1_33] : memref<8x18x11xf32, #tpu.memory_space<vmem>>, vector<8x16x9xf32>
    tpu.vector_store %arg7[%c0_32, %c1, %c1_33], %17 {strides = array<i32>} : memref<8x18x11xf32, #tpu.memory_space<vmem>>, vector<8x16x9xf32>,
    %cst_34 = arith.constant 0.000000e+00 : f32
    %19 = vector.broadcast %cst_34 : f32 to vector<8x16x9xf32>
    %c0_35 = arith.constant 0 : index
    %c0_36 = arith.constant 0 : index
    %c0_37 = arith.constant 0 : index
    %20 = vector.load %arg7[%c0_35, %c0_36, %c0_37] : memref<8x18x11xf32, #tpu.memory_space<vmem>>, vector<8x16x9xf32>
    %c0_38 = arith.constant 0 : index
    %c0_39 = arith.constant 0 : index
    %c0_40 = arith.constant 0 : index
    %c0_41 = arith.constant 0 : index
    %21 = vector.load %arg2[%c0_38, %c0_39, %c0_40, %c0_41] : memref<3x3x8x9xf32, #tpu.memory_space<vmem>>, vector<1x1x8x9xf32>
    %22 = vector.shape_cast %21 : vector<1x1x8x9xf32> to vector<8x9xf32>
    %23 = vector.shape_cast %22 : vector<8x9xf32> to vector<8x1x9xf32>
    %24 = vector.broadcast %23 : vector<8x1x9xf32> to vector<8x16x9xf32>
    %25 = arith.mulf %20, %24 : vector<8x16x9xf32>
    %26 = arith.addf %19, %25 : vector<8x16x9xf32>
    %c0_42 = arith.constant 0 : index
    %c0_43 = arith.constant 0 : index
    %c1_44 = arith.constant 1 : index
    %27 = vector.load %arg7[%c0_42, %c0_43, %c1_44] : memref<8x18x11xf32, #tpu.memory_space<vmem>>, vector<8x16x9xf32>
    %c0_45 = arith.constant 0 : index
    %c1_46 = arith.constant 1 : index
    %c0_47 = arith.constant 0 : index
    %c0_48 = arith.constant 0 : index
    %28 = vector.load %arg2[%c0_45, %c1_46, %c0_47, %c0_48] : memref<3x3x8x9xf32, #tpu.memory_space<vmem>>, vector<1x1x8x9xf32>
    %29 = vector.shape_cast %28 : vector<1x1x8x9xf32> to vector<8x9xf32>
    %30 = vector.shape_cast %29 : vector<8x9xf32> to vector<8x1x9xf32>
    %31 = vector.broadcast %30 : vector<8x1x9xf32> to vector<8x16x9xf32>
    %32 = arith.mulf %27, %31 : vector<8x16x9xf32>
    %33 = arith.addf %26, %32 : vector<8x16x9xf32>
    %c0_49 = arith.constant 0 : index
    %c0_50 = arith.constant 0 : index
    %c2 = arith.constant 2 : index
    %34 = vector.load %arg7[%c0_49, %c0_50, %c2] : memref<8x18x11xf32, #tpu.memory_space<vmem>>, vector<8x16x9xf32>
    %c0_51 = arith.constant 0 : index
    %c2_52 = arith.constant 2 : index
    %c0_53 = arith.constant 0 : index
    %c0_54 = arith.constant 0 : index
    %35 = vector.load %arg2[%c0_51, %c2_52, %c0_53, %c0_54] : memref<3x3x8x9xf32, #tpu.memory_space<vmem>>, vector<1x1x8x9xf32>
    %36 = vector.shape_cast %35 : vector<1x1x8x9xf32> to vector<8x9xf32>
    %37 = vector.shape_cast %36 : vector<8x9xf32> to vector<8x1x9xf32>
    %38 = vector.broadcast %37 : vector<8x1x9xf32> to vector<8x16x9xf32>
    %39 = arith.mulf %34, %38 : vector<8x16x9xf32>
    %40 = arith.addf %33, %39 : vector<8x16x9xf32>
    %c0_55 = arith.constant 0 : index
    %c1_56 = arith.constant 1 : index
    %c0_57 = arith.constant 0 : index
    %41 = vector.load %arg7[%c0_55, %c1_56, %c0_57] : memref<8x18x11xf32, #tpu.memory_space<vmem>>, vector<8x16x9xf32>
    %c1_58 = arith.constant 1 : index
    %c0_59 = arith.constant 0 : index
    %c0_60 = arith.constant 0 : index
    %c0_61 = arith.constant 0 : index
    %42 = vector.load %arg2[%c1_58, %c0_59, %c0_60, %c0_61] : memref<3x3x8x9xf32, #tpu.memory_space<vmem>>, vector<1x1x8x9xf32>
    %43 = vector.shape_cast %42 : vector<1x1x8x9xf32> to vector<8x9xf32>
    %44 = vector.shape_cast %43 : vector<8x9xf32> to vector<8x1x9xf32>
    %45 = vector.broadcast %44 : vector<8x1x9xf32> to vector<8x16x9xf32>
    %46 = arith.mulf %41, %45 : vector<8x16x9xf32>
    %47 = arith.addf %40, %46 : vector<8x16x9xf32>
    %c0_62 = arith.constant 0 : index
    %c1_63 = arith.constant 1 : index
    %c1_64 = arith.constant 1 : index
    %48 = vector.load %arg7[%c0_62, %c1_63, %c1_64] : memref<8x18x11xf32, #tpu.memory_space<vmem>>, vector<8x16x9xf32>
    %c1_65 = arith.constant 1 : index
    %c1_66 = arith.constant 1 : index
    %c0_67 = arith.constant 0 : index
    %c0_68 = arith.constant 0 : index
    %49 = vector.load %arg2[%c1_65, %c1_66, %c0_67, %c0_68] : memref<3x3x8x9xf32, #tpu.memory_space<vmem>>, vector<1x1x8x9xf32>
    %50 = vector.shape_cast %49 : vector<1x1x8x9xf32> to vector<8x9xf32>
    %51 = vector.shape_cast %50 : vector<8x9xf32> to vector<8x1x9xf32>
    %52 = vector.broadcast %51 : vector<8x1x9xf32> to vector<8x16x9xf32>
    %53 = arith.mulf %48, %52 : vector<8x16x9xf32>
    %54 = arith.addf %47, %53 : vector<8x16x9xf32>
    %c0_69 = arith.constant 0 : index
    %c1_70 = arith.constant 1 : index
    %c2_71 = arith.constant 2 : index
    %55 = vector.load %arg7[%c0_69, %c1_70, %c2_71] : memref<8x18x11xf32, #tpu.memory_space<vmem>>, vector<8x16x9xf32>
    %c1_72 = arith.constant 1 : index
    %c2_73 = arith.constant 2 : index
    %c0_74 = arith.constant 0 : index
    %c0_75 = arith.constant 0 : index
    %56 = vector.load %arg2[%c1_72, %c2_73, %c0_74, %c0_75] : memref<3x3x8x9xf32, #tpu.memory_space<vmem>>, vector<1x1x8x9xf32>
    %57 = vector.shape_cast %56 : vector<1x1x8x9xf32> to vector<8x9xf32>
    %58 = vector.shape_cast %57 : vector<8x9xf32> to vector<8x1x9xf32>
    %59 = vector.broadcast %58 : vector<8x1x9xf32> to vector<8x16x9xf32>
    %60 = arith.mulf %55, %59 : vector<8x16x9xf32>
    %61 = arith.addf %54, %60 : vector<8x16x9xf32>
    %c0_76 = arith.constant 0 : index
    %c2_77 = arith.constant 2 : index
    %c0_78 = arith.constant 0 : index
    %62 = vector.load %arg7[%c0_76, %c2_77, %c0_78] : memref<8x18x11xf32, #tpu.memory_space<vmem>>, vector<8x16x9xf32>
    %c2_79 = arith.constant 2 : index
    %c0_80 = arith.constant 0 : index
    %c0_81 = arith.constant 0 : index
    %c0_82 = arith.constant 0 : index
    %63 = vector.load %arg2[%c2_79, %c0_80, %c0_81, %c0_82] : memref<3x3x8x9xf32, #tpu.memory_space<vmem>>, vector<1x1x8x9xf32>
    %64 = vector.shape_cast %63 : vector<1x1x8x9xf32> to vector<8x9xf32>
    %65 = vector.shape_cast %64 : vector<8x9xf32> to vector<8x1x9xf32>
    %66 = vector.broadcast %65 : vector<8x1x9xf32> to vector<8x16x9xf32>
    %67 = arith.mulf %62, %66 : vector<8x16x9xf32>
    %68 = arith.addf %61, %67 : vector<8x16x9xf32>
    %c0_83 = arith.constant 0 : index
    %c2_84 = arith.constant 2 : index
    %c1_85 = arith.constant 1 : index
    %69 = vector.load %arg7[%c0_83, %c2_84, %c1_85] : memref<8x18x11xf32, #tpu.memory_space<vmem>>, vector<8x16x9xf32>
    %c2_86 = arith.constant 2 : index
    %c1_87 = arith.constant 1 : index
    %c0_88 = arith.constant 0 : index
    %c0_89 = arith.constant 0 : index
    %70 = vector.load %arg2[%c2_86, %c1_87, %c0_88, %c0_89] : memref<3x3x8x9xf32, #tpu.memory_space<vmem>>, vector<1x1x8x9xf32>
    %71 = vector.shape_cast %70 : vector<1x1x8x9xf32> to vector<8x9xf32>
    %72 = vector.shape_cast %71 : vector<8x9xf32> to vector<8x1x9xf32>
    %73 = vector.broadcast %72 : vector<8x1x9xf32> to vector<8x16x9xf32>
    %74 = arith.mulf %69, %73 : vector<8x16x9xf32>
    %75 = arith.addf %68, %74 : vector<8x16x9xf32>
    %c0_90 = arith.constant 0 : index
    %c2_91 = arith.constant 2 : index
    %c2_92 = arith.constant 2 : index
    %76 = vector.load %arg7[%c0_90, %c2_91, %c2_92] : memref<8x18x11xf32, #tpu.memory_space<vmem>>, vector<8x16x9xf32>
    %c2_93 = arith.constant 2 : index
    %c2_94 = arith.constant 2 : index
    %c0_95 = arith.constant 0 : index
    %c0_96 = arith.constant 0 : index
    %77 = vector.load %arg2[%c2_93, %c2_94, %c0_95, %c0_96] : memref<3x3x8x9xf32, #tpu.memory_space<vmem>>, vector<1x1x8x9xf32>
    %78 = vector.shape_cast %77 : vector<1x1x8x9xf32> to vector<8x9xf32>
    %79 = vector.shape_cast %78 : vector<8x9xf32> to vector<8x1x9xf32>
    %80 = vector.broadcast %79 : vector<8x1x9xf32> to vector<8x16x9xf32>
    %81 = arith.mulf %76, %80 : vector<8x16x9xf32>
    %82 = arith.addf %75, %81 : vector<8x16x9xf32>
    %c0_97 = arith.constant 0 : index
    %c0_98 = arith.constant 0 : index
    %c0_99 = arith.constant 0 : index
    %83 = vector.load %arg3[%c0_97, %c0_98, %c0_99] : memref<8x1x9xf32, #tpu.memory_space<vmem>>, vector<8x1x9xf32>
    %84 = vector.broadcast %83 : vector<8x1x9xf32> to vector<8x16x9xf32>
    %85 = arith.addf %82, %84 : vector<8x16x9xf32>
    %cst_100 = arith.constant 0.000000e+00 : f32
    %86 = vector.broadcast %cst_100 : f32 to vector<8x16x9xf32>
    %87 = arith.maximumf %85, %86 : vector<8x16x9xf32>
    %c0_101 = arith.constant 0 : index
    %c1_102 = arith.constant 1 : index
    %c1_103 = arith.constant 1 : index
    %88 = vector.load %arg8[%c0_101, %c1_102, %c1_103] : memref<8x18x11xf32, #tpu.memory_space<vmem>>, vector<8x16x9xf32>
    tpu.vector_store %arg8[%c0_101, %c1_102, %c1_103], %87 {strides = array<i32>} : memref<8x18x11xf32, #tpu.memory_space<vmem>>, vector<8x16x9xf32>,
    %cst_104 = arith.constant 0.000000e+00 : f32
    %89 = vector.broadcast %cst_104 : f32 to vector<8x16x9xf32>
    %c0_105 = arith.constant 0 : index
    %c0_106 = arith.constant 0 : index
    %c0_107 = arith.constant 0 : index
    %90 = vector.load %arg8[%c0_105, %c0_106, %c0_107] : memref<8x18x11xf32, #tpu.memory_space<vmem>>, vector<8x16x9xf32>
    %c0_108 = arith.constant 0 : index
    %c0_109 = arith.constant 0 : index
    %c0_110 = arith.constant 0 : index
    %c0_111 = arith.constant 0 : index
    %91 = vector.load %arg4[%c0_108, %c0_109, %c0_110, %c0_111] : memref<3x3x8x9xf32, #tpu.memory_space<vmem>>, vector<1x1x8x9xf32>
    %92 = vector.shape_cast %91 : vector<1x1x8x9xf32> to vector<8x9xf32>
    %93 = vector.shape_cast %92 : vector<8x9xf32> to vector<8x1x9xf32>
    %94 = vector.broadcast %93 : vector<8x1x9xf32> to vector<8x16x9xf32>
    %95 = arith.mulf %90, %94 : vector<8x16x9xf32>
    %96 = arith.addf %89, %95 : vector<8x16x9xf32>
    %c0_112 = arith.constant 0 : index
    %c0_113 = arith.constant 0 : index
    %c1_114 = arith.constant 1 : index
    %97 = vector.load %arg8[%c0_112, %c0_113, %c1_114] : memref<8x18x11xf32, #tpu.memory_space<vmem>>, vector<8x16x9xf32>
    %c0_115 = arith.constant 0 : index
    %c1_116 = arith.constant 1 : index
    %c0_117 = arith.constant 0 : index
    %c0_118 = arith.constant 0 : index
    %98 = vector.load %arg4[%c0_115, %c1_116, %c0_117, %c0_118] : memref<3x3x8x9xf32, #tpu.memory_space<vmem>>, vector<1x1x8x9xf32>
    %99 = vector.shape_cast %98 : vector<1x1x8x9xf32> to vector<8x9xf32>
    %100 = vector.shape_cast %99 : vector<8x9xf32> to vector<8x1x9xf32>
    %101 = vector.broadcast %100 : vector<8x1x9xf32> to vector<8x16x9xf32>
    %102 = arith.mulf %97, %101 : vector<8x16x9xf32>
    %103 = arith.addf %96, %102 : vector<8x16x9xf32>
    %c0_119 = arith.constant 0 : index
    %c0_120 = arith.constant 0 : index
    %c2_121 = arith.constant 2 : index
    %104 = vector.load %arg8[%c0_119, %c0_120, %c2_121] : memref<8x18x11xf32, #tpu.memory_space<vmem>>, vector<8x16x9xf32>
    %c0_122 = arith.constant 0 : index
    %c2_123 = arith.constant 2 : index
    %c0_124 = arith.constant 0 : index
    %c0_125 = arith.constant 0 : index
    %105 = vector.load %arg4[%c0_122, %c2_123, %c0_124, %c0_125] : memref<3x3x8x9xf32, #tpu.memory_space<vmem>>, vector<1x1x8x9xf32>
    %106 = vector.shape_cast %105 : vector<1x1x8x9xf32> to vector<8x9xf32>
    %107 = vector.shape_cast %106 : vector<8x9xf32> to vector<8x1x9xf32>
    %108 = vector.broadcast %107 : vector<8x1x9xf32> to vector<8x16x9xf32>
    %109 = arith.mulf %104, %108 : vector<8x16x9xf32>
    %110 = arith.addf %103, %109 : vector<8x16x9xf32>
    %c0_126 = arith.constant 0 : index
    %c1_127 = arith.constant 1 : index
    %c0_128 = arith.constant 0 : index
    %111 = vector.load %arg8[%c0_126, %c1_127, %c0_128] : memref<8x18x11xf32, #tpu.memory_space<vmem>>, vector<8x16x9xf32>
    %c1_129 = arith.constant 1 : index
    %c0_130 = arith.constant 0 : index
    %c0_131 = arith.constant 0 : index
    %c0_132 = arith.constant 0 : index
    %112 = vector.load %arg4[%c1_129, %c0_130, %c0_131, %c0_132] : memref<3x3x8x9xf32, #tpu.memory_space<vmem>>, vector<1x1x8x9xf32>
    %113 = vector.shape_cast %112 : vector<1x1x8x9xf32> to vector<8x9xf32>
    %114 = vector.shape_cast %113 : vector<8x9xf32> to vector<8x1x9xf32>
    %115 = vector.broadcast %114 : vector<8x1x9xf32> to vector<8x16x9xf32>
    %116 = arith.mulf %111, %115 : vector<8x16x9xf32>
    %117 = arith.addf %110, %116 : vector<8x16x9xf32>
    %c0_133 = arith.constant 0 : index
    %c1_134 = arith.constant 1 : index
    %c1_135 = arith.constant 1 : index
    %118 = vector.load %arg8[%c0_133, %c1_134, %c1_135] : memref<8x18x11xf32, #tpu.memory_space<vmem>>, vector<8x16x9xf32>
    %c1_136 = arith.constant 1 : index
    %c1_137 = arith.constant 1 : index
    %c0_138 = arith.constant 0 : index
    %c0_139 = arith.constant 0 : index
    %119 = vector.load %arg4[%c1_136, %c1_137, %c0_138, %c0_139] : memref<3x3x8x9xf32, #tpu.memory_space<vmem>>, vector<1x1x8x9xf32>
    %120 = vector.shape_cast %119 : vector<1x1x8x9xf32> to vector<8x9xf32>
    %121 = vector.shape_cast %120 : vector<8x9xf32> to vector<8x1x9xf32>
    %122 = vector.broadcast %121 : vector<8x1x9xf32> to vector<8x16x9xf32>
    %123 = arith.mulf %118, %122 : vector<8x16x9xf32>
    %124 = arith.addf %117, %123 : vector<8x16x9xf32>
    %c0_140 = arith.constant 0 : index
    %c1_141 = arith.constant 1 : index
    %c2_142 = arith.constant 2 : index
    %125 = vector.load %arg8[%c0_140, %c1_141, %c2_142] : memref<8x18x11xf32, #tpu.memory_space<vmem>>, vector<8x16x9xf32>
    %c1_143 = arith.constant 1 : index
    %c2_144 = arith.constant 2 : index
    %c0_145 = arith.constant 0 : index
    %c0_146 = arith.constant 0 : index
    %126 = vector.load %arg4[%c1_143, %c2_144, %c0_145, %c0_146] : memref<3x3x8x9xf32, #tpu.memory_space<vmem>>, vector<1x1x8x9xf32>
    %127 = vector.shape_cast %126 : vector<1x1x8x9xf32> to vector<8x9xf32>
    %128 = vector.shape_cast %127 : vector<8x9xf32> to vector<8x1x9xf32>
    %129 = vector.broadcast %128 : vector<8x1x9xf32> to vector<8x16x9xf32>
    %130 = arith.mulf %125, %129 : vector<8x16x9xf32>
    %131 = arith.addf %124, %130 : vector<8x16x9xf32>
    %c0_147 = arith.constant 0 : index
    %c2_148 = arith.constant 2 : index
    %c0_149 = arith.constant 0 : index
    %132 = vector.load %arg8[%c0_147, %c2_148, %c0_149] : memref<8x18x11xf32, #tpu.memory_space<vmem>>, vector<8x16x9xf32>
    %c2_150 = arith.constant 2 : index
    %c0_151 = arith.constant 0 : index
    %c0_152 = arith.constant 0 : index
    %c0_153 = arith.constant 0 : index
    %133 = vector.load %arg4[%c2_150, %c0_151, %c0_152, %c0_153] : memref<3x3x8x9xf32, #tpu.memory_space<vmem>>, vector<1x1x8x9xf32>
    %134 = vector.shape_cast %133 : vector<1x1x8x9xf32> to vector<8x9xf32>
    %135 = vector.shape_cast %134 : vector<8x9xf32> to vector<8x1x9xf32>
    %136 = vector.broadcast %135 : vector<8x1x9xf32> to vector<8x16x9xf32>
    %137 = arith.mulf %132, %136 : vector<8x16x9xf32>
    %138 = arith.addf %131, %137 : vector<8x16x9xf32>
    %c0_154 = arith.constant 0 : index
    %c2_155 = arith.constant 2 : index
    %c1_156 = arith.constant 1 : index
    %139 = vector.load %arg8[%c0_154, %c2_155, %c1_156] : memref<8x18x11xf32, #tpu.memory_space<vmem>>, vector<8x16x9xf32>
    %c2_157 = arith.constant 2 : index
    %c1_158 = arith.constant 1 : index
    %c0_159 = arith.constant 0 : index
    %c0_160 = arith.constant 0 : index
    %140 = vector.load %arg4[%c2_157, %c1_158, %c0_159, %c0_160] : memref<3x3x8x9xf32, #tpu.memory_space<vmem>>, vector<1x1x8x9xf32>
    %141 = vector.shape_cast %140 : vector<1x1x8x9xf32> to vector<8x9xf32>
    %142 = vector.shape_cast %141 : vector<8x9xf32> to vector<8x1x9xf32>
    %143 = vector.broadcast %142 : vector<8x1x9xf32> to vector<8x16x9xf32>
    %144 = arith.mulf %139, %143 : vector<8x16x9xf32>
    %145 = arith.addf %138, %144 : vector<8x16x9xf32>
    %c0_161 = arith.constant 0 : index
    %c2_162 = arith.constant 2 : index
    %c2_163 = arith.constant 2 : index
    %146 = vector.load %arg8[%c0_161, %c2_162, %c2_163] : memref<8x18x11xf32, #tpu.memory_space<vmem>>, vector<8x16x9xf32>
    %c2_164 = arith.constant 2 : index
    %c2_165 = arith.constant 2 : index
    %c0_166 = arith.constant 0 : index
    %c0_167 = arith.constant 0 : index
    %147 = vector.load %arg4[%c2_164, %c2_165, %c0_166, %c0_167] : memref<3x3x8x9xf32, #tpu.memory_space<vmem>>, vector<1x1x8x9xf32>
    %148 = vector.shape_cast %147 : vector<1x1x8x9xf32> to vector<8x9xf32>
    %149 = vector.shape_cast %148 : vector<8x9xf32> to vector<8x1x9xf32>
    %150 = vector.broadcast %149 : vector<8x1x9xf32> to vector<8x16x9xf32>
    %151 = arith.mulf %146, %150 : vector<8x16x9xf32>
    %152 = arith.addf %145, %151 : vector<8x16x9xf32>
    %c0_168 = arith.constant 0 : index
    %c0_169 = arith.constant 0 : index
    %c0_170 = arith.constant 0 : index
    %153 = vector.load %arg5[%c0_168, %c0_169, %c0_170] : memref<8x1x9xf32, #tpu.memory_space<vmem>>, vector<8x1x9xf32>
    %154 = vector.broadcast %153 : vector<8x1x9xf32> to vector<8x16x9xf32>
    %155 = arith.addf %152, %154 : vector<8x16x9xf32>
    %c0_171 = arith.constant 0 : index
    %c0_172 = arith.constant 0 : index
    %c0_173 = arith.constant 0 : index
    %c0_174 = arith.constant 0 : index
    %156 = vector.load %arg6[%c0_171, %c0_172, %c0_173, %c0_174] : memref<1x8x16x9xf32, #tpu.memory_space<vmem>>, vector<1x8x16x9xf32>
    %157 = vector.shape_cast %156 : vector<1x8x16x9xf32> to vector<8x16x9xf32>
    %158 = vector.shape_cast %155 : vector<8x16x9xf32> to vector<1x8x16x9xf32>
    tpu.vector_store %arg6[%c0_171, %c0_172, %c0_173, %c0_174], %158 {strides = array<i32>} : memref<1x8x16x9xf32, #tpu.memory_space<vmem>>, vector<1x8x16x9xf32>,
    return
  }
  func.func @transform_0(%arg0: i32) -> (i32, i32, i32, i32) {
    %c0_i32 = arith.constant 0 : i32
    %c0_i32_0 = arith.constant 0 : i32
    %c0_i32_1 = arith.constant 0 : i32
    %c0_i32_2 = arith.constant 0 : i32
    return %arg0, %c0_i32, %c0_i32_0, %c0_i32_1 : i32, i32, i32, i32
  }
  func.func @transform_1(%arg0: i32) -> (i32, i32, i32, i32) {
    %c0_i32 = arith.constant 0 : i32
    %c0_i32_0 = arith.constant 0 : i32
    %c0_i32_1 = arith.constant 0 : i32
    %c0_i32_2 = arith.constant 0 : i32
    %c0_i32_3 = arith.constant 0 : i32
    return %c0_i32, %c0_i32_0, %c0_i32_1, %c0_i32_2 : i32, i32, i32, i32
  }
  func.func @transform_2(%arg0: i32) -> (i32, i32, i32) {
    %c0_i32 = arith.constant 0 : i32
    %c0_i32_0 = arith.constant 0 : i32
    %c0_i32_1 = arith.constant 0 : i32
    %c0_i32_2 = arith.constant 0 : i32
    return %c0_i32, %c0_i32_0, %c0_i32_1 : i32, i32, i32
  }
  func.func @transform_3(%arg0: i32) -> (i32, i32, i32, i32) {
    %c0_i32 = arith.constant 0 : i32
    %c0_i32_0 = arith.constant 0 : i32
    %c0_i32_1 = arith.constant 0 : i32
    %c0_i32_2 = arith.constant 0 : i32
    %c0_i32_3 = arith.constant 0 : i32
    return %c0_i32, %c0_i32_0, %c0_i32_1, %c0_i32_2 : i32, i32, i32, i32
  }
  func.func @transform_4(%arg0: i32) -> (i32, i32, i32) {
    %c0_i32 = arith.constant 0 : i32
    %c0_i32_0 = arith.constant 0 : i32
    %c0_i32_1 = arith.constant 0 : i32
    %c0_i32_2 = arith.constant 0 : i32
    return %c0_i32, %c0_i32_0, %c0_i32_1 : i32, i32, i32
  }
  func.func @transform_5(%arg0: i32) -> (i32, i32, i32, i32) {
    %c0_i32 = arith.constant 0 : i32
    %c0_i32_0 = arith.constant 0 : i32
    %c0_i32_1 = arith.constant 0 : i32
    %c0_i32_2 = arith.constant 0 : i32
    return %arg0, %c0_i32, %c0_i32_0, %c0_i32_1 : i32, i32, i32, i32
  }
}

</mosaic_0001>

<bundles_post_ra>
// kernel: tpu_custom_call.1
= control target key start
LH: loop header
LB: loop body
LE: loop exit
PB: predicated region body
PF: predicated region fallthrough
CT: control target
= control target key end

     0   :  { %s2931_s18 = smov 0   ;;  %s4777_s0 = inlined_call_operand.vmem [shape: f32[2,8,16,9], index: 0, kind: input, shape index: {}]   ;;  %s4778_s1 = inlined_call_operand.vmem [shape: f32[3,3,8,9], index: 1, kind: input, shape index: {}]   ;;  %s4779_s2 = inlined_call_operand.vmem [shape: f32[8,1,9], index: 2, kind: input, shape index: {}]   ;;  %s4780_s3 = inlined_call_operand.vmem [shape: f32[3,3,8,9], index: 3, kind: input, shape index: {}]   ;;  %s4781_s4 = inlined_call_operand.vmem [shape: f32[8,1,9], index: 4, kind: input, shape index: {}]   ;;  %s4782_s5 = inlined_call_operand.vmem [shape: f32[2,8,16,9], index: 5, kind: output, shape index: {}]  }
   0x1 LB: > { %s2817_s19 = sadd.s32 4294967295, %s2894_s18   ;;  %p2821_p0 = scmp.ge.s32.totalorder %s2894_s18, 1  ;;  %s2894_s18 = sphi %s2931_s18, %s15_s18  }
   0x2   : > { %p187_p1 = scmp.lt.s32.totalorder %s2894_s18, 3 }
   0x4   : > { %p188_p2 = pnand %p2821_p0, %p187_p1 }
   0x6   : > { %191 = sbr.rel (%p188_p2) target bundleno = 2060 (0x80c), region = 40 }
   0xb   : > { %p215_p3 = scmp.lt.s32.totalorder %s2817_s19, 1  ;;  %s2896_s24 = smov 1   ;;  %v2826_v14 = vld [vmem:[%s4778_s1 + $0x8] sm:$0xff]  ;;  %vm225_vm0 = vcmask 81920   ;;  %v2897_v29 = vmov 0.0   ;;  %vm242_vm1 = vcmask 7168  }
   0xc   : > { %v531_v16 = vrot.slane %v2826_v14, 1  ;;  %v538_v18 = vperm.slane %v2826_v14, 0  ;;  %v534_v20 = vrot.slane %v2826_v14, 4  ;;  %v533_v21 = vrot.slane %v2826_v14, 3  ;;  %228 = vst.msk [vmem:[#allocation2 + $0x30] sm:$0x1] %vm225_vm0, %v2897_v29 }
   0xd   : > { %s4881_s19 = smov (!%p215_p3, %s2817_s19), 1  ;;  %v532_v22 = vrot.slane %v2826_v14, 2  ;;  %v537_v26 = vrot.slane %v2826_v14, 7  ;;  %v536_v27 = vrot.slane %v2826_v14, 6  ;;  %v535_v28 = vrot.slane %v2826_v14, 5  ;;  %250 = vst.msk [vmem:[#allocation2 + $0x30] sm:$0xff] %vm242_vm1, %v2897_v29 }
   0xe   : > { %s2844_s20 = sshll.u32 %s4881_s19, 7  ;;  %v539_v17 = vperm.slane %v531_v16, 0  ;;  %v542_v23 = vperm.slane %v534_v20, 0  ;;  %v541_v24 = vperm.slane %v533_v21, 0  ;;  %251 = vst.msk [vmem:[#allocation2 + $0x38] sm:$0xff] %vm242_vm1, %v2897_v29  ;;  %vm268_vm2 = vcmask 89168  }
   0xf   : > { %s2947_s23 = scalar_lea.vmem %s4777_s0, %s2844_s20  ;;  %v540_v25 = vperm.slane %v532_v22, 0  ;;  %v545_v30 = vperm.slane %v537_v26, 0  ;;  %v544_v31 = vperm.slane %v536_v27, 0  ;;  %276 = vst.msk [vmem:[#allocation2 + $0x30] sm:$0xff] %vm268_vm2, %v2897_v29  ;;  %v543_v32 = vperm.slane %v535_v28, 0  ;;  %v2827_v33 = vld [vmem:[%s4778_s1 + $0x10] sm:$0xff] }
  0x10   : > { %v362_v0 = vld [vmem:[%s2947_s23 + $0x20] sm:$0xff]  ;;  %v360_v1 = vld [vmem:[%s2947_s23 + $0x10] sm:$0xff]  ;;  %v363_v3 = vld [vmem:[%s2947_s23 + $0x28] sm:$0xff]  ;;  %277 = vst.msk [vmem:[#allocation2 + $0x38] sm:$0xff] %vm268_vm2, %v2897_v29  ;;  %v669_v34 = vrot.slane %v2827_v33, 1  ;;  %v670_v35 = vrot.slane %v2827_v33, 2 }
  0x11   : > { %v358_v2 = vld [vmem:[%s2947_s23] sm:$0xff]  ;;  %398 = vrot.lane.b32.xlu2 %v362_v0, %s2896_s24  ;;  %394 = vrot.lane.b32.xlu1 %v360_v1, %s2896_s24  ;;  %v361_v4 = vld [vmem:[%s2947_s23 + $0x18] sm:$0xff]  ;;  %226 = vst.msk [vmem:[#allocation2] sm:$0x1] %vm225_vm0, %v2897_v29  ;;  %v676_v37 = vperm.slane %v2827_v33, 0  ;;  %s2898_s29 = smov 2  }
  0x12   : > { %390 = vrot.lane.b32.xlu0 %v358_v2, %s2896_s24  ;;  %v359_v5 = vld [vmem:[%s2947_s23 + $0x8] sm:$0xff]  ;;  %v366_v6 = vld [vmem:[%s2947_s23 + $0x40] sm:$0xff]  ;;  %v365_v7 = vld [vmem:[%s2947_s23 + $0x38] sm:$0xff]  ;;  %227 = vst.msk [vmem:[#allocation2 + $0x18] sm:$0x1] %vm225_vm0, %v2897_v29  ;;  %v677_v36 = vperm.slane %v669_v34, 0 }
  0x13   : > { %v364_v8 = vld [vmem:[%s2947_s23 + $0x30] sm:$0xff]  ;;  %v369_v9 = vld [vmem:[%s2947_s23 + $0x58] sm:$0xff]  ;;  %v367_v11 = vld [vmem:[%s2947_s23 + $0x48] sm:$0xff]  ;;  %229 = vst.msk [vmem:[#allocation2 + $0x48] sm:$0x1] %vm225_vm0, %v2897_v29  ;;  %v678_v38 = vperm.slane %v670_v35, 0 }
  0x14   : > { %v368_v10 = vld [vmem:[%s2947_s23 + $0x50] sm:$0xff]  ;;  %v371_v13 = vld [vmem:[%s2947_s23 + $0x68] sm:$0xff]  ;;  %v370_v15 = vld [vmem:[%s2947_s23 + $0x60] sm:$0xff]  ;;  %230 = vst.msk [vmem:[#allocation2 + $0x60] sm:$0x1] %vm225_vm0, %v2897_v29  ;;  %v672_v39 = vrot.slane %v2827_v33, 4 }
  0x15   : > { %v372_v12 = vld [vmem:[%s2947_s23 + $0x70] sm:$0xff]  ;;  %v373_v19 = vld [vmem:[%s2947_s23 + $0x78] sm:$0xff]  ;;  %231 = vst.msk [vmem:[#allocation2 + $0x78] sm:$0x1] %vm225_vm0, %v2897_v29  ;;  %v671_v40 = vrot.slane %v2827_v33, 3  ;;  %v673_v41 = vrot.slane %v2827_v33, 5 }
  0x16   : > { %232 = vst.msk [vmem:[#allocation2 + $0x90] sm:$0x1] %vm225_vm0, %v2897_v29  ;;  %v680_v42 = vperm.slane %v672_v39, 0  ;;  %v675_v45 = vrot.slane %v2827_v33, 7  ;;  %v674_v46 = vrot.slane %v2827_v33, 6  ;;  %vm438_vm3 = vcmask 80904  }
  0x17   : > { %233 = vst.msk [vmem:[#allocation2 + $0xa8] sm:$0x1] %vm225_vm0, %v2897_v29  ;;  %v679_v43 = vperm.slane %v671_v40, 0  ;;  %v681_v44 = vperm.slane %v673_v41, 0  ;;  %vm245_vm4 = vcmask 1024   ;;  %vm271_vm5 = vcmask 83024  }
  0x18   : > { %234 = vst.msk [vmem:[#allocation2 + $0x11] sm:$0x1] %vm225_vm0, %v2897_v29  ;;  %v683_v47 = vperm.slane %v675_v45, 0  ;;  %v682_v48 = vperm.slane %v674_v46, 0  ;;  %v471_v1 = vld [vmem:[%s4778_s1] sm:$0xff]  ;;  %s2899_s7 = smov 127  }
  0x19   : > { %400 = vrot.lane.b32.xlu2 %v363_v3, %s2896_s24  ;;  %396 = vrot.lane.b32.xlu1 %v361_v4, %s2896_s24  ;;  %235 = vst.msk [vmem:[#allocation2 + $0x29] sm:$0x1] %vm225_vm0, %v2897_v29  ;;  %v475_v3 = vrot.slane %v471_v1, 3  ;;  %s2900_s8 = smov 126   ;;  %vm2745_vm6 = vcmask 72704  }
  0x1a   : > { %392 = vrot.lane.b32.xlu0 %v359_v5, %s2896_s24  ;;  %236 = vst.msk [vmem:[#allocation2 + $0x41] sm:$0x1] %vm225_vm0, %v2897_v29 }
  0x1b   : > { %237 = vst.msk [vmem:[#allocation2 + $0x59] sm:$0x1] %vm225_vm0, %v2897_v29 }
  0x1c   : > { %238 = vst.msk [vmem:[#allocation2 + $0x71] sm:$0x1] %vm225_vm0, %v2897_v29 }
  0x1d   : > { %239 = vst.msk [vmem:[#allocation2 + $0x89] sm:$0x1] %vm225_vm0, %v2897_v29 }
  0x1e   : > { %240 = vst.msk [vmem:[#allocation2 + $0xa1] sm:$0x1] %vm225_vm0, %v2897_v29 }
  0x1f   : > { %241 = vst.msk [vmem:[#allocation2 + $0xb9] sm:$0x1] %vm225_vm0, %v2897_v29 }
  0x20   : > { %244 = vst.msk [vmem:[#allocation2 + $0x8] sm:$0xff] %vm242_vm1, %v2897_v29 }
  0x21   : > { %406 = vrot.lane.b32.xlu2 %v366_v6, %s2896_s24  ;;  %404 = vrot.lane.b32.xlu1 %v365_v7, %s2896_s24  ;;  %248 = vst.msk [vmem:[#allocation2 + $0x20] sm:$0xff] %vm242_vm1, %v2897_v29 }
  0x22   : > { %402 = vrot.lane.b32.xlu0 %v364_v8, %s2896_s24  ;;  %254 = vst.msk [vmem:[#allocation2 + $0x50] sm:$0xff] %vm242_vm1, %v2897_v29 }
  0x23   : > { %257 = vst.msk [vmem:[#allocation2 + $0x68] sm:$0xff] %vm242_vm1, %v2897_v29 }
  0x24   : > { %260 = vst.msk [vmem:[#allocation2 + $0x80] sm:$0xff] %vm242_vm1, %v2897_v29 }
  0x25   : > { %263 = vst.msk [vmem:[#allocation2 + $0x98] sm:$0xff] %vm242_vm1, %v2897_v29 }
  0x26   : > { %266 = vst.msk [vmem:[#allocation2 + $0xb0] sm:$0xff] %vm242_vm1, %v2897_v29 }
  0x27   : > { %294 = vst.msk [vmem:[#allocation3] sm:$0x1] %vm225_vm0, %v2897_v29 }
  0x28   : > { %295 = vst.msk [vmem:[#allocation3 + $0x18] sm:$0x1] %vm225_vm0, %v2897_v29 }
  0x29   : > { %412 = vrot.lane.b32.xlu2 %v369_v9, %s2896_s24  ;;  %410 = vrot.lane.b32.xlu1 %v368_v10, %s2896_s24  ;;  %296 = vst.msk [vmem:[#allocation3 + $0x30] sm:$0x1] %vm225_vm0, %v2897_v29  ;;  %v483_v9 = vperm.slane %v475_v3, 0  ;;  %v478_v10 = vrot.slane %v471_v1, 6 }
  0x2a   : > { %408 = vrot.lane.b32.xlu0 %v367_v11, %s2896_s24  ;;  %297 = vst.msk [vmem:[#allocation3 + $0x48] sm:$0x1] %vm225_vm0, %v2897_v29 }
  0x2b   : > { %298 = vst.msk [vmem:[#allocation3 + $0x60] sm:$0x1] %vm225_vm0, %v2897_v29 }
  0x2c   : > { %299 = vst.msk [vmem:[#allocation3 + $0x78] sm:$0x1] %vm225_vm0, %v2897_v29 }
  0x2d   : > { %300 = vst.msk [vmem:[#allocation3 + $0x90] sm:$0x1] %vm225_vm0, %v2897_v29 }
  0x2e   : > { %301 = vst.msk [vmem:[#allocation3 + $0xa8] sm:$0x1] %vm225_vm0, %v2897_v29 }
  0x2f   : > { %302 = vst.msk [vmem:[#allocation3 + $0x11] sm:$0x1] %vm225_vm0, %v2897_v29 }
  0x30   : > { %303 = vst.msk [vmem:[#allocation3 + $0x29] sm:$0x1] %vm225_vm0, %v2897_v29 }
  0x31   : > { %418 = vrot.lane.b32.xlu2 %v372_v12, %s2896_s24  ;;  %416 = vrot.lane.b32.xlu1 %v371_v13, %s2896_s24  ;;  %304 = vst.msk [vmem:[#allocation3 + $0x41] sm:$0x1] %vm225_vm0, %v2897_v29 }
  0x32   : > { %414 = vrot.lane.b32.xlu0 %v370_v15, %s2896_s24  ;;  %305 = vst.msk [vmem:[#allocation3 + $0x59] sm:$0x1] %vm225_vm0, %v2897_v29 }
  0x33   : > { %306 = vst.msk [vmem:[#allocation3 + $0x71] sm:$0x1] %vm225_vm0, %v2897_v29 }
  0x34   : > { %307 = vst.msk [vmem:[#allocation3 + $0x89] sm:$0x1] %vm225_vm0, %v2897_v29 }
  0x35   : > { %308 = vst.msk [vmem:[#allocation3 + $0xa1] sm:$0x1] %vm225_vm0, %v2897_v29 }
  0x36   : > { %309 = vst.msk [vmem:[#allocation3 + $0xb9] sm:$0x1] %vm225_vm0, %v2897_v29 }
  0x37   : > { %311 = vst.msk [vmem:[#allocation3 + $0x8] sm:$0xff] %vm242_vm1, %v2897_v29 }
  0x38   : > { %314 = vst.msk [vmem:[#allocation3 + $0x20] sm:$0xff] %vm242_vm1, %v2897_v29 }
  0x39   : > { %548 = vrot.lane.b32.xlu2 %v539_v17, %s2896_s24  ;;  %546 = vrot.lane.b32.xlu1 %v538_v18, %s2896_s24  ;;  %317 = vst.msk [vmem:[#allocation3 + $0x38] sm:$0xff] %vm242_vm1, %v2897_v29  ;;  %v486_v17 = vperm.slane %v478_v10, 0 }
  0x3a   : > { %420 = vrot.lane.b32.xlu0 %v373_v19, %s2896_s24  ;;  %320 = vst.msk [vmem:[#allocation3 + $0x50] sm:$0xff] %vm242_vm1, %v2897_v29 }
  0x3b   : > { %323 = vst.msk [vmem:[#allocation3 + $0x68] sm:$0xff] %vm242_vm1, %v2897_v29 }
  0x3c   : > { %326 = vst.msk [vmem:[#allocation3 + $0x80] sm:$0xff] %vm242_vm1, %v2897_v29 }
  0x3d   : > { %329 = vst.msk [vmem:[#allocation3 + $0x98] sm:$0xff] %vm242_vm1, %v2897_v29 }
  0x3e   : > { %332 = vst.msk [vmem:[#allocation3 + $0xb0] sm:$0xff] %vm242_vm1, %v2897_v29 }
  0x3f   : > { %252 = vst.msk [vmem:[#allocation2 + $0x40] sm:$0x3] %vm245_vm4, %v2897_v29 }
  0x40   : > { %278 = vst.msk [vmem:[#allocation2 + $0x40] sm:$0x3] %vm271_vm5, %v2897_v29 }
  0x41   : > { %554 = vrot.lane.b32.xlu2 %v542_v23, %s2896_s24  ;;  %552 = vrot.lane.b32.xlu1 %v541_v24, %s2896_s24  ;;  %243 = vst.msk [vmem:[#allocation2] sm:$0xff] %vm242_vm1, %v2897_v29 }
  0x42   : > { %550 = vrot.lane.b32.xlu0 %v540_v25, %s2896_s24  ;;  %246 = vst.msk [vmem:[#allocation2 + $0x10] sm:$0x3] %vm245_vm4, %v2897_v29 }
  0x43   : > { %247 = vst.msk [vmem:[#allocation2 + $0x18] sm:$0xff] %vm242_vm1, %v2897_v29 }
  0x44   : > { %249 = vst.msk [vmem:[#allocation2 + $0x28] sm:$0x3] %vm245_vm4, %v2897_v29 }
  0x45   : > { %253 = vst.msk [vmem:[#allocation2 + $0x48] sm:$0xff] %vm242_vm1, %v2897_v29 }
  0x46   : > { %255 = vst.msk [vmem:[#allocation2 + $0x58] sm:$0x3] %vm245_vm4, %v2897_v29 }
  0x47   : > { %256 = vst.msk [vmem:[#allocation2 + $0x60] sm:$0xff] %vm242_vm1, %v2897_v29 }
  0x48   : > { %258 = vst.msk [vmem:[#allocation2 + $0x70] sm:$0x3] %vm245_vm4, %v2897_v29 }
  0x49   : > { %560 = vrot.lane.b32.xlu2 %v545_v30, %s2896_s24  ;;  %558 = vrot.lane.b32.xlu1 %v544_v31, %s2896_s24  ;;  %259 = vst.msk [vmem:[#allocation2 + $0x78] sm:$0xff] %vm242_vm1, %v2897_v29 }
  0x4a   : > { %556 = vrot.lane.b32.xlu0 %v543_v32, %s2896_s24  ;;  %261 = vst.msk [vmem:[#allocation2 + $0x88] sm:$0x3] %vm245_vm4, %v2897_v29 }
  0x4b   : > { %262 = vst.msk [vmem:[#allocation2 + $0x90] sm:$0xff] %vm242_vm1, %v2897_v29 }
  0x4c   : > { %264 = vst.msk [vmem:[#allocation2 + $0xa0] sm:$0x3] %vm245_vm4, %v2897_v29 }
  0x4d   : > { %265 = vst.msk [vmem:[#allocation2 + $0xa8] sm:$0xff] %vm242_vm1, %v2897_v29 }
  0x4e   : > { %267 = vst.msk [vmem:[#allocation2 + $0xb8] sm:$0x3] %vm245_vm4, %v2897_v29 }
  0x4f   : > { %270 = vst.msk [vmem:[#allocation2 + $0x8] sm:$0xff] %vm268_vm2, %v2897_v29 }
  0x50   : > { %274 = vst.msk [vmem:[#allocation2 + $0x20] sm:$0xff] %vm268_vm2, %v2897_v29 }
  0x51   : > { %686 = vrot.lane.b32.xlu2 %v677_v36, %s2898_s29  ;;  %684 = vrot.lane.b32.xlu1 %v676_v37, %s2898_s29  ;;  %280 = vst.msk [vmem:[#allocation2 + $0x50] sm:$0xff] %vm268_vm2, %v2897_v29 }
  0x52   : > { %688 = vrot.lane.b32.xlu0 %v678_v38, %s2898_s29  ;;  %283 = vst.msk [vmem:[#allocation2 + $0x68] sm:$0xff] %vm268_vm2, %v2897_v29 }
  0x53   : > { %286 = vst.msk [vmem:[#allocation2 + $0x80] sm:$0xff] %vm268_vm2, %v2897_v29 }
  0x54   : > { %289 = vst.msk [vmem:[#allocation2 + $0x98] sm:$0xff] %vm268_vm2, %v2897_v29 }
  0x55   : > { %292 = vst.msk [vmem:[#allocation2 + $0xb0] sm:$0xff] %vm268_vm2, %v2897_v29 }
  0x56   : > { %310 = vst.msk [vmem:[#allocation3] sm:$0xff] %vm242_vm1, %v2897_v29 }
  0x57   : > { %312 = vst.msk [vmem:[#allocation3 + $0x10] sm:$0x3] %vm245_vm4, %v2897_v29 }
  0x58   : > { %313 = vst.msk [vmem:[#allocation3 + $0x18] sm:$0xff] %vm242_vm1, %v2897_v29 }
  0x59   : > { %692 = vrot.lane.b32.xlu2 %v680_v42, %s2898_s29  ;;  %690 = vrot.lane.b32.xlu1 %v679_v43, %s2898_s29  ;;  %315 = vst.msk [vmem:[#allocation3 + $0x28] sm:$0x3] %vm245_vm4, %v2897_v29 }
  0x5a   : > { %694 = vrot.lane.b32.xlu0 %v681_v44, %s2898_s29  ;;  %316 = vst.msk [vmem:[#allocation3 + $0x30] sm:$0xff] %vm242_vm1, %v2897_v29 }
  0x5b   : > { %318 = vst.msk [vmem:[#allocation3 + $0x40] sm:$0x3] %vm245_vm4, %v2897_v29 }
  0x5c   : > { %319 = vst.msk [vmem:[#allocation3 + $0x48] sm:$0xff] %vm242_vm1, %v2897_v29 }
  0x5d   : > { %321 = vst.msk [vmem:[#allocation3 + $0x58] sm:$0x3] %vm245_vm4, %v2897_v29 }
  0x5e   : > { %322 = vst.msk [vmem:[#allocation3 + $0x60] sm:$0xff] %vm242_vm1, %v2897_v29 }
  0x5f   : > { %324 = vst.msk [vmem:[#allocation3 + $0x70] sm:$0x3] %vm245_vm4, %v2897_v29 }
  0x60   : > { %325 = vst.msk [vmem:[#allocation3 + $0x78] sm:$0xff] %vm242_vm1, %v2897_v29 }
  0x61   : > { %698 = vrot.lane.b32.xlu2 %v683_v47, %s2898_s29  ;;  %696 = vrot.lane.b32.xlu1 %v682_v48, %s2898_s29  ;;  %327 = vst.msk [vmem:[#allocation3 + $0x88] sm:$0x3] %vm245_vm4, %v2897_v29 }
  0x62   : > { %328 = vst.msk [vmem:[#allocation3 + $0x90] sm:$0xff] %vm242_vm1, %v2897_v29 }
  0x63   : > { %330 = vst.msk [vmem:[#allocation3 + $0xa0] sm:$0x3] %vm245_vm4, %v2897_v29 }
  0x64   : > { %331 = vst.msk [vmem:[#allocation3 + $0xa8] sm:$0xff] %vm242_vm1, %v2897_v29 }
  0x65   : > { %333 = vst.msk [vmem:[#allocation3 + $0xb8] sm:$0x3] %vm245_vm4, %v2897_v29 }
  0x66   : > { %335 = vst.msk [vmem:[#allocation3 + $0x8] sm:$0xff] %vm268_vm2, %v2897_v29 }
  0x67   : > { %338 = vst.msk [vmem:[#allocation3 + $0x20] sm:$0xff] %vm268_vm2, %v2897_v29 }
  0x68   : > { %341 = vst.msk [vmem:[#allocation3 + $0x38] sm:$0xff] %vm268_vm2, %v2897_v29 }
  0x69   : > { %344 = vst.msk [vmem:[#allocation3 + $0x50] sm:$0xff] %vm268_vm2, %v2897_v29 }
  0x6a   : > { %347 = vst.msk [vmem:[#allocation3 + $0x68] sm:$0xff] %vm268_vm2, %v2897_v29 }
  0x6b   : > { %v399_v49 = vpop.permute.xlu2 %398  ;;  %350 = vst.msk [vmem:[#allocation3 + $0x80] sm:$0xff] %vm268_vm2, %v2897_v29 }
  0x6c   : > { %443 = vst.msk [vmem:[#allocation2 + $0x31] sm:$0xff] %vm438_vm3, %v399_v49 }
  0x6d   : > { %353 = vst.msk [vmem:[#allocation3 + $0x98] sm:$0xff] %vm268_vm2, %v2897_v29 }
  0x6e   : > { %356 = vst.msk [vmem:[#allocation3 + $0xb0] sm:$0xff] %vm268_vm2, %v2897_v29 }
  0x6f   : > { %282 = vst.msk [vmem:[#allocation2 + $0x60] sm:$0xff] %vm268_vm2, %v2897_v29 }
  0x70   : > { %269 = vst.msk [vmem:[#allocation2] sm:$0xff] %vm268_vm2, %v2897_v29 }
  0x71   : > { %272 = vst.msk [vmem:[#allocation2 + $0x10] sm:$0x3] %vm271_vm5, %v2897_v29 }
  0x72   : > { %273 = vst.msk [vmem:[#allocation2 + $0x18] sm:$0xff] %vm268_vm2, %v2897_v29 }
  0x73   : > { %v401_v50 = vpop.permute.xlu2 %400  ;;  %275 = vst.msk [vmem:[#allocation2 + $0x28] sm:$0x3] %vm271_vm5, %v2897_v29  ;;  %v459_v23 = vld [vmem:[#allocation2 + $0x30] sm:$0xff] }
  0x74   : > { %444 = vst.msk [vmem:[#allocation2 + $0x39] sm:$0xff] %vm438_vm3, %v401_v50 }
  0x75   : > { %279 = vst.msk [vmem:[#allocation2 + $0x48] sm:$0xff] %vm268_vm2, %v2897_v29 }
  0x76   : > { %281 = vst.msk [vmem:[#allocation2 + $0x58] sm:$0x3] %vm271_vm5, %v2897_v29 }
  0x77   : > { %284 = vst.msk [vmem:[#allocation2 + $0x70] sm:$0x3] %vm271_vm5, %v2897_v29 }
  0x78   : > { %285 = vst.msk [vmem:[#allocation2 + $0x78] sm:$0xff] %vm268_vm2, %v2897_v29 }
  0x79   : > { %287 = vst.msk [vmem:[#allocation2 + $0x88] sm:$0x3] %vm271_vm5, %v2897_v29 }
  0x7a   : > { %288 = vst.msk [vmem:[#allocation2 + $0x90] sm:$0xff] %vm268_vm2, %v2897_v29 }
  0x7b   : > { %v407_v53 = vpop.permute.xlu2 %406  ;;  %290 = vst.msk [vmem:[#allocation2 + $0xa0] sm:$0x3] %vm271_vm5, %v2897_v29  ;;  %v460_v18 = vld [vmem:[#allocation2 + $0x38] sm:$0xff] }
  0x7c   : > { %447 = vst.msk [vmem:[#allocation2 + $0x61] sm:$0xff] %vm438_vm3, %v407_v53 }
  0x7d   : > { %291 = vst.msk [vmem:[#allocation2 + $0xa8] sm:$0xff] %vm268_vm2, %v2897_v29 }
  0x7e   : > { %293 = vst.msk [vmem:[#allocation2 + $0xb8] sm:$0x3] %vm271_vm5, %v2897_v29 }
  0x7f   : > { %334 = vst.msk [vmem:[#allocation3] sm:$0xff] %vm268_vm2, %v2897_v29 }
  0x80   : > { %336 = vst.msk [vmem:[#allocation3 + $0x10] sm:$0x3] %vm271_vm5, %v2897_v29 }
  0x81   : > { %337 = vst.msk [vmem:[#allocation3 + $0x18] sm:$0xff] %vm268_vm2, %v2897_v29 }
  0x82   : > { %339 = vst.msk [vmem:[#allocation3 + $0x28] sm:$0x3] %vm271_vm5, %v2897_v29 }
  0x83   : > { %v395_v51 = vpop.permute.xlu1 %394  ;;  %v413_v58 = vpop.permute.xlu2 %412  ;;  %340 = vst.msk [vmem:[#allocation3 + $0x30] sm:$0xff] %vm268_vm2, %v2897_v29 }
  0x84   : > { %v391_v52 = vpop.permute.xlu0 %390  ;;  %342 = vst.msk [vmem:[#allocation3 + $0x40] sm:$0x3] %vm271_vm5, %v2897_v29 }
  0x85   : > { %343 = vst.msk [vmem:[#allocation3 + $0x48] sm:$0xff] %vm268_vm2, %v2897_v29 }
  0x86   : > { %345 = vst.msk [vmem:[#allocation3 + $0x58] sm:$0x3] %vm271_vm5, %v2897_v29 }
  0x87   : > { %346 = vst.msk [vmem:[#allocation3 + $0x60] sm:$0xff] %vm268_vm2, %v2897_v29 }
  0x88   : > { %348 = vst.msk [vmem:[#allocation3 + $0x70] sm:$0x3] %vm271_vm5, %v2897_v29 }
  0x89   : > { %349 = vst.msk [vmem:[#allocation3 + $0x78] sm:$0xff] %vm268_vm2, %v2897_v29 }
  0x8a   : > { %351 = vst.msk [vmem:[#allocation3 + $0x88] sm:$0x3] %vm271_vm5, %v2897_v29 }
  0x8b   : > { %v397_v54 = vpop.permute.xlu1 %396  ;;  %352 = vst.msk [vmem:[#allocation3 + $0x90] sm:$0xff] %vm268_vm2, %v2897_v29  ;;  %v419_v61 = vpop.permute.xlu2 %418 }
  0x8c   : > { %v393_v55 = vpop.permute.xlu0 %392  ;;  %354 = vst.msk [vmem:[#allocation3 + $0xa0] sm:$0x3] %vm271_vm5, %v2897_v29 }
  0x8d   : > { %355 = vst.msk [vmem:[#allocation3 + $0xa8] sm:$0xff] %vm268_vm2, %v2897_v29 }
  0x8e   : > { %357 = vst.msk [vmem:[#allocation3 + $0xb8] sm:$0x3] %vm271_vm5, %v2897_v29  ;;  %v463_v29 = vld [vmem:[#allocation2 + $0x60] sm:$0xff] }
  0x8f   : > { %450 = vst.msk [vmem:[#allocation2 + $0x81] sm:$0xff] %vm438_vm3, %v413_v58 }
  0x90   : > { %441 = vst.msk [vmem:[#allocation2 + $0x19] sm:$0xff] %vm438_vm3, %v395_v51 }
  0x91   : > { %439 = vst.msk [vmem:[#allocation2 + $0x1] sm:$0xff] %vm438_vm3, %v391_v52 }
  0x92   : > { %453 = vst.msk [vmem:[#allocation2 + $0xa9] sm:$0xff] %vm438_vm3, %v419_v61 }
  0x93   : > { %v405_v56 = vpop.permute.xlu1 %404  ;;  %442 = vst.msk [vmem:[#allocation2 + $0x21] sm:$0xff] %vm438_vm3, %v397_v54  ;;  %v549_v0 = vpop.permute.xlu2 %548 }
  0x94   : > { %v403_v57 = vpop.permute.xlu0 %402  ;;  %440 = vst.msk [vmem:[#allocation2 + $0x9] sm:$0xff] %vm438_vm3, %v393_v55 }
  0x95   : > { %446 = vst.msk [vmem:[#allocation2 + $0x51] sm:$0xff] %vm438_vm3, %v405_v56 }
  0x96   : > { %445 = vst.msk [vmem:[#allocation2 + $0x49] sm:$0xff] %vm438_vm3, %v403_v57 }
  0x97   : > { %v3273_v4 = vld [vmem:[#allocation2 + $0x18] sm:$0xff] }
  0x98   : > { %v572_v6 = vmul.f32 %v549_v0, %v3273_v4  ;;  %v3278_v7 = vld [vmem:[#allocation2] sm:$0xff] }
  0x99   : > { %v469_v43 = vld [vmem:[#allocation2 + $0xa8] sm:$0xff] }
  0x9a   : > { %606 = vrot.lane.b32.xlu2 %v572_v6, %s2899_s7  ;;  %v3290_v15 = vld [vmem:[#allocation2 + $0x20] sm:$0xff] }
  0x9b   : > { %v411_v59 = vpop.permute.xlu1 %410  ;;  %v456_v11 = vld [vmem:[#allocation2 + $0x8] sm:$0xff]  ;;  %v573_v22 = vmul.f32 %v549_v0, %v3290_v15  ;;  %v555_v31 = vpop.permute.xlu2 %554 }
  0x9c   : > { %v409_v60 = vpop.permute.xlu0 %408  ;;  %449 = vst.msk [vmem:[#allocation2 + $0x79] sm:$0xff] %vm438_vm3, %v411_v59  ;;  %v578_v32 = vmul.f32 %v555_v31, %v463_v29 }
  0x9d   : > { %448 = vst.msk [vmem:[#allocation2 + $0x69] sm:$0xff] %vm438_vm3, %v409_v60  ;;  %v3286_v13 = vld [vmem:[#allocation2 + $0x48] sm:$0xff]  ;;  %v3288_v14 = vld [vmem:[#allocation2 + $0x50] sm:$0xff] }
  0x9e   : > { %v3294_v16 = vmul.f32 %v483_v9, %v3288_v14  ;;  %v3297_v20 = vmul.f32 %v483_v9, %v3286_v13 }
  0xa3   : > { %v417_v62 = vpop.permute.xlu1 %416  ;;  %v466_v37 = vld [vmem:[#allocation2 + $0x80] sm:$0xff]  ;;  %v561_v40 = vpop.permute.xlu2 %560  ;;  %v465_v41 = vld [vmem:[#allocation2 + $0x78] sm:$0xff] }
  0xa4   : > { %v415_v63 = vpop.permute.xlu0 %414  ;;  %452 = vst.msk [vmem:[#allocation2 + $0x99] sm:$0xff] %vm438_vm3, %v417_v62  ;;  %v464_v36 = vld [vmem:[#allocation2 + $0x68] sm:$0xff]  ;;  %v584_v45 = vmul.f32 %v561_v40, %v469_v43 }
  0xa5   : > { %451 = vst.msk [vmem:[#allocation2 + $0x91] sm:$0xff] %vm438_vm3, %v415_v63  ;;  %v579_v39 = vmul.f32 %v555_v31, %v464_v36 }
  0xab   : > { %v547_v2 = vpop.permute.xlu1 %546  ;;  %v687_v48 = vpop.permute.xlu2 %686 }
  0xac   : > { %v421_v5 = vpop.permute.xlu0 %420  ;;  %v570_v8 = vmul.f32 %v547_v2, %v3278_v7  ;;  %v571_v12 = vmul.f32 %v547_v2, %v456_v11  ;;  %v3300_v24 = vld [vmem:[#allocation2 + $0x90] sm:$0xff]  ;;  %v3302_v25 = vld [vmem:[#allocation2 + $0x98] sm:$0xff]  ;;  %v710_v50 = vmul.f32 %v687_v48, %v3273_v4  ;;  %v711_v60 = vmul.f32 %v687_v48, %v3290_v15  ;;  %v2829_v4 = vld [vmem:[%s4778_s1 + $0x20] sm:$0xff] }
  0xad   : > { %454 = vst.msk [vmem:[#allocation2 + $0xb1] sm:$0xff] %vm438_vm3, %v421_v5  ;;  %v3306_v27 = vmul.f32 %v486_v17, %v3302_v25  ;;  %v3309_v28 = vmul.f32 %v486_v17, %v3300_v24  ;;  %v883_v15 = vrot.slane %v2829_v4, 3 }
  0xae   : > { %602 = vrot.lane.b32.xlu0 %v570_v8, %s2899_s7  ;;  %604 = vrot.lane.b32.xlu1 %v571_v12, %s2899_s7  ;;  %v881_v8 = vrot.slane %v2829_v4, 1  ;;  %v888_v12 = vperm.slane %v2829_v4, 0 }
  0xb0   : > { %v889_v10 = vperm.slane %v881_v8, 0 }
  0xb3   : > { %v553_v30 = vpop.permute.xlu1 %552  ;;  %v693_v58 = vpop.permute.xlu2 %692 }
  0xb4   : > { %v551_v19 = vpop.permute.xlu0 %550  ;;  %v576_v33 = vmul.f32 %v553_v30, %v3286_v13  ;;  %v577_v34 = vmul.f32 %v553_v30, %v3288_v14  ;;  %v470_v49 = vld [vmem:[#allocation2 + $0xb0] sm:$0xff]  ;;  %v716_v59 = vmul.f32 %v693_v58, %v463_v29  ;;  %v717_v6 = vmul.f32 %v693_v58, %v464_v36 }
  0xb5   : > { %v575_v21 = vmul.f32 %v551_v19, %v460_v18  ;;  %v574_v26 = vmul.f32 %v551_v19, %v459_v23  ;;  %v585_v52 = vmul.f32 %v561_v40, %v470_v49  ;;  %v887_v19 = vrot.slane %v2829_v4, 7 }
  0xb6   : > { %608 = vrot.lane.b32.xlu0 %v573_v22, %s2899_s7  ;;  %v885_v29 = vrot.slane %v2829_v4, 5 }
  0xb7   : > { %612 = vrot.lane.b32.xlu2 %v575_v21, %s2899_s7  ;;  %610 = vrot.lane.b32.xlu1 %v574_v26, %s2899_s7  ;;  %v882_v21 = vrot.slane %v2829_v4, 2 }
  0xb8   : > { %v893_v31 = vperm.slane %v885_v29, 0 }
  0xbb   : > { %v559_v44 = vpop.permute.xlu1 %558  ;;  %v699_v3 = vpop.permute.xlu2 %698 }
  0xbc   : > { %v557_v35 = vpop.permute.xlu0 %556  ;;  %v582_v46 = vmul.f32 %v559_v44, %v3300_v24  ;;  %v583_v47 = vmul.f32 %v559_v44, %v3302_v25  ;;  %v722_v5 = vmul.f32 %v699_v3, %v469_v43  ;;  %v723_v17 = vmul.f32 %v699_v3, %v470_v49 }
  0xbd   : > { %v581_v38 = vmul.f32 %v557_v35, %v466_v37  ;;  %v580_v42 = vmul.f32 %v557_v35, %v465_v41 }
  0xbe   : > { %614 = vrot.lane.b32.xlu0 %v576_v33, %s2899_s7 }
  0xbf   : > { %618 = vrot.lane.b32.xlu2 %v578_v32, %s2899_s7  ;;  %616 = vrot.lane.b32.xlu1 %v577_v34, %s2899_s7 }
  0xc3   : > { %v685_v51 = vpop.permute.xlu1 %684 }
  0xc4   : > { %v709_v53 = vmul.f32 %v685_v51, %v456_v11  ;;  %v689_v54 = vpop.permute.xlu0 %688  ;;  %v708_v56 = vmul.f32 %v685_v51, %v3278_v7 }
  0xc5   : > { %v713_v55 = vmul.f32 %v689_v54, %v460_v18  ;;  %v712_v57 = vmul.f32 %v689_v54, %v459_v23  ;;  %v891_v18 = vperm.slane %v883_v15, 0  ;;  %v895_v23 = vperm.slane %v887_v19, 0  ;;  %v3404_v54 = vld [vmem:[%s4778_s1 + $0x18] sm:$0xff] }
  0xc6   : > { %620 = vrot.lane.b32.xlu0 %v579_v39, %s2899_s7 }
  0xc7   : > { %624 = vrot.lane.b32.xlu2 %v581_v38, %s2899_s7  ;;  %622 = vrot.lane.b32.xlu1 %v580_v42, %s2899_s7 }
  0xcb   : > { %v691_v61 = vpop.permute.xlu1 %690 }
  0xcc   : > { %v715_v62 = vmul.f32 %v691_v61, %v3288_v14  ;;  %v695_v63 = vpop.permute.xlu0 %694  ;;  %v714_v1 = vmul.f32 %v691_v61, %v3286_v13  ;;  %v884_v13 = vrot.slane %v2829_v4, 4  ;;  %v3412_v61 = vld [vmem:[#allocation2 + $0x51] sm:$0xff] }
  0xcd   : > { %v719_v0 = vmul.f32 %v695_v63, %v466_v37  ;;  %v718_v2 = vmul.f32 %v695_v63, %v465_v41 }
  0xce   : > { %626 = vrot.lane.b32.xlu0 %v582_v46, %s2899_s7  ;;  %v892_v14 = vperm.slane %v884_v13, 0 }
  0xcf   : > { %630 = vrot.lane.b32.xlu2 %v584_v45, %s2899_s7  ;;  %628 = vrot.lane.b32.xlu1 %v583_v47, %s2899_s7 }
  0xd3   : > { %v697_v7 = vpop.permute.xlu1 %696 }
  0xd4   : > { %v721_v9 = vmul.f32 %v697_v7, %v3302_v25  ;;  %v720_v11 = vmul.f32 %v697_v7, %v3300_v24  ;;  %v886_v24 = vrot.slane %v2829_v4, 6  ;;  %v890_v25 = vperm.slane %v882_v21, 0 }
  0xd6   : > { %632 = vrot.lane.b32.xlu0 %v585_v52, %s2899_s7  ;;  %v894_v26 = vperm.slane %v886_v24, 0 }
  0xd7   : > { %744 = vrot.lane.b32.xlu2 %v710_v50, %s2900_s8  ;;  %742 = vrot.lane.b32.xlu1 %v709_v53, %s2900_s8 }
  0xde   : > { %740 = vrot.lane.b32.xlu0 %v708_v56, %s2900_s8  ;;  %v3407_v56 = vld [vmem:[#allocation2 + $0x19] sm:$0xff] }
  0xdf   : > { %750 = vrot.lane.b32.xlu2 %v713_v55, %s2900_s8  ;;  %748 = vrot.lane.b32.xlu1 %v712_v57, %s2900_s8  ;;  %v825_v55 = vrot.slane %v3404_v54, 3 }
  0xe6   : > { %746 = vrot.lane.b32.xlu0 %v711_v60, %s2900_s8  ;;  %v833_v60 = vperm.slane %v825_v55, 0  ;;  %v3458_v55 = vld [vmem:[#allocation2 + $0x39] sm:$0xff] }
  0xe7   : > { %756 = vrot.lane.b32.xlu2 %v716_v59, %s2900_s8  ;;  %754 = vrot.lane.b32.xlu1 %v715_v62, %s2900_s8 }
  0xee   : > { %752 = vrot.lane.b32.xlu0 %v714_v1, %s2900_s8  ;;  %v853_v1 = vmul.f32 %v833_v60, %v3412_v61 }
  0xef   : > { %762 = vrot.lane.b32.xlu2 %v719_v0, %s2900_s8  ;;  %760 = vrot.lane.b32.xlu1 %v718_v2, %s2900_s8  ;;  %v3417_v2 = vld [vmem:[#allocation2 + $0x49] sm:$0xff] }
  0xf0   : > { %v852_v7 = vmul.f32 %v833_v60, %v3417_v2 }
  0xf4   : > { %v3356_v22 = vpop.permute.xlu2 %606 }
  0xf6   : > { %758 = vrot.lane.b32.xlu0 %v717_v6, %s2900_s8 }
  0xf7   : > { %768 = vrot.lane.b32.xlu2 %v722_v5, %s2900_s8  ;;  %766 = vrot.lane.b32.xlu1 %v721_v9, %s2900_s8 }
  0xfe   : > { %764 = vrot.lane.b32.xlu0 %v720_v11, %s2900_s8 }
  0xff   : > { %898 = vrot.lane.b32.xlu2 %v889_v10, %s2896_s24  ;;  %896 = vrot.lane.b32.xlu1 %v888_v12, %s2896_s24  ;;  %v3430_v12 = vld [vmem:[#allocation2 + $0x99] sm:$0xff] }
 0x106   : > { %770 = vrot.lane.b32.xlu0 %v723_v17, %s2900_s8  ;;  %v3434_v17 = vld [vmem:[#allocation2 + $0x91] sm:$0xff] }
 0x107   : > { %904 = vrot.lane.b32.xlu2 %v892_v14, %s2896_s24  ;;  %902 = vrot.lane.b32.xlu1 %v891_v18, %s2896_s24 }
 0x10e   : > { %900 = vrot.lane.b32.xlu0 %v890_v25, %s2896_s24  ;;  %v3440_v25 = vld [vmem:[#allocation2 + $0x1] sm:$0xff] }
 0x10f   : > { %910 = vrot.lane.b32.xlu2 %v895_v23, %s2896_s24  ;;  %908 = vrot.lane.b32.xlu1 %v894_v26, %s2896_s24  ;;  %v3442_v26 = vld [vmem:[#allocation2 + $0x9] sm:$0xff] }
 0x111   : > { %v3361_v30 = vpop.permute.xlu2 %612 }
 0x116   : > { %906 = vrot.lane.b32.xlu0 %v893_v31, %s2896_s24 }
 0x119   : > { %v3365_v32 = vpop.permute.xlu2 %618 }
 0x120   : > { %v3369_v34 = vpop.permute.xlu0 %602  ;;  %v3371_v35 = vpop.permute.xlu1 %604 }
 0x121   : > { %v3367_v33 = vpop.permute.xlu2 %624 }
 0x128   : > { %v3375_v37 = vpop.permute.xlu0 %608 }
 0x129   : > { %v3373_v36 = vpop.permute.xlu2 %630  ;;  %v3377_v38 = vpop.permute.xlu1 %610 }
 0x130   : > { %v615_v40 = vpop.permute.xlu0 %614 }
 0x131   : > { %v3379_v39 = vpop.permute.xlu2 %744  ;;  %v617_v41 = vpop.permute.xlu1 %616  ;;  %v656_v4 = vadd.f32 %v615_v40, %v3297_v20 }
 0x132   : > { %v657_v62 = vadd.f32 %v617_v41, %v3294_v16  ;;  %v828_v16 = vrot.slane %v3404_v54, 6  ;;  %v3452_v41 = vld [vmem:[#allocation2 + $0x21] sm:$0xff] }
 0x133   : > { %4798 = vst [vmem:[#allocation12_spill] sm:$0xff] %v3452_v41 }
 0x134   : > { %v836_v11 = vperm.slane %v828_v16, 0 }
 0x136   : > { %v859_v20 = vmul.f32 %v836_v11, %v3430_v12  ;;  %v858_v24 = vmul.f32 %v836_v11, %v3434_v17  ;;  %v3476_v11 = vld [vmem:[#allocation2 + $0x79] sm:$0xff] }
 0x137   : > { %4801 = vst [vmem:[#allocation15_spill] sm:$0xff] %v3476_v11 }
 0x138   : > { %v3383_v43 = vpop.permute.xlu0 %620 }
 0x139   : > { %v3381_v42 = vpop.permute.xlu2 %750  ;;  %4790 = vst [vmem:[#allocation4_spill] sm:$0xff] %v3383_v43  ;;  %v3385_v44 = vpop.permute.xlu1 %622 }
 0x13a   : > { %4791 = vst [vmem:[#allocation5_spill] sm:$0xff] %v3385_v44 }
 0x140   : > { %v627_v46 = vpop.permute.xlu0 %626 }
 0x141   : > { %v3387_v45 = vpop.permute.xlu2 %756  ;;  %v629_v47 = vpop.permute.xlu1 %628  ;;  %v662_v19 = vadd.f32 %v627_v46, %v3309_v28 }
 0x142   : > { %v663_v13 = vadd.f32 %v629_v47, %v3306_v27  ;;  %v3456_v47 = vld [vmem:[#allocation2 + $0x31] sm:$0xff] }
 0x143   : > { %4799 = vst [vmem:[#allocation13_spill] sm:$0xff] %v3456_v47 }
 0x148   : > { %v3391_v49 = vpop.permute.xlu0 %632 }
 0x149   : > { %v3389_v48 = vpop.permute.xlu2 %762  ;;  %4792 = vst [vmem:[#allocation6_spill] sm:$0xff] %v3391_v49  ;;  %v3393_v50 = vpop.permute.xlu1 %742 }
 0x150   : > { %v3397_v52 = vpop.permute.xlu0 %740 }
 0x151   : > { %v3395_v51 = vpop.permute.xlu2 %768  ;;  %v3399_v53 = vpop.permute.xlu1 %748 }
 0x152   : > { %4793 = vst [vmem:[#allocation7_spill] sm:$0xff] %v3399_v53 }
 0x158   : > { %v3410_v59 = vpop.permute.xlu0 %746 }
 0x159   : > { %v899_v57 = vpop.permute.xlu2 %898  ;;  %4794 = vst [vmem:[#allocation8_spill] sm:$0xff] %v3410_v59  ;;  %v755_v63 = vpop.permute.xlu1 %754 }
 0x15a   : > { %v922_v58 = vmul.f32 %v899_v57, %v3407_v56  ;;  %v795_v0 = vadd.f32 %v755_v63, %v657_v62  ;;  %v923_v46 = vmul.f32 %v899_v57, %v3452_v41  ;;  %v3466_v57 = vld [vmem:[#allocation2 + $0x61] sm:$0xff] }
 0x15c   : > { %956 = vrot.lane.b32.xlu2 %v922_v58, %s2899_s7  ;;  %v3419_v3 = vadd.f32 %v853_v1, %v795_v0 }
 0x160   : > { %v753_v5 = vpop.permute.xlu0 %752 }
 0x161   : > { %v794_v6 = vadd.f32 %v753_v5, %v656_v4  ;;  %v3423_v8 = vpop.permute.xlu1 %760  ;;  %v905_v1 = vpop.permute.xlu2 %904 }
 0x162   : > { %4795 = vst [vmem:[#allocation9_spill] sm:$0xff] %v3423_v8  ;;  %v928_v4 = vmul.f32 %v905_v1, %v3466_v57 }
 0x163   : > { %v3425_v9 = vadd.f32 %v852_v7, %v794_v6  ;;  %v3470_v6 = vld [vmem:[#allocation2 + $0x69] sm:$0xff] }
 0x164   : > { %4800 = vst [vmem:[#allocation14_spill] sm:$0xff] %v3470_v6  ;;  %v929_v7 = vmul.f32 %v905_v1, %v3470_v6 }
 0x168   : > { %v3428_v10 = vpop.permute.xlu0 %758 }
 0x169   : > { %4796 = vst [vmem:[#allocation10_spill] sm:$0xff] %v3428_v10  ;;  %v767_v14 = vpop.permute.xlu1 %766 }
 0x16a   : > { %v801_v15 = vadd.f32 %v767_v14, %v663_v13  ;;  %v3478_v13 = vld [vmem:[#allocation2 + $0x81] sm:$0xff] }
 0x16c   : > { %v3436_v18 = vadd.f32 %v859_v20, %v801_v15 }
 0x170   : > { %v765_v21 = vpop.permute.xlu0 %764 }
 0x171   : > { %v800_v23 = vadd.f32 %v765_v21, %v662_v19  ;;  %v897_v29 = vpop.permute.xlu1 %896  ;;  %v911_v21 = vpop.permute.xlu2 %910 }
 0x172   : > { %v920_v31 = vmul.f32 %v897_v29, %v3440_v25  ;;  %v921_v40 = vmul.f32 %v897_v29, %v3442_v26 }
 0x173   : > { %v3444_v27 = vadd.f32 %v858_v24, %v800_v23  ;;  %v3486_v23 = vld [vmem:[#allocation2 + $0xa9] sm:$0xff] }
 0x174   : > { %954 = vrot.lane.b32.xlu1 %v921_v40, %s2899_s7  ;;  %952 = vrot.lane.b32.xlu0 %v920_v31, %s2899_s7  ;;  %4802 = vst [vmem:[#allocation16_spill] sm:$0xff] %v3486_v23  ;;  %v2830_v24 = vld [vmem:[%s4778_s1 + $0x28] sm:$0xff]  ;;  %v934_v29 = vmul.f32 %v911_v21, %v3486_v23  ;;  %v3493_v40 = vld [vmem:[#allocation2 + $0xb1] sm:$0xff] }
 0x175   : > { %4803 = vst [vmem:[#allocation17_spill] sm:$0xff] %v3493_v40  ;;  %v1022_v1 = vrot.slane %v2830_v24, 4 }
 0x178   : > { %v3450_v28 = vpop.permute.xlu0 %770 }
 0x179   : > { %4797 = vst [vmem:[#allocation11_spill] sm:$0xff] %v3450_v28  ;;  %v903_v60 = vpop.permute.xlu1 %902 }
 0x17a   : > { %v926_v0 = vmul.f32 %v903_v60, %v3417_v2  ;;  %v927_v5 = vmul.f32 %v903_v60, %v3412_v61  ;;  %v1020_v60 = vrot.slane %v2830_v24, 2 }
 0x17c   : > { %958 = vrot.lane.b32.xlu0 %v923_v46, %s2899_s7  ;;  %v1019_v46 = vrot.slane %v2830_v24, 1 }
 0x180   : > { %v901_v58 = vpop.permute.xlu0 %900 }
 0x181   : > { %v924_v62 = vmul.f32 %v901_v58, %v3456_v47  ;;  %v925_v63 = vmul.f32 %v901_v58, %v3458_v55  ;;  %v909_v14 = vpop.permute.xlu1 %908  ;;  %v935_v58 = vmul.f32 %v911_v21, %v3493_v40 }
 0x182   : > { %v932_v19 = vmul.f32 %v909_v14, %v3434_v17  ;;  %v933_v31 = vmul.f32 %v909_v14, %v3430_v12 }
 0x183   : > { %962 = vrot.lane.b32.xlu2 %v925_v63, %s2899_s7  ;;  %960 = vrot.lane.b32.xlu1 %v924_v62, %s2899_s7  ;;  %v1027_v62 = vperm.slane %v1019_v46, 0  ;;  %v1026_v63 = vperm.slane %v2830_v24, 0 }
 0x184   : > { %964 = vrot.lane.b32.xlu0 %v926_v0, %s2899_s7  ;;  %v1028_v0 = vperm.slane %v1020_v60, 0 }
 0x188   : > { %v907_v16 = vpop.permute.xlu0 %906 }
 0x189   : > { %v930_v15 = vmul.f32 %v907_v16, %v3476_v11  ;;  %v931_v20 = vmul.f32 %v907_v16, %v3478_v13 }
 0x18b   : > { %968 = vrot.lane.b32.xlu2 %v928_v4, %s2899_s7  ;;  %966 = vrot.lane.b32.xlu1 %v927_v5, %s2899_s7  ;;  %v1021_v4 = vrot.slane %v2830_v24, 3  ;;  %v1023_v5 = vrot.slane %v2830_v24, 5 }
 0x18c   : > { %970 = vrot.lane.b32.xlu0 %v929_v7, %s2899_s7  ;;  %v1030_v7 = vperm.slane %v1022_v1, 0 }
 0x18d   : > { %v1029_v16 = vperm.slane %v1021_v4, 0  ;;  %v1031_v14 = vperm.slane %v1023_v5, 0 }
 0x193   : > { %974 = vrot.lane.b32.xlu2 %v931_v20, %s2899_s7  ;;  %972 = vrot.lane.b32.xlu1 %v930_v15, %s2899_s7  ;;  %v1025_v15 = vrot.slane %v2830_v24, 7  ;;  %v1024_v20 = vrot.slane %v2830_v24, 6 }
 0x194   : > { %976 = vrot.lane.b32.xlu0 %v932_v19, %s2899_s7 }
 0x195   : > { %v1033_v19 = vperm.slane %v1025_v15, 0  ;;  %v1032_v21 = vperm.slane %v1024_v20, 0 }
 0x19b   : > { %980 = vrot.lane.b32.xlu2 %v934_v29, %s2899_s7  ;;  %978 = vrot.lane.b32.xlu1 %v933_v31, %s2899_s7 }
 0x19c   : > { %982 = vrot.lane.b32.xlu0 %v935_v58, %s2899_s7 }
 0x1a3   : > { %1036 = vrot.lane.b32.xlu2 %v1027_v62, %s2898_s29  ;;  %1034 = vrot.lane.b32.xlu1 %v1026_v63, %s2898_s29 }
 0x1a4   : > { %1038 = vrot.lane.b32.xlu0 %v1028_v0, %s2898_s29 }
 0x1ab   : > { %1042 = vrot.lane.b32.xlu2 %v1030_v7, %s2898_s29  ;;  %1040 = vrot.lane.b32.xlu1 %v1029_v16, %s2898_s29 }
 0x1ac   : > { %1044 = vrot.lane.b32.xlu0 %v1031_v14, %s2898_s29 }
 0x1b3   : > { %1048 = vrot.lane.b32.xlu2 %v1033_v19, %s2898_s29  ;;  %1046 = vrot.lane.b32.xlu1 %v1032_v21, %s2898_s29 }
 0x1b6   : > { %v3507_v29 = vpop.permute.xlu2 %956 }
 0x1dd   : > { %v3509_v31 = vpop.permute.xlu2 %962 }
 0x1e5   : > { %v3511_v46 = vpop.permute.xlu2 %968 }
 0x1e6   : > { %v3513_v58 = vpop.permute.xlu0 %952  ;;  %v3515_v60 = vpop.permute.xlu1 %954 }
 0x1ed   : > { %v3517_v62 = vpop.permute.xlu2 %974 }
 0x1ee   : > { %v3519_v24 = vpop.permute.xlu0 %958 }
 0x1ef   : > { %4804 = vst [vmem:[#allocation18_spill] sm:$0xff] %v3519_v24 }
 0x1f5   : > { %v3521_v63 = vpop.permute.xlu1 %960  ;;  %v3523_v0 = vpop.permute.xlu2 %980 }
 0x1f6   : > { %4805 = vst [vmem:[#allocation19_spill] sm:$0xff] %v3521_v63  ;;  %v3525_v1 = vpop.permute.xlu0 %964 }
 0x1f7   : > { %4806 = vst [vmem:[#allocation20_spill] sm:$0xff] %v3523_v0 }
 0x1fd   : > { %v3527_v4 = vpop.permute.xlu1 %966  ;;  %v1037_v5 = vpop.permute.xlu2 %1036 }
 0x1fe   : > { %v1060_v7 = vmul.f32 %v1037_v5, %v3407_v56  ;;  %v3530_v16 = vpop.permute.xlu0 %970 }
 0x1ff   : > { %4807 = vst [vmem:[#allocation21_spill] sm:$0xff] %v3530_v16 }
 0x200   : > { %1094 = vrot.lane.b32.xlu2 %v1060_v7, %s2900_s8 }
 0x205   : > { %v3533_v14 = vpop.permute.xlu1 %972  ;;  %v1043_v16 = vpop.permute.xlu2 %1042 }
 0x206   : > { %4808 = vst [vmem:[#allocation22_spill] sm:$0xff] %v3533_v14  ;;  %v3535_v15 = vpop.permute.xlu0 %976  ;;  %v1061_v14 = vmul.f32 %v1037_v5, %v3452_v41 }
 0x20d   : > { %v3537_v20 = vpop.permute.xlu1 %978  ;;  %v1049_v5 = vpop.permute.xlu2 %1048 }
 0x20e   : > { %v3539_v19 = vpop.permute.xlu0 %982 }
 0x20f   : > { %4809 = vst [vmem:[#allocation23_spill] sm:$0xff] %v3539_v19 }
 0x215   : > { %v1035_v21 = vpop.permute.xlu1 %1034 }
 0x216   : > { %v1058_v28 = vmul.f32 %v1035_v21, %v3440_v25  ;;  %v1059_v49 = vmul.f32 %v1035_v21, %v3442_v26  ;;  %v1039_v8 = vpop.permute.xlu0 %1038  ;;  %v1066_v21 = vmul.f32 %v1043_v16, %v3466_v57 }
 0x217   : > { %v1063_v7 = vmul.f32 %v1039_v8, %v3458_v55  ;;  %v1062_v10 = vmul.f32 %v1039_v8, %v3456_v47 }
 0x218   : > { %1092 = vrot.lane.b32.xlu1 %v1059_v49, %s2900_s8  ;;  %1090 = vrot.lane.b32.xlu0 %v1058_v28, %s2900_s8 }
 0x219   : > { %1100 = vrot.lane.b32.xlu2 %v1063_v7, %s2900_s8 }
 0x21d   : > { %v1041_v19 = vpop.permute.xlu1 %1040 }
 0x21e   : > { %v1064_v49 = vmul.f32 %v1041_v19, %v3417_v2  ;;  %v1065_v28 = vmul.f32 %v1041_v19, %v3412_v61  ;;  %v1045_v44 = vpop.permute.xlu0 %1044  ;;  %v2832_v61 = vld [vmem:[%s4778_s1 + $0x38] sm:$0xff]  ;;  %v1072_v2 = vmul.f32 %v1049_v5, %v3486_v23 }
 0x21f   : > { %v1069_v8 = vmul.f32 %v1045_v44, %v3478_v13  ;;  %v1231_v7 = vrot.slane %v2832_v61, 1 }
 0x220   : > { %1096 = vrot.lane.b32.xlu0 %v1061_v14, %s2900_s8  ;;  %1098 = vrot.lane.b32.xlu1 %v1062_v10, %s2900_s8  ;;  %v1067_v10 = vmul.f32 %v1043_v16, %v3470_v6  ;;  %v1068_v14 = vmul.f32 %v1045_v44, %v3476_v11  ;;  %v1234_v44 = vrot.slane %v2832_v61, 4  ;;  %v1006_v11 = vadd.f32 %v3525_v1, %v3425_v9 }
 0x221   : > { %1106 = vrot.lane.b32.xlu2 %v1066_v21, %s2900_s8  ;;  %v1007_v6 = vadd.f32 %v3527_v4, %v3419_v3 }
 0x225   : > { %v1047_v19 = vpop.permute.xlu1 %1046 }
 0x226   : > { %v1070_v21 = vmul.f32 %v1047_v19, %v3434_v17  ;;  %v1071_v16 = vmul.f32 %v1047_v19, %v3430_v12  ;;  %v1233_v17 = vrot.slane %v2832_v61, 3  ;;  %v1237_v12 = vrot.slane %v2832_v61, 7 }
 0x228   : > { %1102 = vrot.lane.b32.xlu0 %v1064_v49, %s2900_s8  ;;  %1104 = vrot.lane.b32.xlu1 %v1065_v28, %s2900_s8  ;;  %v1239_v49 = vperm.slane %v1231_v7, 0  ;;  %v1238_v28 = vperm.slane %v2832_v61, 0  ;;  %v1241_v19 = vperm.slane %v1233_v17, 0  ;;  %v1245_v7 = vperm.slane %v1237_v12, 0 }
 0x229   : > { %1112 = vrot.lane.b32.xlu2 %v1069_v8, %s2900_s8  ;;  %v1073_v8 = vmul.f32 %v1049_v5, %v3493_v40 }
 0x230   : > { %1108 = vrot.lane.b32.xlu0 %v1067_v10, %s2900_s8  ;;  %1110 = vrot.lane.b32.xlu1 %v1068_v14, %s2900_s8  ;;  %v1242_v10 = vperm.slane %v1234_v44, 0  ;;  %v1232_v14 = vrot.slane %v2832_v61, 2 }
 0x231   : > { %1118 = vrot.lane.b32.xlu2 %v1072_v2, %s2900_s8 }
 0x232   : > { %v1240_v2 = vperm.slane %v1232_v14, 0 }
 0x238   : > { %1114 = vrot.lane.b32.xlu0 %v1070_v21, %s2900_s8  ;;  %1116 = vrot.lane.b32.xlu1 %v1071_v16, %s2900_s8  ;;  %v1235_v21 = vrot.slane %v2832_v61, 5  ;;  %v1236_v16 = vrot.slane %v2832_v61, 6 }
 0x239   : > { %1248 = vrot.lane.b32.xlu2 %v1239_v49, %s2896_s24 }
 0x23a   : > { %v1243_v5 = vperm.slane %v1235_v21, 0  ;;  %v1244_v49 = vperm.slane %v1236_v16, 0  ;;  %v3606_v16 = vld [vmem:[%s4778_s1 + $0x30] sm:$0xff] }
 0x23b   : > { %v1178_v3 = vrot.slane %v3606_v16, 6 }
 0x240   : > { %1120 = vrot.lane.b32.xlu0 %v1073_v8, %s2900_s8  ;;  %1246 = vrot.lane.b32.xlu1 %v1238_v28, %s2896_s24 }
 0x241   : > { %1254 = vrot.lane.b32.xlu2 %v1242_v10, %s2896_s24 }
 0x248   : > { %1250 = vrot.lane.b32.xlu0 %v1240_v2, %s2896_s24  ;;  %1252 = vrot.lane.b32.xlu1 %v1241_v19, %s2896_s24  ;;  %v3600_v19 = vld [vmem:[#allocation2 + $0x1a] sm:$0xff] }
 0x249   : > { %1260 = vrot.lane.b32.xlu2 %v1245_v7, %s2896_s24 }
 0x250   : > { %1256 = vrot.lane.b32.xlu0 %v1243_v5, %s2896_s24  ;;  %1258 = vrot.lane.b32.xlu1 %v1244_v49, %s2896_s24  ;;  %v1175_v5 = vrot.slane %v3606_v16, 3 }
 0x252   : > { %v1183_v43 = vperm.slane %v1175_v5, 0  ;;  %v3635_v5 = vld [vmem:[#allocation2 + $0x9a] sm:$0xff] }
 0x25a   : > { %v3582_v44 = vpop.permute.xlu2 %1094 }
 0x273   : > { %v3584_v28 = vpop.permute.xlu2 %1100 }
 0x27b   : > { %v3586_v8 = vpop.permute.xlu2 %1106 }
 0x283   : > { %v3588_v10 = vpop.permute.xlu2 %1112 }
 0x28a   : > { %v3590_v14 = vpop.permute.xlu1 %1092  ;;  %v3592_v17 = vpop.permute.xlu0 %1090 }
 0x28b   : > { %4810 = vst [vmem:[#allocation24_spill] sm:$0xff] %v3590_v14  ;;  %v3594_v61 = vpop.permute.xlu2 %1118 }
 0x28c   : > { %4811 = vst [vmem:[#allocation25_spill] sm:$0xff] %v3592_v17 }
 0x28d   : > { %4812 = vst [vmem:[#allocation26_spill] sm:$0xff] %v3594_v61 }
 0x292   : > { %v3596_v12 = vpop.permute.xlu1 %1098  ;;  %v3598_v2 = vpop.permute.xlu0 %1096 }
 0x293   : > { %4813 = vst [vmem:[#allocation27_spill] sm:$0xff] %v3596_v12  ;;  %v1249_v7 = vpop.permute.xlu2 %1248  ;;  %v3616_v12 = vld [vmem:[#allocation2 + $0x52] sm:$0xff] }
 0x294   : > { %4814 = vst [vmem:[#allocation28_spill] sm:$0xff] %v3598_v2  ;;  %v1272_v21 = vmul.f32 %v1249_v7, %v3600_v19  ;;  %v3614_v2 = vld [vmem:[#allocation2 + $0x4a] sm:$0xff]  ;;  %v1203_v24 = vmul.f32 %v1183_v43, %v3616_v12 }
 0x296   : > { %1306 = vrot.lane.b32.xlu2 %v1272_v21, %s2899_s7  ;;  %v1202_v21 = vmul.f32 %v1183_v43, %v3614_v2  ;;  %v3633_v43 = vld [vmem:[#allocation2 + $0x92] sm:$0xff] }
 0x29a   : > { %v1105_v49 = vpop.permute.xlu1 %1104  ;;  %v1103_v40 = vpop.permute.xlu0 %1102 }
 0x29b   : > { %v1145_v61 = vadd.f32 %v1105_v49, %v1007_v6  ;;  %v1144_v63 = vadd.f32 %v1103_v40, %v1006_v11  ;;  %v1012_v6 = vadd.f32 %v3535_v15, %v3444_v27  ;;  %v1013_v11 = vadd.f32 %v3537_v20, %v3436_v18 }
 0x29c   : > { %v1186_v40 = vperm.slane %v1178_v3, 0 }
 0x29d   : > { %v3624_v41 = vadd.f32 %v1203_v24, %v1145_v61  ;;  %v3626_v9 = vadd.f32 %v1202_v21, %v1144_v63  ;;  %v3639_v21 = vld [vmem:[#allocation2 + $0x2] sm:$0xff] }
 0x29e   : > { %v1209_v63 = vmul.f32 %v1186_v40, %v3635_v5  ;;  %v1208_v61 = vmul.f32 %v1186_v40, %v3633_v43 }
 0x29f   : > { %4817 = vst [vmem:[#allocation31_spill] sm:$0xff] %v3624_v41 }
 0x2a0   : > { %4818 = vst [vmem:[#allocation32_spill] sm:$0xff] %v3626_v9 }
 0x2a2   : > { %v3620_v0 = vpop.permute.xlu1 %1110  ;;  %v3622_v47 = vpop.permute.xlu0 %1108 }
 0x2a3   : > { %4815 = vst [vmem:[#allocation29_spill] sm:$0xff] %v3620_v0 }
 0x2a4   : > { %4816 = vst [vmem:[#allocation30_spill] sm:$0xff] %v3622_v47  ;;  %v3641_v47 = vld [vmem:[#allocation2 + $0xa] sm:$0xff] }
 0x2aa   : > { %v1117_v1 = vpop.permute.xlu1 %1116  ;;  %v1115_v4 = vpop.permute.xlu0 %1114 }
 0x2ab   : > { %v1151_v49 = vadd.f32 %v1117_v1, %v1013_v11  ;;  %v1150_v24 = vadd.f32 %v1115_v4, %v1012_v6  ;;  %v3653_v1 = vld [vmem:[#allocation2 + $0x22] sm:$0xff]  ;;  %v3655_v4 = vld [vmem:[#allocation2 + $0x32] sm:$0xff]  ;;  %v3657_v6 = vld [vmem:[#allocation2 + $0x3a] sm:$0xff] }
 0x2ac   : > { %v1273_v40 = vmul.f32 %v1249_v7, %v3653_v1 }
 0x2ad   : > { %v3645_v15 = vadd.f32 %v1209_v63, %v1151_v49  ;;  %v3647_v18 = vadd.f32 %v1208_v61, %v1150_v24  ;;  %v3665_v61 = vld [vmem:[#allocation2 + $0x62] sm:$0xff] }
 0x2af   : > { %4820 = vst [vmem:[#allocation34_spill] sm:$0xff] %v3645_v15 }
 0x2b0   : > { %4821 = vst [vmem:[#allocation35_spill] sm:$0xff] %v3647_v18 }
 0x2b2   : > { %v1247_v0 = vpop.permute.xlu1 %1246  ;;  %v3643_v27 = vpop.permute.xlu0 %1120 }
 0x2b3   : > { %4819 = vst [vmem:[#allocation33_spill] sm:$0xff] %v3643_v27  ;;  %v1270_v20 = vmul.f32 %v1247_v0, %v3639_v21  ;;  %v1271_v3 = vmul.f32 %v1247_v0, %v3641_v47  ;;  %v1255_v0 = vpop.permute.xlu2 %1254  ;;  %v3678_v27 = vld [vmem:[#allocation2 + $0x7a] sm:$0xff] }
 0x2b5   : > { %1304 = vrot.lane.b32.xlu1 %v1271_v3, %s2899_s7  ;;  %1302 = vrot.lane.b32.xlu0 %v1270_v20, %s2899_s7  ;;  %v1278_v20 = vmul.f32 %v1255_v0, %v3665_v61 }
 0x2ba   : > { %v1251_v11 = vpop.permute.xlu0 %1250  ;;  %v1253_v63 = vpop.permute.xlu1 %1252 }
 0x2bb   : > { %v1274_v49 = vmul.f32 %v1251_v11, %v3655_v4  ;;  %v1275_v24 = vmul.f32 %v1251_v11, %v3657_v6  ;;  %v1276_v3 = vmul.f32 %v1253_v63, %v3614_v2  ;;  %v1277_v7 = vmul.f32 %v1253_v63, %v3616_v12  ;;  %v1261_v63 = vpop.permute.xlu2 %1260 }
 0x2bd   : > { %1308 = vrot.lane.b32.xlu0 %v1273_v40, %s2899_s7  ;;  %1312 = vrot.lane.b32.xlu2 %v1275_v24, %s2899_s7  ;;  %v3673_v40 = vld [vmem:[#allocation2 + $0x6a] sm:$0xff] }
 0x2be   : > { %1310 = vrot.lane.b32.xlu1 %v1274_v49, %s2899_s7  ;;  %v3675_v49 = vld [vmem:[#allocation2 + $0x82] sm:$0xff]  ;;  %v1279_v24 = vmul.f32 %v1255_v0, %v3673_v40 }
 0x2bf   : > { %v2833_v0 = vld [vmem:[%s4778_s1 + $0x40] sm:$0xff] }
 0x2c0   : > { %v1376_v41 = vperm.slane %v2833_v0, 0  ;;  %v1370_v17 = vrot.slane %v2833_v0, 2  ;;  %v1372_v59 = vrot.slane %v2833_v0, 4 }
 0x2c2   : > { %v1257_v11 = vpop.permute.xlu0 %1256 }
 0x2c3   : > { %v1281_v18 = vmul.f32 %v1257_v11, %v3675_v49  ;;  %v1280_v15 = vmul.f32 %v1257_v11, %v3678_v27 }
 0x2c5   : > { %1314 = vrot.lane.b32.xlu0 %v1276_v3, %s2899_s7  ;;  %1318 = vrot.lane.b32.xlu2 %v1278_v20, %s2899_s7  ;;  %v1259_v20 = vpop.permute.xlu1 %1258  ;;  %v3685_v3 = vld [vmem:[#allocation2 + $0xaa] sm:$0xff] }
 0x2c6   : > { %1316 = vrot.lane.b32.xlu1 %v1277_v7, %s2899_s7  ;;  %v1284_v7 = vmul.f32 %v1261_v63, %v3685_v3  ;;  %v1282_v9 = vmul.f32 %v1259_v20, %v3633_v43  ;;  %v1283_v11 = vmul.f32 %v1259_v20, %v3635_v5  ;;  %v1378_v20 = vperm.slane %v1370_v17, 0 }
 0x2cd   : > { %1320 = vrot.lane.b32.xlu0 %v1279_v24, %s2899_s7  ;;  %1324 = vrot.lane.b32.xlu2 %v1281_v18, %s2899_s7  ;;  %v1369_v18 = vrot.slane %v2833_v0, 1  ;;  %v3696_v24 = vld [vmem:[#allocation2 + $0xb2] sm:$0xff] }
 0x2ce   : > { %1322 = vrot.lane.b32.xlu1 %v1280_v15, %s2899_s7  ;;  %4822 = vst [vmem:[#allocation36_spill] sm:$0xff] %v3696_v24  ;;  %v1285_v23 = vmul.f32 %v1261_v63, %v3696_v24  ;;  %v1374_v63 = vrot.slane %v2833_v0, 6 }
 0x2cf   : > { %v1377_v15 = vperm.slane %v1369_v18, 0  ;;  %v1375_v18 = vrot.slane %v2833_v0, 7 }
 0x2d1   : > { %v1383_v14 = vperm.slane %v1375_v18, 0 }
 0x2d5   : > { %1326 = vrot.lane.b32.xlu0 %v1282_v9, %s2899_s7  ;;  %1330 = vrot.lane.b32.xlu2 %v1284_v7, %s2899_s7  ;;  %v1371_v9 = vrot.slane %v2833_v0, 3  ;;  %v1380_v7 = vperm.slane %v1372_v59, 0 }
 0x2d6   : > { %1328 = vrot.lane.b32.xlu1 %v1283_v11, %s2899_s7  ;;  %v1373_v11 = vrot.slane %v2833_v0, 5 }
 0x2d7   : > { %v1379_v53 = vperm.slane %v1371_v9, 0 }
 0x2dd   : > { %1332 = vrot.lane.b32.xlu0 %v1285_v23, %s2899_s7  ;;  %1386 = vrot.lane.b32.xlu2 %v1377_v15, %s2898_s29  ;;  %v1381_v23 = vperm.slane %v1373_v11, 0  ;;  %v1382_v15 = vperm.slane %v1374_v63, 0 }
 0x2de   : > { %1384 = vrot.lane.b32.xlu1 %v1376_v41, %s2898_s29 }
 0x2e5   : > { %1388 = vrot.lane.b32.xlu0 %v1378_v20, %s2898_s29  ;;  %1392 = vrot.lane.b32.xlu2 %v1380_v7, %s2898_s29 }
 0x2e6   : > { %1390 = vrot.lane.b32.xlu1 %v1379_v53, %s2898_s29 }
 0x2ed   : > { %1394 = vrot.lane.b32.xlu0 %v1381_v23, %s2898_s29  ;;  %1398 = vrot.lane.b32.xlu2 %v1383_v14, %s2898_s29 }
 0x2ee   : > { %1396 = vrot.lane.b32.xlu1 %v1382_v15, %s2898_s29 }
 0x2f0   : > { %v3708_v59 = vpop.permute.xlu2 %1306 }
 0x317   : > { %v3710_v41 = vpop.permute.xlu2 %1312 }
 0x31f   : > { %v3712_v17 = vpop.permute.xlu2 %1318 }
 0x327   : > { %v3714_v9 = vpop.permute.xlu1 %1304  ;;  %v3716_v20 = vpop.permute.xlu2 %1324 }
 0x328   : > { %4823 = vst [vmem:[#allocation37_spill] sm:$0xff] %v3714_v9  ;;  %v3718_v53 = vpop.permute.xlu0 %1302 }
 0x329   : > { %4824 = vst [vmem:[#allocation38_spill] sm:$0xff] %v3716_v20 }
 0x32a   : > { %4825 = vst [vmem:[#allocation39_spill] sm:$0xff] %v3718_v53 }
 0x32f   : > { %v3720_v0 = vpop.permute.xlu2 %1330 }
 0x330   : > { %4826 = vst [vmem:[#allocation40_spill] sm:$0xff] %v3720_v0  ;;  %v3722_v7 = vpop.permute.xlu1 %1310  ;;  %v3724_v11 = vpop.permute.xlu0 %1308 }
 0x331   : > { %4827 = vst [vmem:[#allocation41_spill] sm:$0xff] %v3722_v7 }
 0x332   : > { %4828 = vst [vmem:[#allocation42_spill] sm:$0xff] %v3724_v11 }
 0x337   : > { %v1387_v14 = vpop.permute.xlu2 %1386 }
 0x338   : > { %v3726_v18 = vpop.permute.xlu1 %1316  ;;  %v1410_v63 = vmul.f32 %v1387_v14, %v3600_v19  ;;  %v3729_v23 = vpop.permute.xlu0 %1314 }
 0x339   : > { %4829 = vst [vmem:[#allocation43_spill] sm:$0xff] %v3726_v18 }
 0x33a   : > { %1444 = vrot.lane.b32.xlu2 %v1410_v63, %s2900_s8 }
 0x340   : > { %v3732_v15 = vpop.permute.xlu1 %1322  ;;  %v3734_v20 = vpop.permute.xlu0 %1320 }
 0x341   : > { %4830 = vst [vmem:[#allocation44_spill] sm:$0xff] %v3732_v15  ;;  %v1411_v15 = vmul.f32 %v1387_v14, %v3653_v1 }
 0x342   : > { %4831 = vst [vmem:[#allocation45_spill] sm:$0xff] %v3734_v20 }
 0x348   : > { %v3736_v53 = vpop.permute.xlu1 %1328  ;;  %v3738_v0 = vpop.permute.xlu0 %1326 }
 0x349   : > { %4832 = vst [vmem:[#allocation46_spill] sm:$0xff] %v3736_v53 }
 0x34a   : > { %4833 = vst [vmem:[#allocation47_spill] sm:$0xff] %v3738_v0 }
 0x350   : > { %v1385_v7 = vpop.permute.xlu1 %1384  ;;  %v3740_v9 = vpop.permute.xlu0 %1332 }
 0x351   : > { %4834 = vst [vmem:[#allocation48_spill] sm:$0xff] %v3740_v9  ;;  %v1408_v11 = vmul.f32 %v1385_v7, %v3639_v21  ;;  %v1409_v18 = vmul.f32 %v1385_v7, %v3641_v47  ;;  %v1393_v9 = vpop.permute.xlu2 %1392 }
 0x352   : > { %v1416_v7 = vmul.f32 %v1393_v9, %v3665_v61 }
 0x353   : > { %1442 = vrot.lane.b32.xlu1 %v1409_v18, %s2900_s8  ;;  %1440 = vrot.lane.b32.xlu0 %v1408_v11, %s2900_s8 }
 0x358   : > { %v1389_v63 = vpop.permute.xlu0 %1388  ;;  %v1391_v0 = vpop.permute.xlu1 %1390 }
 0x359   : > { %v1412_v20 = vmul.f32 %v1389_v63, %v3655_v4  ;;  %v1413_v53 = vmul.f32 %v1389_v63, %v3657_v6  ;;  %v1414_v18 = vmul.f32 %v1391_v0, %v3614_v2  ;;  %v1415_v11 = vmul.f32 %v1391_v0, %v3616_v12  ;;  %v1399_v12 = vpop.permute.xlu2 %1398 }
 0x35a   : > { %v1422_v0 = vmul.f32 %v1399_v12, %v3685_v3 }
 0x35b   : > { %1446 = vrot.lane.b32.xlu0 %v1411_v15, %s2900_s8  ;;  %1450 = vrot.lane.b32.xlu2 %v1413_v53, %s2900_s8  ;;  %v1417_v15 = vmul.f32 %v1393_v9, %v3673_v40  ;;  %v3773_v9 = vld [vmem:[%s4778_s1] sm:$0xff] }
 0x35c   : > { %1448 = vrot.lane.b32.xlu1 %v1412_v20, %s2900_s8 }
 0x360   : > { %v1395_v14 = vpop.permute.xlu0 %1394  ;;  %v1397_v2 = vpop.permute.xlu1 %1396 }
 0x361   : > { %v1419_v53 = vmul.f32 %v1395_v14, %v3675_v49  ;;  %v1418_v20 = vmul.f32 %v1395_v14, %v3678_v27  ;;  %v1420_v63 = vmul.f32 %v1397_v2, %v3633_v43  ;;  %v2876_v14 = vld [vmem:[#allocation2 + $0x18] sm:$0xff] }
 0x363   : > { %1452 = vrot.lane.b32.xlu0 %v1414_v18, %s2900_s8  ;;  %1456 = vrot.lane.b32.xlu2 %v1416_v7, %s2900_s8  ;;  %v1421_v7 = vmul.f32 %v1397_v2, %v3635_v5  ;;  %v473_v18 = vrot.slane %v3773_v9, 1  ;;  %v823_v5 = vrot.slane %v3404_v54, 1 }
 0x364   : > { %1454 = vrot.lane.b32.xlu1 %v1415_v11, %s2900_s8  ;;  %v1423_v11 = vmul.f32 %v1399_v12, %v3696_v24  ;;  %v1173_v12 = vrot.slane %v3606_v16, 1 }
 0x365   : > { %v3778_v43 = vperm.slane %v473_v18, 0 }
 0x366   : > { %v3790_v18 = vperm.slane %v1173_v12, 0  ;;  %v476_v12 = vrot.slane %v3773_v9, 4 }
 0x36b   : > { %1458 = vrot.lane.b32.xlu0 %v1417_v15, %s2900_s8  ;;  %1462 = vrot.lane.b32.xlu2 %v1419_v53, %s2900_s8  ;;  %v498_v15 = vmul.f32 %v2876_v14, %v3778_v43  ;;  %v1198_v14 = vmul.f32 %v3790_v18, %v3600_v19 }
 0x36c   : > { %1460 = vrot.lane.b32.xlu1 %v1418_v20, %s2900_s8  ;;  %v3783_v20 = vperm.slane %v823_v5, 0 }
 0x36d   : > { %v652_v53 = vadd.f32 %v3356_v22, %v498_v15 }
 0x36f   : > { %v790_v2 = vadd.f32 %v3379_v39, %v652_v53  ;;  %v3799_v39 = vld [vmem:[%s4779_s2 + $0x1] ss:$0 sm:$0xff] }
 0x373   : > { %1464 = vrot.lane.b32.xlu0 %v1420_v63, %s2900_s8  ;;  %1468 = vrot.lane.b32.xlu2 %v1422_v0, %s2900_s8  ;;  %v848_v0 = vmul.f32 %v3783_v20, %v3407_v56 }
 0x374   : > { %1466 = vrot.lane.b32.xlu1 %v1421_v7, %s2900_s8 }
 0x375   : > { %v864_v63 = vadd.f32 %v848_v0, %v790_v2  ;;  %v474_v2 = vrot.slane %v3773_v9, 2  ;;  %v2877_v0 = vld [vmem:[#allocation2 + $0x38] sm:$0xff] }
 0x377   : > { %v1002_v7 = vadd.f32 %v3507_v29, %v864_v63 }
 0x37b   : > { %1470 = vrot.lane.b32.xlu0 %v1423_v11, %s2900_s8  ;;  %v1140_v11 = vadd.f32 %v3582_v44, %v1002_v7  ;;  %v482_v44 = vperm.slane %v474_v2, 0  ;;  %v3807_v7 = vperm.slane %v476_v12, 0  ;;  %v1174_v2 = vrot.slane %v3606_v16, 2 }
 0x37d   : > { %v1214_v22 = vadd.f32 %v1198_v14, %v1140_v11  ;;  %v501_v19 = vmul.f32 %v2877_v0, %v482_v44 }
 0x37f   : > { %v1352_v5 = vadd.f32 %v3708_v59, %v1214_v22  ;;  %v824_v59 = vrot.slane %v3404_v54, 2  ;;  %v655_v63 = vadd.f32 %v3361_v30, %v501_v19  ;;  %v480_v19 = vperm.slane %v3773_v9, 0 }
 0x381   : > { %v793_v11 = vadd.f32 %v3381_v42, %v655_v63  ;;  %v3810_v14 = vperm.slane %v824_v59, 0  ;;  %v3827_v63 = vperm.slane %v1174_v2, 0  ;;  %v2881_v2 = vld [vmem:[#allocation2] sm:$0xff] }
 0x383   : > { %v851_v22 = vmul.f32 %v3810_v14, %v3458_v55 }
 0x394   : > { %v1445_v56 = vpop.permute.xlu2 %1444 }
 0x395   : > { %v1490_v15 = vadd.f32 %v1445_v56, %v1352_v5  ;;  %v826_v5 = vrot.slane %v3404_v54, 4  ;;  %v2878_v56 = vld [vmem:[#allocation2 + $0x60] sm:$0xff] }
 0x397   : > { %v1538_v53 = vadd.f32 %v3799_v39, %v1490_v15  ;;  %v504_v15 = vmul.f32 %v2878_v56, %v3807_v7  ;;  %v3820_v42 = vperm.slane %v826_v5, 0  ;;  %v827_v5 = vrot.slane %v3404_v54, 5  ;;  %v2879_v56 = vld [vmem:[#allocation2 + $0x8] sm:$0xff] }
 0x399   : > { %v1554_v29 = vmax.f32 %v1538_v53, 0.0  ;;  %v477_v53 = vrot.slane %v3773_v9, 5  ;;  %v658_v30 = vadd.f32 %v3365_v32, %v504_v15  ;;  %v1201_v32 = vmul.f32 %v3827_v63, %v3657_v6 }
 0x39a   : > { %v497_v15 = vmul.f32 %v2879_v56, %v480_v19  ;;  %v3846_v56 = vld [vmem:[%s4779_s2 + $0x2] ss:$0 sm:$0xff] }
 0x39b   : > { %1588 = vrot.lane.b32.xlu0 %v1554_v29, %s2896_s24  ;;  %v867_v29 = vadd.f32 %v851_v22, %v793_v11  ;;  %v3823_v12 = vperm.slane %v477_v53, 0  ;;  %v796_v55 = vadd.f32 %v3387_v45, %v658_v30  ;;  %v1176_v11 = vrot.slane %v3606_v16, 4  ;;  %v2880_v53 = vld [vmem:[#allocation2 + $0x80] sm:$0xff] }
 0x39c   : > { %v854_v22 = vmul.f32 %v3820_v42, %v3466_v57  ;;  %v496_v30 = vmul.f32 %v2881_v2, %v480_v19  ;;  %v651_v57 = vadd.f32 %v3371_v35, %v497_v15  ;;  %v830_v19 = vperm.slane %v3404_v54, 0  ;;  %v2884_v2 = vld [vmem:[#allocation2 + $0x20] sm:$0xff] }
 0x39d   : > { %v1005_v0 = vadd.f32 %v3509_v31, %v867_v29  ;;  %v479_v31 = vrot.slane %v3773_v9, 7  ;;  %v507_v45 = vmul.f32 %v2880_v53, %v3823_v12  ;;  %v829_v15 = vrot.slane %v3404_v54, 7 }
 0x39f   : > { %v1143_v59 = vadd.f32 %v3584_v28, %v1005_v0  ;;  %v870_v28 = vadd.f32 %v854_v22, %v796_v55  ;;  %v3837_v0 = vperm.slane %v1176_v11, 0  ;;  %v661_v24 = vadd.f32 %v3367_v33, %v507_v45 }
 0x3a0   : > { %v650_v55 = vadd.f32 %v3369_v34, %v496_v30  ;;  %v3852_v11 = vperm.slane %v827_v5, 0  ;;  %v789_v33 = vadd.f32 %v3393_v50, %v651_v57  ;;  %v847_v34 = vmul.f32 %v830_v19, %v3442_v26  ;;  %v2882_v50 = vld [vmem:[#allocation2 + $0x30] sm:$0xff] }
 0x3a1   : > { %v1217_v29 = vadd.f32 %v1201_v32, %v1143_v59  ;;  %v1008_v6 = vadd.f32 %v3511_v46, %v870_v28  ;;  %v3849_v59 = vperm.slane %v479_v31, 0  ;;  %v799_v46 = vadd.f32 %v3389_v48, %v661_v24  ;;  %v2883_v48 = vld [vmem:[#allocation2 + $0xa8] sm:$0xff] }
 0x3a2   : > { %v788_v32 = vadd.f32 %v3397_v52, %v650_v55  ;;  %v857_v31 = vmul.f32 %v3852_v11, %v3478_v13  ;;  %v1204_v5 = vmul.f32 %v3837_v0, %v3665_v61  ;;  %v500_v45 = vmul.f32 %v2882_v50, %v482_v44  ;;  %v3880_v55 = vld [vmem:[%s4779_s2 + $0x4] ss:$0 sm:$0xff] }
 0x3a3   : > { %v1355_v9 = vadd.f32 %v3710_v41, %v1217_v29  ;;  %v1146_v41 = vadd.f32 %v3586_v8, %v1008_v6  ;;  %v510_v8 = vmul.f32 %v2883_v48, %v3849_v59  ;;  %v846_v24 = vmul.f32 %v830_v19, %v3440_v25  ;;  %v4840_v50 = vld [vmem:[#allocation12_spill] sm:$0xff]  ;;  %v4841_v48 = vld [vmem:[#allocation13_spill] sm:$0xff] }
 0x3a4   : > { %v1177_v52 = vrot.slane %v3606_v16, 5  ;;  %v863_v54 = vadd.f32 %v847_v34, %v789_v33  ;;  %v873_v28 = vadd.f32 %v857_v31, %v799_v46  ;;  %v499_v13 = vmul.f32 %v2884_v2, %v3778_v43  ;;  %v4835_v33 = vld [vmem:[#allocation24_spill] sm:$0xff]  ;;  %v4838_v31 = vld [vmem:[#allocation25_spill] sm:$0xff] }
 0x3a5   : > { %v1220_v26 = vadd.f32 %v1204_v5, %v1146_v41  ;;  %v862_v30 = vadd.f32 %v846_v24, %v788_v32  ;;  %v3869_v61 = vperm.slane %v829_v15, 0  ;;  %v1180_v57 = vperm.slane %v3606_v16, 0  ;;  %v4837_v15 = vld [vmem:[#allocation8_spill] sm:$0xff] }
 0x3a6   : > { %v664_v44 = vadd.f32 %v3373_v36, %v510_v8  ;;  %v1001_v6 = vadd.f32 %v3515_v60, %v863_v54  ;;  %v1011_v25 = vadd.f32 %v3517_v62, %v873_v28  ;;  %v654_v43 = vadd.f32 %v3377_v38, %v500_v45 }
 0x3a7   : > { %v653_v19 = vadd.f32 %v3375_v37, %v499_v13  ;;  %v3885_v36 = vperm.slane %v1177_v52, 0  ;;  %v849_v45 = vmul.f32 %v3783_v20, %v4840_v50  ;;  %v850_v8 = vmul.f32 %v3810_v14, %v4841_v48  ;;  %v3917_v20 = vld [vmem:[%s4779_s2 + $0x5] ss:$0 sm:$0xff]  ;;  %v4845_v14 = vld [vmem:[#allocation18_spill] sm:$0xff]  ;;  %v2885_v50 = vld [vmem:[#allocation2 + $0x68] sm:$0xff] }
 0x3a8   : > { %v802_v62 = vadd.f32 %v3395_v51, %v664_v44  ;;  %v1139_v46 = vadd.f32 %v4835_v33, %v1001_v6  ;;  %v1179_v51 = vrot.slane %v3606_v16, 7  ;;  %v1196_v24 = vmul.f32 %v1180_v57, %v3639_v21  ;;  %v4843_v16 = vld [vmem:[#allocation37_spill] sm:$0xff]  ;;  %v4844_v44 = vld [vmem:[#allocation38_spill] sm:$0xff]  ;;  %v2862_v21 = vld [vmem:[%s4779_s2] ss:$0 sm:$0xff] }
 0x3a9   : > { %v791_v34 = vadd.f32 %v4837_v15, %v653_v19  ;;  %v1207_v37 = vmul.f32 %v3885_v36, %v3675_v49  ;;  %v4847_v19 = vld [vmem:[#allocation39_spill] sm:$0xff] }
 0x3b5   : > { %v1451_v35 = vpop.permute.xlu2 %1450 }
 0x3b6   : > { %v1493_v22 = vadd.f32 %v1451_v35, %v1355_v9  ;;  %v1358_v9 = vadd.f32 %v3712_v17, %v1220_v26  ;;  %v1000_v35 = vadd.f32 %v3513_v58, %v862_v30  ;;  %v1149_v17 = vadd.f32 %v3588_v10, %v1011_v25  ;;  %v4839_v58 = vld [vmem:[#allocation16_spill] sm:$0xff] }
 0x3b7   : > { %v860_v5 = vmul.f32 %v3869_v61, %v4839_v58  ;;  %v865_v26 = vadd.f32 %v849_v45, %v791_v34  ;;  %v3908_v25 = vperm.slane %v1179_v51, 0  ;;  %v4850_v34 = vld [vmem:[#allocation28_spill] sm:$0xff]  ;;  %v1199_v51 = vmul.f32 %v3790_v18, %v3653_v1  ;;  %v4853_v18 = vld [vmem:[#allocation5_spill] sm:$0xff] }
 0x3b8   : > { %v1541_v53 = vadd.f32 %v3846_v56, %v1493_v22  ;;  %v4836_v22 = vld [vmem:[#allocation7_spill] sm:$0xff]  ;;  %v1138_v38 = vadd.f32 %v4838_v31, %v1000_v35  ;;  %v1223_v49 = vadd.f32 %v1207_v37, %v1149_v17  ;;  %v4848_v17 = vld [vmem:[#allocation26_spill] sm:$0xff]  ;;  %v505_v45 = vmul.f32 %v2885_v50, %v3807_v7  ;;  %v3941_v1 = vld [vmem:[%s4779_s2 + $0x7] ss:$0 sm:$0xff] }
 0x3b9   : > { %v792_v32 = vadd.f32 %v4836_v22, %v654_v43  ;;  %v876_v52 = vadd.f32 %v860_v5, %v802_v62  ;;  %v1210_v37 = vmul.f32 %v3908_v25, %v3685_v3  ;;  %v2865_v50 = vld [vmem:[%s4779_s2 + $0x3] ss:$0 sm:$0xff] }
 0x3ba   : > { %v1557_v29 = vmax.f32 %v1541_v53, 0.0  ;;  %v1197_v53 = vmul.f32 %v1180_v57, %v3641_v47  ;;  %v1212_v2 = vadd.f32 %v1196_v24, %v1138_v38  ;;  %v4842_v47 = vld [vmem:[#allocation20_spill] sm:$0xff]  ;;  %v1361_v6 = vadd.f32 %v4844_v44, %v1223_v49 }
 0x3bb   : > { %v1014_v13 = vadd.f32 %v4842_v47, %v876_v52  ;;  %v1003_v57 = vadd.f32 %v4845_v14, %v865_v26  ;;  %v2886_v52 = vld [vmem:[#allocation2 + $0x78] sm:$0xff]  ;;  %v4851_v26 = vld [vmem:[#allocation4_spill] sm:$0xff]  ;;  %v4855_v47 = vld [vmem:[#allocation42_spill] sm:$0xff] }
 0x3bc   : > { %1594 = vrot.lane.b32.xlu0 %v1557_v29, %s2896_s24  ;;  %v1213_v54 = vadd.f32 %v1197_v53, %v1139_v46  ;;  %v866_v29 = vadd.f32 %v850_v8, %v792_v32  ;;  %v1350_v35 = vadd.f32 %v4847_v19, %v1212_v2  ;;  %v4849_v32 = vld [vmem:[#allocation27_spill] sm:$0xff]  ;;  %v1200_v53 = vmul.f32 %v3827_v63, %v3655_v4  ;;  %v4852_v2 = vld [vmem:[#allocation40_spill] sm:$0xff]  ;;  %v4854_v63 = vld [vmem:[#allocation41_spill] sm:$0xff] }
 0x3bd   : > { %v1457_v60 = vpop.permute.xlu2 %1456  ;;  %v1152_v33 = vadd.f32 %v4848_v17, %v1014_v13  ;;  %v1141_v31 = vadd.f32 %v4850_v34, %v1003_v57  ;;  %v4857_v57 = vld [vmem:[#allocation9_spill] sm:$0xff]  ;;  %v4859_v17 = vld [vmem:[#allocation15_spill] sm:$0xff] }
 0x3be   : > { %v1496_v41 = vadd.f32 %v1457_v60, %v1358_v9  ;;  %v1351_v30 = vadd.f32 %v4843_v16, %v1213_v54  ;;  %v4846_v9 = vld [vmem:[#allocation19_spill] sm:$0xff]  ;;  %v506_v54 = vmul.f32 %v2886_v52, %v3823_v12  ;;  %v4866_v52 = vld [vmem:[#allocation30_spill] sm:$0xff] }
 0x3bf   : > { %v1004_v43 = vadd.f32 %v4846_v9, %v866_v29  ;;  %v1226_v48 = vadd.f32 %v1210_v37, %v1152_v33  ;;  %v1215_v49 = vadd.f32 %v1199_v51, %v1141_v31  ;;  %v659_v29 = vadd.f32 %v4851_v26, %v505_v45  ;;  %v4864_v51 = vld [vmem:[#allocation32_spill] sm:$0xff] }
 0x3c0   : > { %v1544_v10 = vadd.f32 %v3880_v55, %v1496_v41  ;;  %v660_v7 = vadd.f32 %v4853_v18, %v506_v54  ;;  %v856_v33 = vmul.f32 %v3852_v11, %v4859_v17  ;;  %v1205_v26 = vmul.f32 %v3837_v0, %v3673_v40 }
 0x3c1   : > { %v1142_v15 = vadd.f32 %v4849_v32, %v1004_v43  ;;  %v1364_v4 = vadd.f32 %v4852_v2, %v1226_v48  ;;  %v1353_v13 = vadd.f32 %v4855_v47, %v1215_v49 }
 0x3c2   : > { %v1560_v28 = vmax.f32 %v1544_v10, 0.0  ;;  %v798_v9 = vadd.f32 %v4857_v57, %v660_v7 }
 0x3c3   : > { %v1216_v3 = vadd.f32 %v1200_v53, %v1142_v15 }
 0x3c4   : > { %1600 = vrot.lane.b32.xlu0 %v1560_v28, %s2896_s24  ;;  %v872_v34 = vadd.f32 %v856_v33, %v798_v9 }
 0x3c5   : > { %v1443_v60 = vpop.permute.xlu1 %1442  ;;  %v1463_v62 = vpop.permute.xlu2 %1462  ;;  %v1354_v12 = vadd.f32 %v4854_v63, %v1216_v3 }
 0x3c6   : > { %v1489_v46 = vadd.f32 %v1443_v60, %v1351_v30  ;;  %v1499_v41 = vadd.f32 %v1463_v62, %v1361_v6  ;;  %v1441_v22 = vpop.permute.xlu0 %1440  ;;  %v4856_v30 = vld [vmem:[#allocation10_spill] sm:$0xff] }
 0x3c7   : > { %v1488_v38 = vadd.f32 %v1441_v22, %v1350_v35  ;;  %v797_v44 = vadd.f32 %v4856_v30, %v659_v29  ;;  %v4858_v35 = vld [vmem:[#allocation14_spill] sm:$0xff]  ;;  %v3959_v22 = vld [vmem:[%s4780_s3 + $0x8] sm:$0xff] }
 0x3c8   : > { %v1537_v58 = vadd.f32 %v2862_v21, %v1489_v46  ;;  %v1547_v5 = vadd.f32 %v3917_v20, %v1499_v41  ;;  %v855_v60 = vmul.f32 %v3820_v42, %v4858_v35  ;;  %v4860_v42 = vld [vmem:[#allocation21_spill] sm:$0xff]  ;;  %v1724_v11 = vrot.slane %v3959_v22, 1 }
 0x3c9   : > { %v1536_v10 = vadd.f32 %v2862_v21, %v1488_v38 }
 0x3ca   : > { %v1553_v8 = vmax.f32 %v1537_v58, 0.0  ;;  %v1563_v24 = vmax.f32 %v1547_v5, 0.0  ;;  %v871_v32 = vadd.f32 %v855_v60, %v797_v44  ;;  %v4861_v58 = vld [vmem:[#allocation22_spill] sm:$0xff]  ;;  %v4862_v5 = vld [vmem:[#allocation31_spill] sm:$0xff]  ;;  %v4868_v44 = vld [vmem:[#allocation44_spill] sm:$0xff] }
 0x3cb   : > { %v1552_v28 = vmax.f32 %v1536_v10, 0.0  ;;  %v1356_v10 = vadd.f32 %v3729_v23, %v4864_v51  ;;  %v1206_v23 = vmul.f32 %v3885_v36, %v3678_v27  ;;  %v4869_v36 = vld [vmem:[#allocation45_spill] sm:$0xff] }
 0x3cc   : > { %1586 = vrot.lane.b32.xlu2 %v1553_v8, %s2896_s24  ;;  %1606 = vrot.lane.b32.xlu0 %v1563_v24, %s2896_s24  ;;  %v1009_v37 = vadd.f32 %v4860_v42, %v871_v32  ;;  %v4865_v8 = vld [vmem:[#allocation29_spill] sm:$0xff]  ;;  %v4876_v42 = vld [vmem:[#allocation47_spill] sm:$0xff] }
 0x3cd   : > { %1584 = vrot.lane.b32.xlu1 %v1552_v28, %s2896_s24  ;;  %v1469_v16 = vpop.permute.xlu2 %1468  ;;  %v1732_v28 = vperm.slane %v1724_v11, 0  ;;  %v4877_v11 = vld [vmem:[#allocation33_spill] sm:$0xff] }
 0x3ce   : > { %v1449_v6 = vpop.permute.xlu1 %1448  ;;  %v1502_v21 = vadd.f32 %v1469_v16, %v1364_v4  ;;  %v1447_v14 = vpop.permute.xlu0 %1446  ;;  %v1147_v54 = vadd.f32 %v4866_v52, %v1009_v37  ;;  %v2887_v4 = vld [vmem:[#allocation2 + $0xb0] sm:$0xff] }
 0x3cf   : > { %v1492_v43 = vadd.f32 %v1449_v6, %v1354_v12  ;;  %v1491_v19 = vadd.f32 %v1447_v14, %v1353_v13  ;;  %v511_v18 = vmul.f32 %v2887_v4, %v3849_v59  ;;  %v1727_v13 = vrot.slane %v3959_v22, 4  ;;  %v4867_v16 = vld [vmem:[#allocation6_spill] sm:$0xff]  ;;  %v4870_v59 = vld [vmem:[#allocation11_spill] sm:$0xff] }
 0x3d0   : > { %v1550_v62 = vadd.f32 %v3941_v1, %v1502_v21  ;;  %v1221_v63 = vadd.f32 %v1205_v26, %v1147_v54  ;;  %v1725_v26 = vrot.slane %v3959_v22, 2  ;;  %v1728_v4 = vrot.slane %v3959_v22, 5 }
 0x3d1   : > { %v1540_v46 = vadd.f32 %v3846_v56, %v1492_v43  ;;  %v1539_v41 = vadd.f32 %v3799_v39, %v1491_v19  ;;  %v1010_v56 = vadd.f32 %v4861_v58, %v872_v34  ;;  %v4863_v39 = vld [vmem:[#allocation43_spill] sm:$0xff]  ;;  %v665_v30 = vadd.f32 %v4867_v16, %v511_v18  ;;  %v4871_v43 = vld [vmem:[#allocation17_spill] sm:$0xff]  ;;  %v4874_v34 = vld [vmem:[#allocation46_spill] sm:$0xff] }
 0x3d2   : > { %v1566_v15 = vmax.f32 %v1550_v62, 0.0  ;;  %v1357_v53 = vadd.f32 %v4863_v39, %v4862_v5  ;;  %v1359_v6 = vadd.f32 %v4869_v36, %v1221_v63  ;;  %v1735_v9 = vperm.slane %v1727_v13, 0 }
 0x3d3   : > { %v1556_v31 = vmax.f32 %v1540_v46, 0.0  ;;  %v1555_v38 = vmax.f32 %v1539_v41, 0.0  ;;  %v1148_v24 = vadd.f32 %v4865_v8, %v1010_v56  ;;  %v803_v21 = vadd.f32 %v4870_v59, %v665_v30  ;;  %v4872_v41 = vld [vmem:[#allocation23_spill] sm:$0xff] }
 0x3d4   : > { %1612 = vrot.lane.b32.xlu0 %v1566_v15, %s2896_s24  ;;  %v861_v19 = vmul.f32 %v3869_v61, %v4871_v43  ;;  %v1730_v46 = vrot.slane %v3959_v22, 7  ;;  %v4873_v15 = vld [vmem:[#allocation34_spill] sm:$0xff]  ;;  %v2866_v61 = vld [vmem:[%s4779_s2 + $0x6] ss:$0 sm:$0xff]  ;;  %v1736_v18 = vperm.slane %v1728_v4, 0 }
 0x3d5   : > { %1592 = vrot.lane.b32.xlu2 %v1556_v31, %s2896_s24  ;;  %1590 = vrot.lane.b32.xlu1 %v1555_v38, %s2896_s24  ;;  %v1222_v7 = vadd.f32 %v1206_v23, %v1148_v24  ;;  %v1363_v31 = vadd.f32 %v4874_v34, %v4873_v15  ;;  %v4875_v38 = vld [vmem:[#allocation35_spill] sm:$0xff]  ;;  %v4879_v24 = vld [vmem:[#allocation48_spill] sm:$0xff]  ;;  %v1726_v23 = vrot.slane %v3959_v22, 3 }
 0x3d6   : > { %v1455_v45 = vpop.permute.xlu1 %1454  ;;  %v1453_v48 = vpop.permute.xlu0 %1452  ;;  %v877_v62 = vadd.f32 %v861_v19, %v803_v21  ;;  %v1362_v37 = vadd.f32 %v4876_v42, %v4875_v38  ;;  %v1738_v39 = vperm.slane %v1730_v46, 0 }
 0x3d7   : > { %v1495_v3 = vadd.f32 %v1455_v45, %v1357_v53  ;;  %v1494_v49 = vadd.f32 %v1453_v48, %v1356_v10  ;;  %v1360_v27 = vadd.f32 %v4868_v44, %v1222_v7  ;;  %v4878_v53 = vld [vmem:[#allocation36_spill] sm:$0xff] }
 0x3d8   : > { %v1015_v32 = vadd.f32 %v4872_v41, %v877_v62  ;;  %v1211_v51 = vmul.f32 %v3908_v25, %v4878_v53 }
 0x3d9   : > { %v1543_v29 = vadd.f32 %v2865_v50, %v1495_v3  ;;  %v1542_v2 = vadd.f32 %v2865_v50, %v1494_v49 }
 0x3da   : > { %v1153_v58 = vadd.f32 %v4877_v11, %v1015_v32 }
 0x3db   : > { %v1559_v12 = vmax.f32 %v1543_v29, 0.0  ;;  %v1558_v47 = vmax.f32 %v1542_v2, 0.0  ;;  %v1734_v29 = vperm.slane %v1726_v23, 0  ;;  %v1733_v2 = vperm.slane %v1725_v26, 0 }
 0x3dc   : > { %1741 = vrot.lane.b32.xlu0 %v1732_v28, %s2896_s24  ;;  %v1227_v45 = vadd.f32 %v1211_v51, %v1153_v58  ;;  %v1731_v28 = vperm.slane %v3959_v22, 0 }
 0x3dd   : > { %1598 = vrot.lane.b32.xlu2 %v1559_v12, %s2896_s24  ;;  %1596 = vrot.lane.b32.xlu1 %v1558_v47, %s2896_s24 }
 0x3de   : > { %v1461_v40 = vpop.permute.xlu1 %1460  ;;  %v1459_v0 = vpop.permute.xlu0 %1458  ;;  %v1365_v52 = vadd.f32 %v4879_v24, %v1227_v45  ;;  %v2835_v45 = vld [vmem:[%s4780_s3 + $0x10] sm:$0xff] }
 0x3df   : > { %v1498_v14 = vadd.f32 %v1461_v40, %v1360_v27  ;;  %v1497_v57 = vadd.f32 %v1459_v0, %v1359_v6 }
 0x3e1   : > { %v1546_v35 = vadd.f32 %v3917_v20, %v1498_v14  ;;  %v1545_v60 = vadd.f32 %v3880_v55, %v1497_v57 }
 0x3e3   : > { %v1562_v17 = vmax.f32 %v1546_v35, 0.0  ;;  %v1561_v33 = vmax.f32 %v1545_v60, 0.0 }
 0x3e4   : > { %1747 = vrot.lane.b32.xlu0 %v1735_v9, %s2896_s24 }
 0x3e5   : > { %1604 = vrot.lane.b32.xlu2 %v1562_v17, %s2896_s24  ;;  %1602 = vrot.lane.b32.xlu1 %v1561_v33, %s2896_s24 }
 0x3e6   : > { %v1467_v55 = vpop.permute.xlu1 %1466  ;;  %v1465_v20 = vpop.permute.xlu0 %1464 }
 0x3e7   : > { %v1501_v56 = vadd.f32 %v1467_v55, %v1363_v31  ;;  %v1500_v5 = vadd.f32 %v1465_v20, %v1362_v37 }
 0x3e9   : > { %v1549_v10 = vadd.f32 %v2866_v61, %v1501_v56  ;;  %v1548_v50 = vadd.f32 %v2866_v61, %v1500_v5 }
 0x3eb   : > { %v1565_v48 = vmax.f32 %v1549_v10, 0.0  ;;  %v1564_v8 = vmax.f32 %v1548_v50, 0.0 }
 0x3ec   : > { %1753 = vrot.lane.b32.xlu0 %v1738_v39, %s2896_s24 }
 0x3ed   : > { %1610 = vrot.lane.b32.xlu2 %v1565_v48, %s2896_s24  ;;  %1608 = vrot.lane.b32.xlu1 %v1564_v8, %s2896_s24  ;;  %v1863_v8 = vrot.slane %v2835_v45, 2 }
 0x3ee   : > { %v1471_v54 = vpop.permute.xlu0 %1470 }
 0x3ef   : > { %v1503_v3 = vadd.f32 %v1471_v54, %v1365_v52 }
 0x3f1   : > { %v1551_v49 = vadd.f32 %v3941_v1, %v1503_v3  ;;  %v1729_v1 = vrot.slane %v3959_v22, 6  ;;  %v1871_v3 = vperm.slane %v1863_v8, 0 }
 0x3f3   : > { %v1567_v25 = vmax.f32 %v1551_v49, 0.0  ;;  %v1737_v7 = vperm.slane %v1729_v1, 0  ;;  %v1862_v1 = vrot.slane %v2835_v45, 1 }
 0x3f5   : > { %1739 = vrot.lane.b32.xlu2 %v1731_v28, %s2896_s24  ;;  %1614 = vrot.lane.b32.xlu1 %v1567_v25, %s2896_s24  ;;  %v1866_v25 = vrot.slane %v2835_v45, 5 }
 0x3fd   : > { %1745 = vrot.lane.b32.xlu2 %v1734_v29, %s2896_s24  ;;  %1743 = vrot.lane.b32.xlu1 %v1733_v2, %s2896_s24  ;;  %v1874_v29 = vperm.slane %v1866_v25, 0 }
 0x405   : > { %1749 = vrot.lane.b32.xlu1 %v1736_v18, %s2896_s24  ;;  %1751 = vrot.lane.b32.xlu2 %v1737_v7, %s2896_s24  ;;  %v1869_v18 = vperm.slane %v2835_v45, 0  ;;  %v1870_v7 = vperm.slane %v1862_v1, 0 }
 0x40d   : > { %v1589_v63 = vpop.permute.xlu0 %1588 }
 0x40e   : > { %1634 = vst.msk [vmem:[#allocation3 + $0x19] sm:$0xff] %vm438_vm3, %v1589_v63  ;;  %v1864_v63 = vrot.slane %v2835_v45, 3 }
 0x415   : > { %v4036_v0 = vld [vmem:[#allocation3 + $0x18] sm:$0xff] }
 0x426   : > { %v1587_v12 = vpop.permute.xlu2 %1586 }
 0x427   : > { %1633 = vst.msk [vmem:[#allocation3 + $0x9] sm:$0xff] %vm438_vm3, %v1587_v12  ;;  %v1865_v12 = vrot.slane %v2835_v45, 4 }
 0x42e   : > { %v1595_v47 = vpop.permute.xlu0 %1594 }
 0x42f   : > { %v1593_v13 = vpop.permute.xlu2 %1592  ;;  %1637 = vst.msk [vmem:[#allocation3 + $0x39] sm:$0xff] %vm438_vm3, %v1595_v47  ;;  %v1872_v47 = vperm.slane %v1864_v63, 0 }
 0x430   : > { %1636 = vst.msk [vmem:[#allocation3 + $0x31] sm:$0xff] %vm438_vm3, %v1593_v13  ;;  %v1873_v13 = vperm.slane %v1865_v12, 0 }
 0x436   : > { %v1601_v16 = vpop.permute.xlu0 %1600 }
 0x437   : > { %v1599_v22 = vpop.permute.xlu2 %1598  ;;  %1640 = vst.msk [vmem:[#allocation3 + $0x61] sm:$0xff] %vm438_vm3, %v1601_v16  ;;  %v4066_v61 = vld [vmem:[#allocation3 + $0x30] sm:$0xff]  ;;  %v4068_v20 = vld [vmem:[#allocation3 + $0x38] sm:$0xff]  ;;  %v1867_v16 = vrot.slane %v2835_v45, 6 }
 0x438   : > { %1639 = vst.msk [vmem:[#allocation3 + $0x51] sm:$0xff] %vm438_vm3, %v1599_v22  ;;  %v1868_v22 = vrot.slane %v2835_v45, 7 }
 0x43e   : > { %v1607_v30 = vpop.permute.xlu0 %1606  ;;  %v4080_v53 = vld [vmem:[#allocation3 + $0x60] sm:$0xff] }
 0x43f   : > { %v1605_v44 = vpop.permute.xlu2 %1604  ;;  %v1585_v27 = vpop.permute.xlu1 %1584  ;;  %1643 = vst.msk [vmem:[#allocation3 + $0x81] sm:$0xff] %vm438_vm3, %v1607_v30  ;;  %v1875_v30 = vperm.slane %v1867_v16, 0 }
 0x440   : > { %1642 = vst.msk [vmem:[#allocation3 + $0x79] sm:$0xff] %vm438_vm3, %v1605_v44  ;;  %v1876_v44 = vperm.slane %v1868_v22, 0 }
 0x441   : > { %1632 = vst.msk [vmem:[#allocation3 + $0x1] sm:$0xff] %vm438_vm3, %v1585_v27 }
 0x446   : > { %v1613_v36 = vpop.permute.xlu0 %1612 }
 0x447   : > { %v1611_v6 = vpop.permute.xlu2 %1610  ;;  %v1591_v40 = vpop.permute.xlu1 %1590  ;;  %1646 = vst.msk [vmem:[#allocation3 + $0xa9] sm:$0xff] %vm438_vm3, %v1613_v36  ;;  %v4091_v52 = vld [vmem:[#allocation3 + $0x78] sm:$0xff]  ;;  %v4093_v54 = vld [vmem:[#allocation3 + $0x80] sm:$0xff] }
 0x448   : > { %1645 = vst.msk [vmem:[#allocation3 + $0x99] sm:$0xff] %vm438_vm3, %v1611_v6  ;;  %v4038_v14 = vld [vmem:[#allocation3] sm:$0xff]  ;;  %v4040_v57 = vld [vmem:[#allocation3 + $0x8] sm:$0xff] }
 0x449   : > { %1635 = vst.msk [vmem:[#allocation3 + $0x21] sm:$0xff] %vm438_vm3, %v1591_v40 }
 0x44e   : > { %v1742_v59 = vpop.permute.xlu0 %1741  ;;  %v4102_v26 = vld [vmem:[#allocation3 + $0xa8] sm:$0xff] }
 0x44f   : > { %v1740_v21 = vpop.permute.xlu2 %1739  ;;  %v1597_v9 = vpop.permute.xlu1 %1596  ;;  %v1765_v43 = vmul.f32 %v1742_v59, %v4036_v0 }
 0x450   : > { %v1763_v19 = vmul.f32 %v1740_v21, %v4038_v14  ;;  %v1764_v35 = vmul.f32 %v1740_v21, %v4040_v57  ;;  %1638 = vst.msk [vmem:[#allocation3 + $0x49] sm:$0xff] %vm438_vm3, %v1597_v9  ;;  %v4049_v60 = vld [vmem:[#allocation3 + $0x20] sm:$0xff] }
 0x451   : > { %1799 = vrot.lane.b32.xlu0 %v1765_v43, %s2899_s7  ;;  %v1766_v17 = vmul.f32 %v1742_v59, %v4049_v60 }
 0x452   : > { %1797 = vrot.lane.b32.xlu2 %v1764_v35, %s2899_s7  ;;  %1795 = vrot.lane.b32.xlu1 %v1763_v19, %s2899_s7 }
 0x456   : > { %v1748_v34 = vpop.permute.xlu0 %1747 }
 0x457   : > { %v1603_v62 = vpop.permute.xlu1 %1602  ;;  %v1746_v33 = vpop.permute.xlu2 %1745  ;;  %v4054_v46 = vld [vmem:[#allocation3 + $0x48] sm:$0xff]  ;;  %v4076_v5 = vld [vmem:[#allocation3 + $0x50] sm:$0xff]  ;;  %v1771_v10 = vmul.f32 %v1748_v34, %v4080_v53 }
 0x458   : > { %1641 = vst.msk [vmem:[#allocation3 + $0x69] sm:$0xff] %vm438_vm3, %v1603_v62  ;;  %v1769_v32 = vmul.f32 %v1746_v33, %v4054_v46  ;;  %v1770_v51 = vmul.f32 %v1746_v33, %v4076_v5 }
 0x45a   : > { %1801 = vrot.lane.b32.xlu1 %v1766_v17, %s2899_s7 }
 0x45e   : > { %v1754_v50 = vpop.permute.xlu0 %1753 }
 0x45f   : > { %v1609_v41 = vpop.permute.xlu1 %1608  ;;  %v4059_v15 = vld [vmem:[#allocation3 + $0x68] sm:$0xff]  ;;  %v1752_v42 = vpop.permute.xlu2 %1751  ;;  %v1777_v2 = vmul.f32 %v1754_v50, %v4102_v26 }
 0x460   : > { %1644 = vst.msk [vmem:[#allocation3 + $0x91] sm:$0xff] %vm438_vm3, %v1609_v41  ;;  %v1772_v38 = vmul.f32 %v1748_v34, %v4059_v15 }
 0x462   : > { %1807 = vrot.lane.b32.xlu1 %v1769_v32, %s2899_s7 }
 0x467   : > { %v1615_v31 = vpop.permute.xlu1 %1614  ;;  %v4064_v37 = vld [vmem:[#allocation3 + $0x90] sm:$0xff]  ;;  %v4100_v23 = vld [vmem:[#allocation3 + $0x98] sm:$0xff] }
 0x468   : > { %1647 = vst.msk [vmem:[#allocation3 + $0xb1] sm:$0xff] %vm438_vm3, %v1615_v31  ;;  %v1775_v56 = vmul.f32 %v1752_v42, %v4064_v37  ;;  %v1776_v4 = vmul.f32 %v1752_v42, %v4100_v23 }
 0x46a   : > { %1813 = vrot.lane.b32.xlu1 %v1772_v38, %s2899_s7 }
 0x46f   : > { %v1744_v55 = vpop.permute.xlu1 %1743  ;;  %v4078_v39 = vld [vmem:[#allocation3 + $0xb0] sm:$0xff] }
 0x470   : > { %v1767_v11 = vmul.f32 %v1744_v55, %v4066_v61  ;;  %v1768_v58 = vmul.f32 %v1744_v55, %v4068_v20  ;;  %v1778_v48 = vmul.f32 %v1754_v50, %v4078_v39 }
 0x472   : > { %1803 = vrot.lane.b32.xlu2 %v1767_v11, %s2899_s7  ;;  %1805 = vrot.lane.b32.xlu0 %v1768_v58, %s2899_s7 }
 0x473   : > { %1819 = vrot.lane.b32.xlu1 %v1775_v56, %s2899_s7 }
 0x477   : > { %v1750_v24 = vpop.permute.xlu1 %1749 }
 0x478   : > { %v1773_v49 = vmul.f32 %v1750_v24, %v4091_v52  ;;  %v1774_v28 = vmul.f32 %v1750_v24, %v4093_v54 }
 0x47a   : > { %1809 = vrot.lane.b32.xlu2 %v1770_v51, %s2899_s7  ;;  %1811 = vrot.lane.b32.xlu0 %v1771_v10, %s2899_s7 }
 0x47b   : > { %1825 = vrot.lane.b32.xlu1 %v1778_v48, %s2899_s7 }
 0x482   : > { %1815 = vrot.lane.b32.xlu2 %v1773_v49, %s2899_s7  ;;  %1817 = vrot.lane.b32.xlu0 %v1774_v28, %s2899_s7  ;;  %v2837_v28 = vld [vmem:[%s4780_s3 + $0x20] sm:$0xff] }
 0x483   : > { %1881 = vrot.lane.b32.xlu1 %v1871_v3, %s2898_s29  ;;  %v2076_v1 = vrot.slane %v2837_v28, 3  ;;  %v2079_v12 = vrot.slane %v2837_v28, 6 }
 0x48a   : > { %1821 = vrot.lane.b32.xlu2 %v1776_v4, %s2899_s7  ;;  %1823 = vrot.lane.b32.xlu0 %v1777_v2, %s2899_s7 }
 0x48b   : > { %1887 = vrot.lane.b32.xlu1 %v1874_v29, %s2898_s29  ;;  %v2081_v29 = vperm.slane %v2837_v28, 0 }
 0x492   : > { %1877 = vrot.lane.b32.xlu2 %v1869_v18, %s2898_s29  ;;  %1879 = vrot.lane.b32.xlu0 %v1870_v7, %s2898_s29  ;;  %v2084_v18 = vperm.slane %v2076_v1, 0 }
 0x49a   : > { %1883 = vrot.lane.b32.xlu2 %v1872_v47, %s2898_s29  ;;  %1885 = vrot.lane.b32.xlu0 %v1873_v13, %s2898_s29  ;;  %v2087_v13 = vperm.slane %v2079_v12, 0 }
 0x4a2   : > { %1889 = vrot.lane.b32.xlu2 %v1875_v30, %s2898_s29  ;;  %1891 = vrot.lane.b32.xlu0 %v1876_v44, %s2898_s29  ;;  %v2075_v30 = vrot.slane %v2837_v28, 2  ;;  %v2074_v44 = vrot.slane %v2837_v28, 1 }
 0x4ac   : > { %v4115_v27 = vpop.permute.xlu2 %1797 }
 0x4c3   : > { %v4127_v9 = vpop.permute.xlu0 %1799 }
 0x4c4   : > { %v4117_v36 = vpop.permute.xlu1 %1795 }
 0x4cc   : > { %v4119_v6 = vpop.permute.xlu2 %1803  ;;  %v4121_v40 = vpop.permute.xlu1 %1801 }
 0x4d4   : > { %v4123_v59 = vpop.permute.xlu2 %1809  ;;  %v4125_v21 = vpop.permute.xlu1 %1807 }
 0x4dc   : > { %v4129_v43 = vpop.permute.xlu2 %1815  ;;  %v4131_v19 = vpop.permute.xlu1 %1813 }
 0x4e4   : > { %v4133_v35 = vpop.permute.xlu2 %1821  ;;  %v4135_v62 = vpop.permute.xlu0 %1805 }
 0x4e5   : > { %v4137_v17 = vpop.permute.xlu1 %1819 }
 0x4ec   : > { %v1878_v33 = vpop.permute.xlu2 %1877  ;;  %v4139_v41 = vpop.permute.xlu0 %1811 }
 0x4ed   : > { %v1901_v32 = vmul.f32 %v1878_v33, %v4038_v14  ;;  %v1902_v34 = vmul.f32 %v1878_v33, %v4040_v57  ;;  %v4143_v31 = vpop.permute.xlu1 %1825  ;;  %v2083_v33 = vperm.slane %v2075_v30, 0 }
 0x4ef   : > { %1935 = vrot.lane.b32.xlu2 %v1902_v34, %s2900_s8  ;;  %1933 = vrot.lane.b32.xlu1 %v1901_v32, %s2900_s8  ;;  %v2082_v32 = vperm.slane %v2074_v44, 0  ;;  %v2078_v34 = vrot.slane %v2837_v28, 5 }
 0x4f4   : > { %v4147_v38 = vpop.permute.xlu0 %1817  ;;  %v1884_v11 = vpop.permute.xlu2 %1883 }
 0x4f5   : > { %v1882_v42 = vpop.permute.xlu1 %1881  ;;  %v1908_v56 = vmul.f32 %v1884_v11, %v4076_v5  ;;  %v1907_v24 = vmul.f32 %v1884_v11, %v4054_v46 }
 0x4f6   : > { %v1905_v55 = vmul.f32 %v1882_v42, %v4066_v61  ;;  %v1906_v3 = vmul.f32 %v1882_v42, %v4068_v20  ;;  %v2077_v42 = vrot.slane %v2837_v28, 4 }
 0x4f8   : > { %1941 = vrot.lane.b32.xlu2 %v1905_v55, %s2900_s8  ;;  %v2086_v55 = vperm.slane %v2078_v34, 0  ;;  %v2085_v11 = vperm.slane %v2077_v42, 0 }
 0x4fc   : > { %v4151_v58 = vpop.permute.xlu0 %1823  ;;  %v1890_v8 = vpop.permute.xlu2 %1889 }
 0x4fd   : > { %v1888_v51 = vpop.permute.xlu1 %1887  ;;  %v1914_v49 = vmul.f32 %v1890_v8, %v4100_v23  ;;  %v1913_v7 = vmul.f32 %v1890_v8, %v4064_v37 }
 0x4fe   : > { %v1911_v48 = vmul.f32 %v1888_v51, %v4091_v52  ;;  %v1912_v63 = vmul.f32 %v1888_v51, %v4093_v54 }
 0x500   : > { %1947 = vrot.lane.b32.xlu2 %v1908_v56, %s2900_s8  ;;  %v2080_v56 = vrot.slane %v2837_v28, 7 }
 0x502   : > { %v2088_v51 = vperm.slane %v2080_v56, 0 }
 0x504   : > { %v1880_v10 = vpop.permute.xlu0 %1879 }
 0x505   : > { %v1903_v50 = vmul.f32 %v1880_v10, %v4036_v0  ;;  %v1904_v45 = vmul.f32 %v1880_v10, %v4049_v60  ;;  %v4193_v10 = vld [vmem:[%s4780_s3] sm:$0xff] }
 0x507   : > { %1939 = vrot.lane.b32.xlu1 %v1904_v45, %s2900_s8  ;;  %1937 = vrot.lane.b32.xlu0 %v1903_v50, %s2900_s8  ;;  %v1673_v50 = vperm.slane %v4193_v10, 0 }
 0x508   : > { %1953 = vrot.lane.b32.xlu2 %v1911_v48, %s2900_s8  ;;  %v1667_v48 = vrot.slane %v4193_v10, 2 }
 0x509   : > { %v1690_v45 = vmul.f32 %v1673_v50, %v4040_v57 }
 0x50b   : > { %v1844_v8 = vadd.f32 %v4115_v27, %v1690_v45 }
 0x50c   : > { %v1886_v25 = vpop.permute.xlu0 %1885 }
 0x50d   : > { %v1909_v2 = vmul.f32 %v1886_v25, %v4080_v53  ;;  %v1910_v4 = vmul.f32 %v1886_v25, %v4059_v15  ;;  %v1668_v25 = vrot.slane %v4193_v10, 3 }
 0x50f   : > { %1945 = vrot.lane.b32.xlu1 %v1907_v24, %s2900_s8  ;;  %1943 = vrot.lane.b32.xlu0 %v1906_v3, %s2900_s8 }
 0x510   : > { %1959 = vrot.lane.b32.xlu2 %v1914_v49, %s2900_s8  ;;  %v1675_v49 = vperm.slane %v1667_v48, 0 }
 0x512   : > { %v1693_v28 = vmul.f32 %v1675_v49, %v4066_v61  ;;  %v1689_v61 = vmul.f32 %v1673_v50, %v4038_v14 }
 0x514   : > { %v1892_v47 = vpop.permute.xlu0 %1891 }
 0x515   : > { %v1915_v16 = vmul.f32 %v1892_v47, %v4102_v26  ;;  %v1916_v22 = vmul.f32 %v1892_v47, %v4078_v39 }
 0x517   : > { %1951 = vrot.lane.b32.xlu1 %v1910_v4, %s2900_s8  ;;  %1949 = vrot.lane.b32.xlu0 %v1909_v2, %s2900_s8  ;;  %v1676_v4 = vperm.slane %v1668_v25, 0  ;;  %v1669_v25 = vrot.slane %v4193_v10, 4 }
 0x518   : > { %2089 = vrot.lane.b32.xlu2 %v2081_v29, %s2896_s24  ;;  %v1847_v29 = vadd.f32 %v4119_v6, %v1693_v28  ;;  %v1671_v6 = vrot.slane %v4193_v10, 6 }
 0x519   : > { %v1696_v57 = vmul.f32 %v1676_v4, %v4076_v5  ;;  %v1695_v28 = vmul.f32 %v1676_v4, %v4054_v46 }
 0x51a   : > { %v1679_v44 = vperm.slane %v1671_v6, 0 }
 0x51b   : > { %v1850_v27 = vadd.f32 %v4123_v59, %v1696_v57  ;;  %v1677_v57 = vperm.slane %v1669_v25, 0 }
 0x51f   : > { %1957 = vrot.lane.b32.xlu1 %v1913_v7, %s2900_s8  ;;  %1955 = vrot.lane.b32.xlu0 %v1912_v63, %s2900_s8 }
 0x520   : > { %2095 = vrot.lane.b32.xlu2 %v2084_v18, %s2896_s24  ;;  %v1670_v18 = vrot.slane %v4193_v10, 5 }
 0x522   : > { %v1678_v63 = vperm.slane %v1670_v18, 0 }
 0x524   : > { %v1699_v47 = vmul.f32 %v1678_v63, %v4091_v52  ;;  %v1666_v52 = vrot.slane %v4193_v10, 1  ;;  %v1700_v6 = vmul.f32 %v1678_v63, %v4093_v54 }
 0x526   : > { %v1674_v42 = vperm.slane %v1666_v52, 0  ;;  %v4279_v52 = vld [vmem:[#allocation3 + $0x21] sm:$0xff] }
 0x527   : > { %1963 = vrot.lane.b32.xlu1 %v1916_v22, %s2900_s8  ;;  %1961 = vrot.lane.b32.xlu0 %v1915_v16, %s2900_s8  ;;  %v1853_v16 = vadd.f32 %v4129_v43, %v1699_v47  ;;  %v4227_v43 = vld [vmem:[#allocation3 + $0x9] sm:$0xff]  ;;  %v1672_v47 = vrot.slane %v4193_v10, 7 }
 0x528   : > { %2101 = vrot.lane.b32.xlu2 %v2087_v13, %s2896_s24  ;;  %v1843_v13 = vadd.f32 %v4117_v36, %v1689_v61  ;;  %v4225_v36 = vld [vmem:[#allocation3 + $0x1] sm:$0xff]  ;;  %v1701_v61 = vmul.f32 %v1679_v44, %v4064_v37 }
 0x52f   : > { %2093 = vrot.lane.b32.xlu1 %v2083_v33, %s2896_s24  ;;  %2091 = vrot.lane.b32.xlu0 %v2082_v32, %s2896_s24  ;;  %v1702_v33 = vmul.f32 %v1679_v44, %v4100_v23  ;;  %v1691_v23 = vmul.f32 %v1674_v42, %v4036_v0  ;;  %v1849_v0 = vadd.f32 %v4125_v21, %v1695_v28  ;;  %v4275_v44 = vld [vmem:[#allocation3 + $0x31] sm:$0xff]  ;;  %v4301_v28 = vld [vmem:[#allocation3 + $0x69] sm:$0xff] }
 0x531   : > { %v1856_v32 = vadd.f32 %v4133_v35, %v1702_v33  ;;  %v1692_v35 = vmul.f32 %v1674_v42, %v4049_v60 }
 0x533   : > { %v1846_v50 = vadd.f32 %v4121_v40, %v1692_v35  ;;  %v4293_v35 = vld [vmem:[#allocation3 + $0x39] sm:$0xff] }
 0x537   : > { %2099 = vrot.lane.b32.xlu1 %v2086_v55, %s2896_s24  ;;  %2097 = vrot.lane.b32.xlu0 %v2085_v11, %s2896_s24 }
 0x53f   : > { %2103 = vrot.lane.b32.xlu0 %v2088_v51, %s2896_s24  ;;  %v1845_v51 = vadd.f32 %v4127_v9, %v1691_v23 }
 0x549   : > { %v1936_v24 = vpop.permute.xlu2 %1935 }
 0x54a   : > { %v4199_v3 = vadd.f32 %v1936_v24, %v1844_v8 }
 0x552   : > { %v1942_v2 = vpop.permute.xlu2 %1941 }
 0x553   : > { %v4204_v1 = vadd.f32 %v1942_v2, %v1847_v29  ;;  %v1694_v29 = vmul.f32 %v1675_v49, %v4068_v20 }
 0x555   : > { %v1848_v60 = vadd.f32 %v4135_v62, %v1694_v29  ;;  %v4304_v29 = vld [vmem:[#allocation3 + $0x61] sm:$0xff] }
 0x55a   : > { %v1948_v7 = vpop.permute.xlu2 %1947 }
 0x55b   : > { %v4209_v12 = vadd.f32 %v1948_v7, %v1850_v27  ;;  %v1698_v27 = vmul.f32 %v1677_v57, %v4059_v15  ;;  %v1697_v7 = vmul.f32 %v1677_v57, %v4080_v53  ;;  %v1855_v15 = vadd.f32 %v4137_v17, %v1701_v61  ;;  %v4313_v57 = vld [vmem:[#allocation3 + $0x99] sm:$0xff] }
 0x55c   : > { %v1854_v53 = vadd.f32 %v4147_v38, %v1700_v6  ;;  %v4328_v6 = vld [vmem:[#allocation3 + $0xa9] sm:$0xff] }
 0x55d   : > { %v1852_v46 = vadd.f32 %v4131_v19, %v1698_v27  ;;  %v1851_v4 = vadd.f32 %v4139_v41, %v1697_v7 }
 0x561   : > { %v1934_v22 = vpop.permute.xlu1 %1933 }
 0x562   : > { %v1954_v5 = vpop.permute.xlu2 %1953  ;;  %v4216_v30 = vadd.f32 %v1934_v22, %v1843_v13 }
 0x563   : > { %v4218_v59 = vadd.f32 %v1954_v5, %v1853_v16  ;;  %v1680_v16 = vperm.slane %v1672_v47, 0  ;;  %v4326_v47 = vld [vmem:[#allocation3 + $0xb1] sm:$0xff] }
 0x565   : > { %v1704_v5 = vmul.f32 %v1680_v16, %v4078_v39  ;;  %v1703_v33 = vmul.f32 %v1680_v16, %v4102_v26 }
 0x567   : > { %v1858_v37 = vadd.f32 %v4143_v31, %v1704_v5  ;;  %v1857_v10 = vadd.f32 %v4151_v58, %v1703_v33  ;;  %v4338_v5 = vld [vmem:[%s4780_s3 + $0x18] sm:$0xff] }
 0x56a   : > { %v1960_v14 = vpop.permute.xlu2 %1959 }
 0x56b   : > { %v4222_v34 = vadd.f32 %v1960_v14, %v1856_v32  ;;  %v4277_v14 = vld [vmem:[#allocation3 + $0x19] sm:$0xff] }
 0x572   : > { %v2090_v55 = vpop.permute.xlu2 %2089 }
 0x573   : > { %v2113_v11 = vmul.f32 %v2090_v55, %v4225_v36  ;;  %v2114_v56 = vmul.f32 %v2090_v55, %v4227_v43  ;;  %v4287_v55 = vld [vmem:[#allocation3 + $0x49] sm:$0xff] }
 0x575   : > { %2147 = vrot.lane.b32.xlu2 %v2114_v56, %s2899_s7  ;;  %2145 = vrot.lane.b32.xlu1 %v2113_v11, %s2899_s7  ;;  %v4289_v11 = vld [vmem:[#allocation3 + $0x51] sm:$0xff] }
 0x579   : > { %v1940_v45 = vpop.permute.xlu1 %1939  ;;  %v1938_v48 = vpop.permute.xlu0 %1937 }
 0x57a   : > { %v4237_v8 = vadd.f32 %v1940_v45, %v1846_v50  ;;  %v4239_v24 = vadd.f32 %v1938_v48, %v1845_v51  ;;  %v2096_v42 = vpop.permute.xlu2 %2095  ;;  %v4299_v48 = vld [vmem:[#allocation3 + $0x79] sm:$0xff] }
 0x57b   : > { %v2119_v56 = vmul.f32 %v2096_v42, %v4287_v55  ;;  %v2120_v23 = vmul.f32 %v2096_v42, %v4289_v11 }
 0x581   : > { %v1946_v2 = vpop.permute.xlu1 %1945  ;;  %v1944_v9 = vpop.permute.xlu0 %1943 }
 0x582   : > { %v4246_v40 = vadd.f32 %v1946_v2, %v1849_v0  ;;  %v4248_v18 = vadd.f32 %v1944_v9, %v1848_v60  ;;  %v2102_v2 = vpop.permute.xlu2 %2101  ;;  %v4311_v9 = vld [vmem:[#allocation3 + $0x91] sm:$0xff] }
 0x583   : > { %v2125_v27 = vmul.f32 %v2102_v2, %v4311_v9  ;;  %v2126_v7 = vmul.f32 %v2102_v2, %v4313_v57  ;;  %v2017_v2 = vrot.slane %v4338_v5, 2 }
 0x589   : > { %v1952_v20 = vpop.permute.xlu1 %1951  ;;  %v1950_v49 = vpop.permute.xlu0 %1949 }
 0x58a   : > { %v4254_v21 = vadd.f32 %v1952_v20, %v1852_v46  ;;  %v4256_v62 = vadd.f32 %v1950_v49, %v1851_v4  ;;  %v4317_v46 = vld [vmem:[#allocation3 + $0x81] sm:$0xff] }
 0x58b   : > { %v2838_v20 = vld [vmem:[%s4780_s3 + $0x28] sm:$0xff] }
 0x58c   : > { %v2219_v61 = vperm.slane %v2838_v20, 0  ;;  %v2212_v16 = vrot.slane %v2838_v20, 1 }
 0x591   : > { %v1958_v13 = vpop.permute.xlu1 %1957  ;;  %v1956_v19 = vpop.permute.xlu0 %1955 }
 0x592   : > { %v4263_v41 = vadd.f32 %v1958_v13, %v1855_v15  ;;  %v4265_v22 = vadd.f32 %v1956_v19, %v1854_v53  ;;  %v2214_v13 = vrot.slane %v2838_v20, 3  ;;  %v2213_v19 = vrot.slane %v2838_v20, 2 }
 0x594   : > { %v2222_v33 = vperm.slane %v2214_v13, 0 }
 0x599   : > { %v1964_v54 = vpop.permute.xlu1 %1963  ;;  %v1962_v63 = vpop.permute.xlu0 %1961 }
 0x59a   : > { %v4271_v17 = vadd.f32 %v1964_v54, %v1858_v37  ;;  %v4273_v38 = vadd.f32 %v1962_v63, %v1857_v10  ;;  %v2221_v37 = vperm.slane %v2213_v19, 0  ;;  %v2023_v10 = vperm.slane %v4338_v5, 0 }
 0x59b   : > { %v2220_v54 = vperm.slane %v2212_v16, 0 }
 0x59c   : > { %v2040_v63 = vmul.f32 %v2023_v10, %v4227_v43 }
 0x5a1   : > { %v2094_v32 = vpop.permute.xlu1 %2093  ;;  %v2092_v39 = vpop.permute.xlu0 %2091 }
 0x5a2   : > { %v2117_v26 = vmul.f32 %v2094_v32, %v4275_v44  ;;  %v2115_v31 = vmul.f32 %v2092_v39, %v4277_v14  ;;  %v2116_v58 = vmul.f32 %v2092_v39, %v4279_v52  ;;  %v2118_v51 = vmul.f32 %v2094_v32, %v4293_v35 }
 0x5a3   : > { %v2217_v32 = vrot.slane %v2838_v20, 6  ;;  %v2216_v39 = vrot.slane %v2838_v20, 5 }
 0x5a4   : > { %2153 = vrot.lane.b32.xlu2 %v2117_v26, %s2899_s7  ;;  %2151 = vrot.lane.b32.xlu1 %v2116_v58, %s2899_s7  ;;  %v2215_v26 = vrot.slane %v2838_v20, 4 }
 0x5a5   : > { %2149 = vrot.lane.b32.xlu0 %v2115_v31, %s2899_s7  ;;  %v2056_v31 = vadd.f32 %v2040_v63, %v4199_v3 }
 0x5a9   : > { %v2100_v50 = vpop.permute.xlu1 %2099  ;;  %v2098_v45 = vpop.permute.xlu0 %2097 }
 0x5aa   : > { %v2123_v25 = vmul.f32 %v2100_v50, %v4299_v48  ;;  %v2122_v0 = vmul.f32 %v2098_v45, %v4301_v28  ;;  %v2121_v60 = vmul.f32 %v2098_v45, %v4304_v29  ;;  %v2124_v4 = vmul.f32 %v2100_v50, %v4317_v46 }
 0x5ab   : > { %v2218_v50 = vrot.slane %v2838_v20, 7 }
 0x5ac   : > { %2159 = vrot.lane.b32.xlu2 %v2120_v23, %s2899_s7  ;;  %2157 = vrot.lane.b32.xlu1 %v2119_v56, %s2899_s7  ;;  %v2225_v56 = vperm.slane %v2217_v32, 0  ;;  %v2224_v23 = vperm.slane %v2216_v39, 0 }
 0x5ad   : > { %2155 = vrot.lane.b32.xlu0 %v2118_v51, %s2899_s7  ;;  %v2223_v51 = vperm.slane %v2215_v26, 0  ;;  %v2226_v45 = vperm.slane %v2218_v50, 0 }
 0x5b1   : > { %v2104_v49 = vpop.permute.xlu0 %2103 }
 0x5b2   : > { %v2128_v15 = vmul.f32 %v2104_v49, %v4326_v47  ;;  %v2127_v53 = vmul.f32 %v2104_v49, %v4328_v6 }
 0x5b4   : > { %2165 = vrot.lane.b32.xlu2 %v2123_v25, %s2899_s7  ;;  %2163 = vrot.lane.b32.xlu1 %v2122_v0, %s2899_s7  ;;  %v2039_v25 = vmul.f32 %v2023_v10, %v4225_v36  ;;  %v2021_v10 = vrot.slane %v4338_v5, 6 }
 0x5b5   : > { %2161 = vrot.lane.b32.xlu0 %v2121_v60, %s2899_s7 }
 0x5b6   : > { %v2055_v3 = vadd.f32 %v2039_v25, %v4216_v30  ;;  %v2020_v30 = vrot.slane %v4338_v5, 5  ;;  %v2029_v39 = vperm.slane %v2021_v10, 0 }
 0x5bc   : > { %2171 = vrot.lane.b32.xlu2 %v2126_v7, %s2899_s7  ;;  %2169 = vrot.lane.b32.xlu1 %v2125_v27, %s2899_s7  ;;  %v2025_v27 = vperm.slane %v2017_v2, 0 }
 0x5bd   : > { %2167 = vrot.lane.b32.xlu0 %v2124_v4, %s2899_s7  ;;  %v2018_v4 = vrot.slane %v4338_v5, 3 }
 0x5be   : > { %v2043_v7 = vmul.f32 %v2025_v27, %v4275_v44 }
 0x5c0   : > { %v2059_v49 = vadd.f32 %v2043_v7, %v4204_v1  ;;  %v2016_v1 = vrot.slane %v4338_v5, 1  ;;  %v2044_v7 = vmul.f32 %v2025_v27, %v4293_v35 }
 0x5c2   : > { %v2024_v26 = vperm.slane %v2016_v1, 0 }
 0x5c4   : > { %2227 = vrot.lane.b32.xlu2 %v2219_v61, %s2898_s29  ;;  %2175 = vrot.lane.b32.xlu1 %v2128_v15, %s2899_s7  ;;  %v2026_v15 = vperm.slane %v2018_v4, 0  ;;  %v2019_v4 = vrot.slane %v4338_v5, 4 }
 0x5c5   : > { %2173 = vrot.lane.b32.xlu0 %v2127_v53, %s2899_s7 }
 0x5c6   : > { %v2046_v53 = vmul.f32 %v2026_v15, %v4289_v11  ;;  %v2045_v2 = vmul.f32 %v2026_v15, %v4287_v55  ;;  %v2027_v15 = vperm.slane %v2019_v4, 0 }
 0x5c8   : > { %v2062_v13 = vadd.f32 %v2046_v53, %v4209_v12  ;;  %v2042_v12 = vmul.f32 %v2024_v26, %v4279_v52  ;;  %v2047_v27 = vmul.f32 %v2027_v15, %v4304_v29 }
 0x5cc   : > { %2233 = vrot.lane.b32.xlu2 %v2222_v33, %s2898_s29  ;;  %2231 = vrot.lane.b32.xlu1 %v2221_v37, %s2898_s29  ;;  %v2028_v33 = vperm.slane %v2020_v30, 0 }
 0x5cd   : > { %2229 = vrot.lane.b32.xlu0 %v2220_v54, %s2898_s29 }
 0x5ce   : > { %v2049_v37 = vmul.f32 %v2028_v33, %v4299_v48 }
 0x5cf   : > { %v2148_v58 = vpop.permute.xlu2 %2147 }
 0x5d0   : > { %v4346_v42 = vadd.f32 %v2148_v58, %v2056_v31  ;;  %v2065_v54 = vadd.f32 %v2049_v37, %v4218_v59  ;;  %v2052_v31 = vmul.f32 %v2029_v39, %v4313_v57  ;;  %v2041_v58 = vmul.f32 %v2024_v26, %v4277_v14 }
 0x5d1   : > { %v2022_v26 = vrot.slane %v4338_v5, 7 }
 0x5d4   : > { %2239 = vrot.lane.b32.xlu2 %v2225_v56, %s2898_s29  ;;  %2237 = vrot.lane.b32.xlu1 %v2224_v23, %s2898_s29  ;;  %v2068_v56 = vadd.f32 %v2052_v31, %v4222_v34  ;;  %v2058_v23 = vadd.f32 %v2042_v12, %v4237_v8  ;;  %v2061_v34 = vadd.f32 %v2045_v2, %v4246_v40 }
 0x5d5   : > { %2235 = vrot.lane.b32.xlu0 %v2223_v51, %s2898_s29  ;;  %v2048_v40 = vmul.f32 %v2027_v15, %v4301_v28 }
 0x5dd   : > { %2241 = vrot.lane.b32.xlu0 %v2226_v45, %s2898_s29  ;;  %v2057_v45 = vadd.f32 %v2041_v58, %v4239_v24 }
 0x5e7   : > { %v2146_v0 = vpop.permute.xlu1 %2145 }
 0x5e8   : > { %v4354_v60 = vadd.f32 %v2146_v0, %v2055_v3 }
 0x5fe   : > { %v2154_v20 = vpop.permute.xlu2 %2153 }
 0x5ff   : > { %v4360_v61 = vadd.f32 %v2154_v20, %v2059_v49  ;;  %v2060_v20 = vadd.f32 %v2044_v7, %v4248_v18  ;;  %v2064_v18 = vadd.f32 %v2048_v40, %v4254_v21 }
 0x606   : > { %v2160_v19 = vpop.permute.xlu2 %2159 }
 0x607   : > { %v4365_v16 = vadd.f32 %v2160_v19, %v2062_v13 }
 0x60e   : > { %v2166_v63 = vpop.permute.xlu2 %2165 }
 0x60f   : > { %v4371_v32 = vadd.f32 %v2166_v63, %v2065_v54  ;;  %v2051_v54 = vmul.f32 %v2029_v39, %v4311_v9  ;;  %v2050_v63 = vmul.f32 %v2028_v33, %v4317_v46 }
 0x611   : > { %v2067_v31 = vadd.f32 %v2051_v54, %v4263_v41  ;;  %v2066_v58 = vadd.f32 %v2050_v63, %v4265_v22 }
 0x616   : > { %v2172_v51 = vpop.permute.xlu2 %2171  ;;  %v2152_v50 = vpop.permute.xlu1 %2151 }
 0x617   : > { %v4379_v59 = vadd.f32 %v2172_v51, %v2068_v56  ;;  %v4381_v25 = vadd.f32 %v2152_v50, %v2058_v23  ;;  %v2150_v3 = vpop.permute.xlu0 %2149  ;;  %v2030_v23 = vperm.slane %v2022_v26, 0 }
 0x618   : > { %v4383_v0 = vadd.f32 %v2150_v3, %v2057_v45 }
 0x619   : > { %v2054_v51 = vmul.f32 %v2030_v23, %v4326_v47  ;;  %v2053_v50 = vmul.f32 %v2030_v23, %v4328_v6 }
 0x61b   : > { %v2070_v39 = vadd.f32 %v2054_v51, %v4271_v17  ;;  %v2069_v5 = vadd.f32 %v2053_v50, %v4273_v38 }
 0x61e   : > { %v2228_v8 = vpop.permute.xlu2 %2227  ;;  %v2158_v49 = vpop.permute.xlu1 %2157 }
 0x61f   : > { %v2251_v24 = vmul.f32 %v2228_v8, %v4225_v36  ;;  %v2252_v53 = vmul.f32 %v2228_v8, %v4227_v43  ;;  %v4392_v30 = vadd.f32 %v2158_v49, %v2061_v34  ;;  %v2156_v13 = vpop.permute.xlu0 %2155  ;;  %v2063_v36 = vadd.f32 %v2047_v27, %v4256_v62 }
 0x620   : > { %v4394_v19 = vadd.f32 %v2156_v13, %v2060_v20 }
 0x621   : > { %2285 = vrot.lane.b32.xlu2 %v2252_v53, %s2900_s8  ;;  %2283 = vrot.lane.b32.xlu1 %v2251_v24, %s2900_s8 }
 0x626   : > { %v2164_v37 = vpop.permute.xlu1 %2163  ;;  %v2234_v17 = vpop.permute.xlu2 %2233 }
 0x627   : > { %v4402_v43 = vadd.f32 %v2164_v37, %v2064_v18  ;;  %v2162_v10 = vpop.permute.xlu0 %2161  ;;  %v2258_v38 = vmul.f32 %v2234_v17, %v4289_v11  ;;  %v2257_v8 = vmul.f32 %v2234_v17, %v4287_v55 }
 0x628   : > { %v4404_v1 = vadd.f32 %v2162_v10, %v2063_v36 }
 0x62e   : > { %v2170_v12 = vpop.permute.xlu1 %2169  ;;  %v2240_v55 = vpop.permute.xlu2 %2239 }
 0x62f   : > { %v4411_v21 = vadd.f32 %v2170_v12, %v2067_v31  ;;  %v2168_v56 = vpop.permute.xlu0 %2167  ;;  %v2264_v11 = vmul.f32 %v2240_v55, %v4313_v57 }
 0x630   : > { %v4413_v62 = vadd.f32 %v2168_v56, %v2066_v58 }
 0x636   : > { %v2176_v33 = vpop.permute.xlu1 %2175 }
 0x637   : > { %v4419_v45 = vadd.f32 %v2176_v33, %v2070_v39  ;;  %v2174_v41 = vpop.permute.xlu0 %2173 }
 0x638   : > { %v4421_v3 = vadd.f32 %v2174_v41, %v2069_v5 }
 0x63e   : > { %v2232_v22 = vpop.permute.xlu1 %2231 }
 0x63f   : > { %v2255_v2 = vmul.f32 %v2232_v22, %v4275_v44  ;;  %v2230_v7 = vpop.permute.xlu0 %2229  ;;  %v2256_v49 = vmul.f32 %v2232_v22, %v4293_v35  ;;  %v2263_v35 = vmul.f32 %v2240_v55, %v4311_v9 }
 0x640   : > { %v2253_v4 = vmul.f32 %v2230_v7, %v4277_v14  ;;  %v2254_v34 = vmul.f32 %v2230_v7, %v4279_v52  ;;  %v4486_v7 = vld [vmem:[#allocation3 + $0x2] sm:$0xff] }
 0x641   : > { %2291 = vrot.lane.b32.xlu2 %v2255_v2, %s2900_s8 }
 0x642   : > { %2289 = vrot.lane.b32.xlu1 %v2254_v34, %s2900_s8  ;;  %2287 = vrot.lane.b32.xlu0 %v2253_v4, %s2900_s8 }
 0x646   : > { %v2238_v44 = vpop.permute.xlu1 %2237 }
 0x647   : > { %v2236_v14 = vpop.permute.xlu0 %2235  ;;  %v2261_v52 = vmul.f32 %v2238_v44, %v4299_v48  ;;  %v2262_v53 = vmul.f32 %v2238_v44, %v4317_v46  ;;  %v2840_v48 = vld [vmem:[%s4780_s3 + $0x38] sm:$0xff] }
 0x648   : > { %v2259_v20 = vmul.f32 %v2236_v14, %v4304_v29  ;;  %v2260_v24 = vmul.f32 %v2236_v14, %v4301_v28  ;;  %v2431_v29 = vperm.slane %v2840_v48, 0  ;;  %v2426_v9 = vrot.slane %v2840_v48, 3 }
 0x649   : > { %2297 = vrot.lane.b32.xlu2 %v2258_v38, %s2900_s8  ;;  %v2425_v46 = vrot.slane %v2840_v48, 2  ;;  %v2424_v15 = vrot.slane %v2840_v48, 1  ;;  %v2429_v37 = vrot.slane %v2840_v48, 6  ;;  %v2430_v63 = vrot.slane %v2840_v48, 7 }
 0x64a   : > { %2295 = vrot.lane.b32.xlu1 %v2257_v8, %s2900_s8  ;;  %2293 = vrot.lane.b32.xlu0 %v2256_v49, %s2900_s8  ;;  %v2434_v40 = vperm.slane %v2426_v9, 0  ;;  %v4536_v9 = vld [vmem:[#allocation3 + $0x3a] sm:$0xff] }
 0x64b   : > { %v2433_v27 = vperm.slane %v2425_v46, 0  ;;  %v2432_v18 = vperm.slane %v2424_v15, 0  ;;  %v2437_v36 = vperm.slane %v2429_v37, 0  ;;  %v2438_v26 = vperm.slane %v2430_v63, 0  ;;  %v2841_v37 = vld [vmem:[%s4780_s3 + $0x40] sm:$0xff] }
 0x64f   : > { %v2242_v28 = vpop.permute.xlu0 %2241 }
 0x650   : > { %v2265_v13 = vmul.f32 %v2242_v28, %v4328_v6  ;;  %v2266_v57 = vmul.f32 %v2242_v28, %v4326_v47  ;;  %v2428_v47 = vrot.slane %v2840_v48, 5  ;;  %v2427_v6 = vrot.slane %v2840_v48, 4 }
 0x651   : > { %2303 = vrot.lane.b32.xlu2 %v2261_v52, %s2900_s8 }
 0x652   : > { %2301 = vrot.lane.b32.xlu1 %v2260_v24, %s2900_s8  ;;  %2299 = vrot.lane.b32.xlu0 %v2259_v20, %s2900_s8  ;;  %v2436_v10 = vperm.slane %v2428_v47, 0  ;;  %v2435_v54 = vperm.slane %v2427_v6, 0  ;;  %v4550_v6 = vld [vmem:[#allocation3 + $0x62] sm:$0xff] }
 0x659   : > { %2309 = vrot.lane.b32.xlu2 %v2264_v11, %s2900_s8 }
 0x65a   : > { %2307 = vrot.lane.b32.xlu1 %v2263_v35, %s2900_s8  ;;  %2305 = vrot.lane.b32.xlu0 %v2262_v53, %s2900_s8  ;;  %v4520_v35 = vld [vmem:[#allocation3 + $0x1a] sm:$0xff]  ;;  %v4522_v53 = vld [vmem:[#allocation3 + $0x22] sm:$0xff] }
 0x661   : > { %2439 = vrot.lane.b32.xlu2 %v2431_v29, %s2896_s24  ;;  %v4532_v29 = vld [vmem:[#allocation3 + $0x52] sm:$0xff] }
 0x662   : > { %2313 = vrot.lane.b32.xlu1 %v2266_v57, %s2900_s8  ;;  %2311 = vrot.lane.b32.xlu0 %v2265_v13, %s2900_s8 }
 0x669   : > { %2445 = vrot.lane.b32.xlu2 %v2434_v40, %s2896_s24 }
 0x66a   : > { %2443 = vrot.lane.b32.xlu1 %v2433_v27, %s2896_s24  ;;  %2441 = vrot.lane.b32.xlu0 %v2432_v18, %s2896_s24  ;;  %v4542_v27 = vld [vmem:[#allocation3 + $0x7a] sm:$0xff]  ;;  %v4544_v18 = vld [vmem:[#allocation3 + $0x6a] sm:$0xff] }
 0x671   : > { %2451 = vrot.lane.b32.xlu2 %v2437_v36, %s2896_s24 }
 0x672   : > { %2449 = vrot.lane.b32.xlu1 %v2436_v10, %s2896_s24  ;;  %2447 = vrot.lane.b32.xlu0 %v2435_v54, %s2896_s24  ;;  %v2562_v54 = vrot.slane %v2841_v37, 1 }
 0x674   : > { %v2570_v63 = vperm.slane %v2562_v54, 0 }
 0x67a   : > { %2453 = vrot.lane.b32.xlu0 %v2438_v26, %s2896_s24  ;;  %v2569_v26 = vperm.slane %v2841_v37, 0 }
 0x67b   : > { %v2286_v31 = vpop.permute.xlu2 %2285 }
 0x67c   : > { %v4463_v12 = vadd.f32 %v2286_v31, %v4346_v42  ;;  %v4557_v31 = vld [vmem:[#allocation3 + $0x82] sm:$0xff] }
 0x693   : > { %v2284_v58 = vpop.permute.xlu1 %2283 }
 0x694   : > { %v4466_v56 = vadd.f32 %v2284_v58, %v4354_v60 }
 0x69b   : > { %v2292_v23 = vpop.permute.xlu2 %2291 }
 0x69c   : > { %v4469_v51 = vadd.f32 %v2292_v23, %v4360_v61  ;;  %v2565_v23 = vrot.slane %v2841_v37, 4 }
 0x6a3   : > { %v2298_v50 = vpop.permute.xlu2 %2297 }
 0x6a4   : > { %v4472_v39 = vadd.f32 %v2298_v50, %v4365_v16  ;;  %v4488_v16 = vld [vmem:[#allocation3 + $0xa] sm:$0xff]  ;;  %v2564_v50 = vrot.slane %v2841_v37, 3 }
 0x6ab   : > { %v2304_v33 = vpop.permute.xlu2 %2303 }
 0x6ac   : > { %v4475_v5 = vadd.f32 %v2304_v33, %v4371_v32  ;;  %v2563_v33 = vrot.slane %v2841_v37, 2 }
 0x6b3   : > { %v2310_v41 = vpop.permute.xlu2 %2309 }
 0x6b4   : > { %v4478_v42 = vadd.f32 %v2310_v41, %v4379_v59  ;;  %v2290_v22 = vpop.permute.xlu1 %2289  ;;  %v2288_v2 = vpop.permute.xlu0 %2287  ;;  %v2573_v41 = vperm.slane %v2565_v23, 0 }
 0x6b5   : > { %v4481_v60 = vadd.f32 %v2290_v22, %v4381_v25  ;;  %v4484_v61 = vadd.f32 %v2288_v2, %v4383_v0  ;;  %v2572_v22 = vperm.slane %v2564_v50, 0  ;;  %v2571_v2 = vperm.slane %v2563_v33, 0 }
 0x6bb   : > { %v2440_v4 = vpop.permute.xlu2 %2439 }
 0x6bc   : > { %v2463_v32 = vmul.f32 %v2440_v4, %v4486_v7  ;;  %v2464_v34 = vmul.f32 %v2440_v4, %v4488_v16  ;;  %v2296_v17 = vpop.permute.xlu1 %2295  ;;  %v2294_v59 = vpop.permute.xlu0 %2293  ;;  %v2568_v4 = vrot.slane %v2841_v37, 7 }
 0x6bd   : > { %v4493_v38 = vadd.f32 %v2296_v17, %v4392_v30  ;;  %v4496_v25 = vadd.f32 %v2294_v59, %v4394_v19 }
 0x6be   : > { %2497 = vrot.lane.b32.xlu2 %v2464_v34, %s2899_s7  ;;  %2495 = vrot.lane.b32.xlu1 %v2463_v32, %s2899_s7  ;;  %v2567_v32 = vrot.slane %v2841_v37, 6  ;;  %v2566_v34 = vrot.slane %v2841_v37, 5  ;;  %v2576_v17 = vperm.slane %v2568_v4, 0 }
 0x6c0   : > { %v2575_v59 = vperm.slane %v2567_v32, 0 }
 0x6c4   : > { %v2302_v0 = vpop.permute.xlu1 %2301  ;;  %v2300_v8 = vpop.permute.xlu0 %2299 }
 0x6c5   : > { %v4501_v49 = vadd.f32 %v2302_v0, %v4402_v43  ;;  %v4504_v44 = vadd.f32 %v2300_v8, %v4404_v1  ;;  %v4518_v43 = vld [vmem:[#allocation3 + $0x32] sm:$0xff]  ;;  %v2574_v0 = vperm.slane %v2566_v34, 0 }
 0x6cc   : > { %v2308_v14 = vpop.permute.xlu1 %2307  ;;  %v2306_v52 = vpop.permute.xlu0 %2305 }
 0x6cd   : > { %v4507_v30 = vadd.f32 %v2308_v14, %v4411_v21  ;;  %v4510_v19 = vadd.f32 %v2306_v52, %v4413_v62  ;;  %v4569_v52 = vld [vmem:[#allocation3 + $0x9a] sm:$0xff] }
 0x6d4   : > { %v2314_v20 = vpop.permute.xlu1 %2313  ;;  %v2312_v24 = vpop.permute.xlu0 %2311 }
 0x6d5   : > { %v4513_v55 = vadd.f32 %v2314_v20, %v4419_v45  ;;  %v4516_v11 = vadd.f32 %v2312_v24, %v4421_v3  ;;  %v2446_v45 = vpop.permute.xlu2 %2445  ;;  %v4530_v3 = vld [vmem:[#allocation3 + $0x4a] sm:$0xff]  ;;  %v4573_v24 = vld [vmem:[#allocation3 + $0x92] sm:$0xff] }
 0x6d6   : > { %v2469_v13 = vmul.f32 %v2446_v45, %v4530_v3  ;;  %v2470_v57 = vmul.f32 %v2446_v45, %v4532_v29  ;;  %v4571_v20 = vld [vmem:[#allocation3 + $0xaa] sm:$0xff]  ;;  %v4587_v45 = vld [vmem:[#allocation3 + $0xb2] sm:$0xff] }
 0x6dc   : > { %v2444_v1 = vpop.permute.xlu1 %2443  ;;  %v2442_v21 = vpop.permute.xlu0 %2441 }
 0x6dd   : > { %v2467_v48 = vmul.f32 %v2444_v1, %v4518_v43  ;;  %v2465_v62 = vmul.f32 %v2442_v21, %v4520_v35  ;;  %v2466_v28 = vmul.f32 %v2442_v21, %v4522_v53  ;;  %v2468_v46 = vmul.f32 %v2444_v1, %v4536_v9  ;;  %v2452_v8 = vpop.permute.xlu2 %2451 }
 0x6de   : > { %v2476_v1 = vmul.f32 %v2452_v8, %v4569_v52 }
 0x6df   : > { %2503 = vrot.lane.b32.xlu2 %v2467_v48, %s2899_s7  ;;  %2501 = vrot.lane.b32.xlu1 %v2466_v28, %s2899_s7  ;;  %v2475_v48 = vmul.f32 %v2452_v8, %v4573_v24 }
 0x6e0   : > { %2499 = vrot.lane.b32.xlu0 %v2465_v62, %s2899_s7  ;;  %v4581_v62 = vld [vmem:[%s4780_s3 + $0x30] sm:$0xff] }
 0x6e1   : > { %v2373_v28 = vperm.slane %v4581_v62, 0 }
 0x6e3   : > { %v2389_v37 = vmul.f32 %v2373_v28, %v4486_v7 }
 0x6e4   : > { %v2450_v15 = vpop.permute.xlu1 %2449  ;;  %v2448_v40 = vpop.permute.xlu0 %2447 }
 0x6e5   : > { %v2473_v47 = vmul.f32 %v2450_v15, %v4542_v27  ;;  %v2472_v36 = vmul.f32 %v2448_v40, %v4544_v18  ;;  %v2471_v10 = vmul.f32 %v2448_v40, %v4550_v6  ;;  %v2474_v58 = vmul.f32 %v2450_v15, %v4557_v31 }
 0x6e7   : > { %2509 = vrot.lane.b32.xlu2 %v2470_v57, %s2899_s7  ;;  %2507 = vrot.lane.b32.xlu1 %v2469_v13, %s2899_s7  ;;  %v2390_v13 = vmul.f32 %v2373_v28, %v4488_v16 }
 0x6e8   : > { %2505 = vrot.lane.b32.xlu0 %v2468_v46, %s2899_s7 }
 0x6e9   : > { %v2406_v46 = vadd.f32 %v2390_v13, %v4463_v12 }
 0x6ec   : > { %v2454_v14 = vpop.permute.xlu0 %2453 }
 0x6ed   : > { %v2477_v21 = vmul.f32 %v2454_v14, %v4571_v20  ;;  %v2478_v57 = vmul.f32 %v2454_v14, %v4587_v45 }
 0x6ef   : > { %2515 = vrot.lane.b32.xlu2 %v2473_v47, %s2899_s7  ;;  %2513 = vrot.lane.b32.xlu1 %v2472_v36, %s2899_s7  ;;  %v2367_v47 = vrot.slane %v4581_v62, 2  ;;  %v2405_v36 = vadd.f32 %v2389_v37, %v4466_v56  ;;  %v2369_v37 = vrot.slane %v4581_v62, 4 }
 0x6f0   : > { %2511 = vrot.lane.b32.xlu0 %v2471_v10, %s2899_s7 }
 0x6f7   : > { %2579 = vrot.lane.b32.xlu2 %v2570_v63, %s2898_s29  ;;  %2577 = vrot.lane.b32.xlu1 %v2569_v26, %s2898_s29  ;;  %v2375_v63 = vperm.slane %v2367_v47, 0 }
 0x6f8   : > { %2517 = vrot.lane.b32.xlu0 %v2474_v58, %s2899_s7  ;;  %v2368_v58 = vrot.slane %v4581_v62, 3 }
 0x6f9   : > { %v2393_v26 = vmul.f32 %v2375_v63, %v4518_v43  ;;  %v2394_v47 = vmul.f32 %v2375_v63, %v4536_v9 }
 0x6fa   : > { %v2376_v33 = vperm.slane %v2368_v58, 0 }
 0x6fb   : > { %v2409_v12 = vadd.f32 %v2393_v26, %v4469_v51  ;;  %v2377_v26 = vperm.slane %v2369_v37, 0 }
 0x6ff   : > { %2585 = vrot.lane.b32.xlu2 %v2573_v41, %s2898_s29  ;;  %2583 = vrot.lane.b32.xlu1 %v2572_v22, %s2898_s29  ;;  %v2396_v41 = vmul.f32 %v2376_v33, %v4532_v29  ;;  %v2370_v22 = vrot.slane %v4581_v62, 5 }
 0x700   : > { %2581 = vrot.lane.b32.xlu0 %v2571_v2, %s2898_s29 }
 0x701   : > { %v2412_v56 = vadd.f32 %v2396_v41, %v4472_v39  ;;  %v2378_v32 = vperm.slane %v2370_v22, 0 }
 0x703   : > { %v2399_v34 = vmul.f32 %v2378_v32, %v4542_v27 }
 0x705   : > { %v2415_v51 = vadd.f32 %v2399_v34, %v4475_v5 }
 0x707   : > { %2591 = vrot.lane.b32.xlu2 %v2576_v17, %s2898_s29  ;;  %2589 = vrot.lane.b32.xlu1 %v2575_v59, %s2898_s29  ;;  %v2366_v17 = vrot.slane %v4581_v62, 1 }
 0x708   : > { %2587 = vrot.lane.b32.xlu0 %v2574_v0, %s2898_s29 }
 0x709   : > { %v2374_v8 = vperm.slane %v2366_v17, 0 }
 0x70b   : > { %v2392_v14 = vmul.f32 %v2374_v8, %v4522_v53 }
 0x70d   : > { %v2408_v39 = vadd.f32 %v2392_v14, %v4481_v60 }
 0x70f   : > { %2521 = vrot.lane.b32.xlu1 %v2476_v1, %s2899_s7  ;;  %2523 = vrot.lane.b32.xlu2 %v2477_v21, %s2899_s7  ;;  %v2391_v1 = vmul.f32 %v2374_v8, %v4520_v35 }
 0x710   : > { %2519 = vrot.lane.b32.xlu0 %v2475_v48, %s2899_s7 }
 0x711   : > { %v2407_v28 = vadd.f32 %v2391_v1, %v4484_v61  ;;  %v2410_v61 = vadd.f32 %v2394_v47, %v4496_v25  ;;  %v2400_v25 = vmul.f32 %v2378_v32, %v4557_v31 }
 0x713   : > { %v2416_v34 = vadd.f32 %v2400_v25, %v4510_v19  ;;  %v2371_v19 = vrot.slane %v4581_v62, 6 }
 0x718   : > { %2525 = vrot.lane.b32.xlu0 %v2478_v57, %s2899_s7  ;;  %v2498_v15 = vpop.permute.xlu2 %2497 }
 0x719   : > { %v4593_v40 = vadd.f32 %v2498_v15, %v2406_v46  ;;  %v2395_v15 = vmul.f32 %v2376_v33, %v4530_v3 }
 0x71b   : > { %v2411_v60 = vadd.f32 %v2395_v15, %v4493_v38 }
 0x730   : > { %v2496_v10 = vpop.permute.xlu1 %2495 }
 0x731   : > { %v4598_v54 = vadd.f32 %v2496_v10, %v2405_v36 }
 0x739   : > { %v2504_v23 = vpop.permute.xlu2 %2503 }
 0x73a   : > { %v4603_v50 = vadd.f32 %v2504_v23, %v2409_v12  ;;  %v2398_v12 = vmul.f32 %v2377_v26, %v4544_v18  ;;  %v2397_v23 = vmul.f32 %v2377_v26, %v4550_v6 }
 0x73c   : > { %v2414_v33 = vadd.f32 %v2398_v12, %v4501_v49  ;;  %v2413_v63 = vadd.f32 %v2397_v23, %v4504_v44 }
 0x741   : > { %v2510_v2 = vpop.permute.xlu2 %2509 }
 0x742   : > { %v4608_v4 = vadd.f32 %v2510_v2, %v2412_v56 }
 0x749   : > { %v2516_v59 = vpop.permute.xlu2 %2515 }
 0x74a   : > { %v4613_v0 = vadd.f32 %v2516_v59, %v2415_v51 }
 0x751   : > { %v2580_v21 = vpop.permute.xlu2 %2579  ;;  %v2502_v48 = vpop.permute.xlu1 %2501 }
 0x752   : > { %v2603_v13 = vmul.f32 %v2580_v21, %v4520_v35  ;;  %v4620_v57 = vadd.f32 %v2502_v48, %v2408_v39  ;;  %v2500_v46 = vpop.permute.xlu0 %2499  ;;  %v2604_v49 = vmul.f32 %v2580_v21, %v4522_v53 }
 0x753   : > { %v4622_v5 = vadd.f32 %v2500_v46, %v2407_v28 }
 0x754   : > { %2637 = vrot.lane.b32.xlu0 %v2603_v13, %s2900_s8 }
 0x759   : > { %v2508_v36 = vpop.permute.xlu1 %2507 }
 0x75a   : > { %v4630_v10 = vadd.f32 %v2508_v36, %v2411_v60  ;;  %v2506_v35 = vpop.permute.xlu0 %2505 }
 0x75b   : > { %v4632_v58 = vadd.f32 %v2506_v35, %v2410_v61  ;;  %v2868_v35 = vld [vmem:[%s4781_s4 + $0x1] ss:$0 sm:$0xff] }
 0x761   : > { %v2514_v41 = vpop.permute.xlu1 %2513 }
 0x762   : > { %v4638_v22 = vadd.f32 %v2514_v41, %v2414_v33  ;;  %v2512_v38 = vpop.permute.xlu0 %2511 }
 0x763   : > { %v4640_v56 = vadd.f32 %v2512_v38, %v2413_v63 }
 0x769   : > { %v2578_v2 = vpop.permute.xlu1 %2577 }
 0x76a   : > { %v2601_v17 = vmul.f32 %v2578_v2, %v4486_v7  ;;  %v2602_v51 = vmul.f32 %v2578_v2, %v4488_v16  ;;  %v2518_v59 = vpop.permute.xlu0 %2517  ;;  %v2586_v16 = vpop.permute.xlu2 %2585  ;;  %v2870_v2 = vld [vmem:[%s4781_s4 + $0x3] ss:$0 sm:$0xff] }
 0x76b   : > { %v4646_v8 = vadd.f32 %v2518_v59, %v2416_v34  ;;  %v2609_v53 = vmul.f32 %v2586_v16, %v4550_v6 }
 0x76c   : > { %2633 = vrot.lane.b32.xlu1 %v2601_v17, %s2900_s8  ;;  %2635 = vrot.lane.b32.xlu2 %v2602_v51, %s2900_s8 }
 0x771   : > { %v2584_v7 = vpop.permute.xlu1 %2583 }
 0x772   : > { %v2582_v44 = vpop.permute.xlu0 %2581  ;;  %v2607_v1 = vmul.f32 %v2584_v7, %v4530_v3  ;;  %v2608_v21 = vmul.f32 %v2584_v7, %v4532_v29  ;;  %v2610_v3 = vmul.f32 %v2586_v16, %v4544_v18  ;;  %v2592_v18 = vpop.permute.xlu2 %2591 }
 0x773   : > { %v2605_v14 = vmul.f32 %v2582_v44, %v4518_v43  ;;  %v2606_v32 = vmul.f32 %v2582_v44, %v4536_v9  ;;  %v2379_v43 = vperm.slane %v2371_v19, 0  ;;  %v2372_v9 = vrot.slane %v4581_v62, 7 }
 0x774   : > { %2639 = vrot.lane.b32.xlu1 %v2604_v49, %s2900_s8  ;;  %v2616_v61 = vmul.f32 %v2592_v18, %v4587_v45 }
 0x775   : > { %2643 = vrot.lane.b32.xlu0 %v2606_v32, %s2900_s8  ;;  %2641 = vrot.lane.b32.xlu2 %v2605_v14, %s2900_s8  ;;  %v2401_v48 = vmul.f32 %v2379_v43, %v4573_v24  ;;  %v4667_v46 = vperm.slane %v2372_v9, 0  ;;  %v2402_v7 = vmul.f32 %v2379_v43, %v4569_v52 }
 0x777   : > { %v2417_v28 = vadd.f32 %v2401_v48, %v4507_v30  ;;  %v2404_v30 = vmul.f32 %v4667_v46, %v4587_v45 }
 0x779   : > { %v2590_v62 = vpop.permute.xlu1 %2589  ;;  %v2420_v37 = vadd.f32 %v2404_v30, %v4513_v55 }
 0x77a   : > { %v2588_v39 = vpop.permute.xlu0 %2587  ;;  %v2613_v47 = vmul.f32 %v2590_v62, %v4573_v24  ;;  %v2614_v60 = vmul.f32 %v2590_v62, %v4569_v52  ;;  %v4689_v55 = vpop.permute.xlu2 %2523  ;;  %v2867_v24 = vld [vmem:[%s4781_s4] ss:$0 sm:$0xff] }
 0x77b   : > { %v2611_v29 = vmul.f32 %v2588_v39, %v4542_v27  ;;  %v2612_v6 = vmul.f32 %v2588_v39, %v4557_v31  ;;  %v2615_v31 = vmul.f32 %v2592_v18, %v4571_v20 }
 0x77c   : > { %2645 = vrot.lane.b32.xlu1 %v2607_v1, %s2900_s8 }
 0x77d   : > { %2649 = vrot.lane.b32.xlu0 %v2609_v53, %s2900_s8  ;;  %2647 = vrot.lane.b32.xlu2 %v2608_v21, %s2900_s8 }
 0x781   : > { %v2522_v25 = vpop.permute.xlu1 %2521 }
 0x782   : > { %v2520_v13 = vpop.permute.xlu0 %2519 }
 0x783   : > { %v4671_v15 = vadd.f32 %v2520_v13, %v2417_v28 }
 0x784   : > { %2651 = vrot.lane.b32.xlu1 %v2610_v3, %s2900_s8 }
 0x785   : > { %2655 = vrot.lane.b32.xlu0 %v2612_v6, %s2900_s8  ;;  %2653 = vrot.lane.b32.xlu2 %v2611_v29, %s2900_s8 }
 0x78a   : > { %v2526_v27 = vpop.permute.xlu0 %2525 }
 0x78b   : > { %v4682_v36 = vadd.f32 %v2526_v27, %v2420_v37 }
 0x78c   : > { %2657 = vrot.lane.b32.xlu1 %v2613_v47, %s2900_s8 }
 0x78d   : > { %2661 = vrot.lane.b32.xlu0 %v2615_v31, %s2900_s8  ;;  %2659 = vrot.lane.b32.xlu2 %v2614_v60, %s2900_s8 }
 0x794   : > { %2663 = vrot.lane.b32.xlu1 %v2616_v61, %s2900_s8  ;;  %s4704_s8 = scalar_lea.vmem %s4782_s5, %s2844_s20 }
 0x7c6   : > { %v2636_v26 = vpop.permute.xlu2 %2635  ;;  %v2638_v12 = vpop.permute.xlu0 %2637 }
 0x7c7   : > { %v2682_v23 = vadd.f32 %v2636_v26, %v4593_v40  ;;  %v2683_v33 = vadd.f32 %v2638_v12, %v4622_v5  ;;  %v2869_v40 = vld [vmem:[%s4781_s4 + $0x2] ss:$0 sm:$0xff] }
 0x7c9   : > { %v2730_v45 = vadd.f32 %v2867_v24, %v2682_v23  ;;  %v2731_v41 = vadd.f32 %v2868_v35, %v2683_v33 }
 0x7cb   : > { %2747 = vst.msk [vmem:[%s4704_s8 + $0x8] sm:$0xff] %vm2745_vm6, %v2730_v45 }
 0x7cc   : > { %2748 = vst.msk [vmem:[%s4704_s8 + $0x10] sm:$0xff] %vm2745_vm6, %v2731_v41 }
 0x7cf   : > { %v2642_v5 = vpop.permute.xlu2 %2641 }
 0x7d0   : > { %v2685_v63 = vadd.f32 %v2642_v5, %v4603_v50  ;;  %v2871_v50 = vld [vmem:[%s4781_s4 + $0x5] ss:$0 sm:$0xff] }
 0x7d2   : > { %v2733_v38 = vadd.f32 %v2869_v40, %v2685_v63 }
 0x7d4   : > { %2750 = vst.msk [vmem:[%s4704_s8 + $0x20] sm:$0xff] %vm2745_vm6, %v2733_v38 }
 0x7d7   : > { %v2648_v34 = vpop.permute.xlu2 %2647 }
 0x7d8   : > { %v2688_v17 = vadd.f32 %v2648_v34, %v4608_v4  ;;  %v2418_v4 = vadd.f32 %v2402_v7, %v4478_v42 }
 0x7da   : > { %v2736_v51 = vadd.f32 %v2870_v2, %v2688_v17  ;;  %v2556_v19 = vadd.f32 %v2522_v25, %v2418_v4 }
 0x7dc   : > { %2753 = vst.msk [vmem:[%s4704_s8 + $0x38] sm:$0xff] %vm2745_vm6, %v2736_v51 }
 0x7de   : > { %v2634_v59 = vpop.permute.xlu1 %2633 }
 0x7df   : > { %v2681_v49 = vadd.f32 %v2634_v59, %v4598_v54  ;;  %v2654_v44 = vpop.permute.xlu2 %2653  ;;  %v2872_v54 = vld [vmem:[%s4781_s4 + $0x6] ss:$0 sm:$0xff] }
 0x7e0   : > { %v2691_v14 = vadd.f32 %v2654_v44, %v4613_v0 }
 0x7e1   : > { %v2729_v32 = vadd.f32 %v2867_v24, %v2681_v49 }
 0x7e2   : > { %v2739_v16 = vadd.f32 %v2871_v50, %v2691_v14 }
 0x7e3   : > { %2746 = vst.msk [vmem:[%s4704_s8] sm:$0xff] %vm2745_vm6, %v2729_v32 }
 0x7e4   : > { %2756 = vst.msk [vmem:[%s4704_s8 + $0x50] sm:$0xff] %vm2745_vm6, %v2739_v16 }
 0x7e6   : > { %v2640_v1 = vpop.permute.xlu1 %2639 }
 0x7e7   : > { %v2684_v0 = vadd.f32 %v2640_v1, %v4620_v57  ;;  %v2660_v39 = vpop.permute.xlu2 %2659  ;;  %v2644_v52 = vpop.permute.xlu0 %2643  ;;  %v2873_v57 = vld [vmem:[%s4781_s4 + $0x4] ss:$0 sm:$0xff] }
 0x7e8   : > { %v2694_v53 = vadd.f32 %v2660_v39, %v2556_v19  ;;  %v2686_v21 = vadd.f32 %v2644_v52, %v4632_v58 }
 0x7e9   : > { %v2732_v43 = vadd.f32 %v2868_v35, %v2684_v0 }
 0x7ea   : > { %v2742_v9 = vadd.f32 %v2872_v54, %v2694_v53  ;;  %v2734_v42 = vadd.f32 %v2869_v40, %v2686_v21 }
 0x7eb   : > { %2749 = vst.msk [vmem:[%s4704_s8 + $0x18] sm:$0xff] %vm2745_vm6, %v2732_v43 }
 0x7ec   : > { %2759 = vst.msk [vmem:[%s4704_s8 + $0x68] sm:$0xff] %vm2745_vm6, %v2742_v9 }
 0x7ed   : > { %2751 = vst.msk [vmem:[%s4704_s8 + $0x28] sm:$0xff] %vm2745_vm6, %v2734_v42 }
 0x7ee   : > { %v2646_v48 = vpop.permute.xlu1 %2645 }
 0x7ef   : > { %v2687_v28 = vadd.f32 %v2646_v48, %v4630_v10  ;;  %v2650_v3 = vpop.permute.xlu0 %2649  ;;  %v2403_v10 = vmul.f32 %v4667_v46, %v4571_v20 }
 0x7f0   : > { %v2689_v58 = vadd.f32 %v2650_v3, %v4640_v56 }
 0x7f1   : > { %v2735_v13 = vadd.f32 %v2870_v2, %v2687_v28  ;;  %v2419_v56 = vadd.f32 %v2403_v10, %v4516_v11 }
 0x7f2   : > { %v2737_v29 = vadd.f32 %v2873_v57, %v2689_v58 }
 0x7f3   : > { %2752 = vst.msk [vmem:[%s4704_s8 + $0x30] sm:$0xff] %vm2745_vm6, %v2735_v13  ;;  %v2557_v27 = vadd.f32 %v4689_v55, %v2419_v56 }
 0x7f4   : > { %2754 = vst.msk [vmem:[%s4704_s8 + $0x40] sm:$0xff] %vm2745_vm6, %v2737_v29 }
 0x7f6   : > { %v2652_v6 = vpop.permute.xlu1 %2651 }
 0x7f7   : > { %v2690_v62 = vadd.f32 %v2652_v6, %v4638_v22  ;;  %v2656_v30 = vpop.permute.xlu0 %2655 }
 0x7f8   : > { %v2692_v18 = vadd.f32 %v2656_v30, %v4646_v8  ;;  %v2874_v8 = vld [vmem:[%s4781_s4 + $0x7] ss:$0 sm:$0xff] }
 0x7f9   : > { %v2738_v37 = vadd.f32 %v2873_v57, %v2690_v62 }
 0x7fa   : > { %v2740_v47 = vadd.f32 %v2871_v50, %v2692_v18 }
 0x7fb   : > { %2755 = vst.msk [vmem:[%s4704_s8 + $0x48] sm:$0xff] %vm2745_vm6, %v2738_v37 }
 0x7fc   : > { %2757 = vst.msk [vmem:[%s4704_s8 + $0x58] sm:$0xff] %vm2745_vm6, %v2740_v47 }
 0x7fe   : > { %v2658_v22 = vpop.permute.xlu1 %2657 }
 0x7ff   : > { %v2693_v31 = vadd.f32 %v2658_v22, %v4671_v15  ;;  %v2662_v60 = vpop.permute.xlu0 %2661 }
 0x800   : > { %v2695_v61 = vadd.f32 %v2662_v60, %v2557_v27 }
 0x801   : > { %v2741_v20 = vadd.f32 %v2872_v54, %v2693_v31 }
 0x802   : > { %v2743_v46 = vadd.f32 %v2874_v8, %v2695_v61 }
 0x803   : > { %2758 = vst.msk [vmem:[%s4704_s8 + $0x60] sm:$0xff] %vm2745_vm6, %v2741_v20 }
 0x804   : > { %2760 = vst.msk [vmem:[%s4704_s8 + $0x70] sm:$0xff] %vm2745_vm6, %v2743_v46 }
 0x806   : > { %v2664_v11 = vpop.permute.xlu1 %2663 }
 0x807   : > { %v2696_v24 = vadd.f32 %v2664_v11, %v4682_v36 }
 0x809   : > { %v2744_v35 = vadd.f32 %v2874_v8, %v2696_v24 }
 0x80b   : > { %2761 = vst.msk [vmem:[%s4704_s8 + $0x78] sm:$0xff] %vm2745_vm6, %v2744_v35 }
 0x80c PF: > { %s15_s18 = sadd.s32 1, %s2894_s18  }
 0x80d   : > { %p12_p4 = scmp.ge.s32.totalorder %s15_s18, 4  }
 0x80f   :  { %14 = sbr.rel (!%p12_p4) target bundleno = 1 (0x1), region = 86 }

</bundles_post_ra>
